<compile_context>
chip_gen: v7x
topology: tpu7x:2x2x1
jax: 0.10.0
libtpu: 0.0.40
codegen_flags: <defaults>
</compile_context>

<pallas_src>
import functools
import math

import jax
import jax.numpy as jnp
from jax.experimental import pallas as pl
from jax.experimental.pallas import tpu as pltpu


# ----------------------------- kernel helpers ------------------------------

def _layer_norm(x, gamma, beta, eps=1e-12):
    # single-pass reduction: var = E[x^2] - mean^2 (one XLU reduce pass, not two)
    mean = jnp.mean(x, axis=-1, keepdims=True)
    mean_sq = jnp.mean(x * x, axis=-1, keepdims=True)
    var = mean_sq - mean * mean
    return (x - mean) * jax.lax.rsqrt(var + eps) * gamma + beta


def _gelu(x):
    # exact erf GELU (parity with the torch reference; no tanh approximation)
    return x * 0.5 * (1.0 + jax.lax.erf(x * (1.0 / math.sqrt(2.0))))


def _heads_attention(q, k, v, neg_mask, n_heads):
    """q: (Sq, H) f32; k, v: (Sk, H) f32; neg_mask: (1, Sk) = 10000*(1-mask).

    MXU contractions take bf16 operands with f32 accumulation; softmax in f32.
    """
    sq, hidden = q.shape
    sk = k.shape[0]
    hd = hidden // n_heads
    scale = 1.0 / math.sqrt(hd)

    # contiguous hd-wide chunks of H (matches torch split_last + transpose(1,2))
    # TODO(synk): swap reshape+transpose for pltpu.einshape / head-major
    # projection weights at production sizes to avoid the XLU lane relayouts.
    qh = q.astype(jnp.bfloat16).reshape(sq, n_heads, hd).transpose(1, 0, 2)
    kh = k.astype(jnp.bfloat16).reshape(sk, n_heads, hd).transpose(1, 0, 2)
    vh = v.astype(jnp.bfloat16).reshape(sk, n_heads, hd).transpose(1, 0, 2)

    scores = jnp.einsum("hqd,hkd->hqk", qh, kh,
                        preferred_element_type=jnp.float32) * scale
    scores = scores - neg_mask[None, :, :]               # (1,1,Sk) -> (h,Sq,Sk)
    scores = scores - jnp.max(scores, axis=-1, keepdims=True)
    p = jnp.exp(scores)
    p = p / jnp.sum(p, axis=-1, keepdims=True)           # exact divide (tiny tensor)

    ctx = jnp.einsum("hqk,hkd->hqd", p.astype(jnp.bfloat16), vh,
                     preferred_element_type=jnp.float32)
    return ctx.transpose(1, 0, 2).reshape(sq, hidden)    # merge heads -> (Sq, H)


# ------------------------- fused full-layer kernel --------------------------

def _att_layer_kernel(y_ref, x_ref, y_mask_ref, x_mask_ref,
                      w_qkv_s_ref, b_qkv_s_ref, g1_ref, be1_ref,
                      w_q_c_ref, b_q_c_ref, w_kv_c_ref, b_kv_c_ref, g2_ref, be2_ref,
                      w1_ref, b1f_ref, w2_ref, b2f_ref, g3_ref, be3_ref,
                      out_ref, *, n_heads):
    f32 = jnp.float32
    bf16 = jnp.bfloat16

    y = y_ref[0]                       # (Sy, H) f32 -- residual / LN path stays f32
    hidden = y.shape[-1]

    # hoisted mask terms (computed once, reused across heads & rows)
    neg_y = 10000.0 * (1.0 - y_mask_ref[0].astype(f32))   # (1, Sy)
    neg_x = 10000.0 * (1.0 - x_mask_ref[0].astype(f32))   # (1, Sx)

    # ---- (1) self-attention on y: fused (H, 3H) QKV projection (bf16 MXU) ----
    qkv = jnp.dot(y.astype(bf16), w_qkv_s_ref[...],
                  preferred_element_type=f32) + b_qkv_s_ref[...]
    attn = _heads_attention(qkv[:, :hidden],
                            qkv[:, hidden:2 * hidden],
                            qkv[:, 2 * hidden:],
                            neg_y, n_heads)
    y = _layer_norm(y + attn, g1_ref[...], be1_ref[...])

    # ---- (2) co-attention: queries from y, fused (H, 2H) KV from x ----
    q_c = jnp.dot(y.astype(bf16), w_q_c_ref[...],
                  preferred_element_type=f32) + b_q_c_ref[...]
    kv = jnp.dot(x_ref[0].astype(bf16), w_kv_c_ref[...],
                 preferred_element_type=f32) + b_kv_c_ref[...]
    attn = _heads_attention(q_c, kv[:, :hidden], kv[:, hidden:], neg_x, n_heads)
    y = _layer_norm(y + attn, g2_ref[...], be2_ref[...])

    # ---- (3) FFN + residual + LN ----
    h = _gelu(jnp.dot(y.astype(bf16), w1_ref[...],
                      preferred_element_type=f32) + b1f_ref[...])
    f = jnp.dot(h.astype(bf16), w2_ref[...],
                preferred_element_type=f32) + b2f_ref[...]
    y = _layer_norm(y + f, g3_ref[...], be3_ref[...])

    out_ref[0] = y.astype(out_ref.dtype)


def att_forward(x, y, x_mask, y_mask, params, n_heads):
    """Fused ATT layer: returns (x, new_y). One pallas_call, grid over batch."""
    B, Sy, H = y.shape
    Sx = x.shape[1]
    w_qkv_s, b_qkv_s, g1, be1 = params["attention_y"]
    w_q_c, b_q_c, w_kv_c, b_kv_c, g2, be2 = params["co_atten_y"]
    w1, b1, w2, b2, g3, be3 = params["FFN_coy"]

    kernel = functools.partial(_att_layer_kernel, n_heads=n_heads)

    seq_y = pl.BlockSpec((1, Sy, H), lambda b: (b, 0, 0))
    seq_x = pl.BlockSpec((1, Sx, H), lambda b: (b, 0, 0))
    msk_y = pl.BlockSpec((1, 1, Sy), lambda b: (b, 0, 0))
    msk_x = pl.BlockSpec((1, 1, Sx), lambda b: (b, 0, 0))

    # grid-invariant parameters: single-buffered (no 2x VMEM reservation)
    def param_spec(a):
        return pl.BlockSpec(a.shape, lambda b: (0,) * a.ndim,
                            pipeline_mode=pl.Buffered(buffer_count=1))

    # advisory cost so XLA does not treat the fused call as zero-cost
    flops = 2 * B * (Sy * H * 3 * H + 2 * Sy * Sy * H          # self-attn
                     + Sy * H * H + Sx * H * 2 * H
                     + 2 * Sy * Sx * H                          # co-attn
                     + 8 * Sy * H * H)                          # FFN (two 4H matmuls)
    transcendentals = B * (n_heads * Sy * (Sy + Sx)             # exp
                           + Sy * 4 * H                         # erf (gelu)
                           + 3 * Sy)                            # rsqrt (LayerNorm)
    param_list = (w_qkv_s, b_qkv_s, g1, be1, w_q_c, b_q_c, w_kv_c, b_kv_c,
                  g2, be2, w1, b1, w2, b2, g3, be3)
    bytes_accessed = (4 * (2 * y.size + x.size + x_mask.size + y_mask.size)
                      + sum(int(a.size) * a.dtype.itemsize for a in param_list))
    cost = pl.CostEstimate(flops=int(flops),
                           transcendentals=int(transcendentals),
                           bytes_accessed=int(bytes_accessed))

    y_out = pl.pallas_call(
        kernel,
        out_shape=jax.ShapeDtypeStruct((B, Sy, H), y.dtype),
        grid=(B,),
        in_specs=[seq_y, seq_x, msk_y, msk_x,
                  param_spec(w_qkv_s), param_spec(b_qkv_s), param_spec(g1), param_spec(be1),
                  param_spec(w_q_c), param_spec(b_q_c), param_spec(w_kv_c), param_spec(b_kv_c),
                  param_spec(g2), param_spec(be2),
                  param_spec(w1), param_spec(b1), param_spec(w2), param_spec(b2),
                  param_spec(g3), param_spec(be3)],
        out_specs=seq_y,
        input_output_aliases={0: 0},                 # y block b read before written
        compiler_params=pltpu.CompilerParams(
            dimension_semantics=("parallel",),
            vmem_limit_bytes=64 * 1024 * 1024),
        cost_estimate=cost,
    )(y, x, y_mask, x_mask,
      w_qkv_s, b_qkv_s, g1, be1,
      w_q_c, b_q_c, w_kv_c, b_kv_c, g2, be2,
      w1, b1, w2, b2, g3, be3)
    return x, y_out


# ------------------------- deterministic param init -------------------------

def _xavier_normal(key, out_dim, in_dim):
    std = math.sqrt(2.0 / (in_dim + out_dim))
    # generated as torch (out, in) then transposed to (in, out) for x @ W
    return (std * jax.random.normal(key, (out_dim, in_dim), jnp.float32)).T


def make_params(key, hidden):
    keys = iter(jax.random.split(key, 16))
    bf16 = jnp.bfloat16
    gamma = jnp.ones((1, hidden), jnp.float32)
    beta = jnp.zeros((1, hidden), jnp.float32)

    # self-attention on y: fused [q | k | v] -> (H, 3H), stored bf16
    wq = _xavier_normal(next(keys), hidden, hidden)
    wk = _xavier_normal(next(keys), hidden, hidden)
    wv = _xavier_normal(next(keys), hidden, hidden)
    w_qkv_s = jnp.concatenate([wq, wk, wv], axis=1).astype(bf16)
    b_qkv_s = jnp.zeros((1, 3 * hidden), jnp.float32)

    # co-attention: separate q (input y), fused [k | v] -> (H, 2H) (input x)
    w_q_c = _xavier_normal(next(keys), hidden, hidden).astype(bf16)
    b_q_c = jnp.zeros((1, hidden), jnp.float32)
    wk_c = _xavier_normal(next(keys), hidden, hidden)
    wv_c = _xavier_normal(next(keys), hidden, hidden)
    w_kv_c = jnp.concatenate([wk_c, wv_c], axis=1).astype(bf16)
    b_kv_c = jnp.zeros((1, 2 * hidden), jnp.float32)

    # FFN
    w1 = _xavier_normal(next(keys), 4 * hidden, hidden).astype(bf16)
    b1 = jnp.zeros((1, 4 * hidden), jnp.float32)
    w2 = _xavier_normal(next(keys), hidden, 4 * hidden).astype(bf16)
    b2 = jnp.zeros((1, hidden), jnp.float32)

    return {"attention_y": (w_qkv_s, b_qkv_s, gamma, beta),
            "co_atten_y": (w_q_c, b_q_c, w_kv_c, b_kv_c, gamma, beta),
            "FFN_coy": (w1, b1, w2, b2, gamma, beta)}


# ------------------------------ pure-JAX reference ---------------------------
# Implements the torch forward at the SAME mixed precision as the kernel
# (bf16 matmul operands, f32 accumulation / softmax / LayerNorm), so the
# comparison isolates kernel-implementation errors from intended quantization.

def _ref_mha(q_in, kv_in, mask, wq, bq, wk, bk, wv, bv, n_heads):
    B, Sq, H = q_in.shape
    Sk = kv_in.shape[1]
    hd = H // n_heads
    f32, bf16 = jnp.float32, jnp.bfloat16
    q = jnp.einsum("bsk,kh->bsh", q_in.astype(bf16), wq,
                   preferred_element_type=f32) + bq
    k = jnp.einsum("bsk,kh->bsh", kv_in.astype(bf16), wk,
                   preferred_element_type=f32) + bk
    v = jnp.einsum("bsk,kh->bsh", kv_in.astype(bf16), wv,
                   preferred_element_type=f32) + bv
    q = q.reshape(B, Sq, n_heads, hd).transpose(0, 2, 1, 3).astype(bf16)
    k = k.reshape(B, Sk, n_heads, hd).transpose(0, 2, 1, 3).astype(bf16)
    v = v.reshape(B, Sk, n_heads, hd).transpose(0, 2, 1, 3).astype(bf16)
    scores = jnp.einsum("bhqd,bhkd->bhqk", q, k,
                        preferred_element_type=f32) * (1.0 / math.sqrt(hd))
    scores = scores - 10000.0 * (1.0 - mask[:, None, :, :])
    p = jax.nn.softmax(scores, axis=-1)
    ctx = jnp.einsum("bhqk,bhkd->bhqd", p.astype(bf16), v,
                     preferred_element_type=f32)
    return ctx.transpose(0, 2, 1, 3).reshape(B, Sq, H)


def att_forward_ref(x, y, x_mask, y_mask, params, n_heads):
    H = y.shape[-1]
    f32, bf16 = jnp.float32, jnp.bfloat16
    w_qkv_s, b_qkv_s, g1, be1 = params["attention_y"]
    w_q_c, b_q_c, w_kv_c, b_kv_c, g2, be2 = params["co_atten_y"]
    w1, b1, w2, b2, g3, be3 = params["FFN_coy"]

    wq, wk, wv = w_qkv_s[:, :H], w_qkv_s[:, H:2 * H], w_qkv_s[:, 2 * H:]
    bq, bk, bv = b_qkv_s[:, :H], b_qkv_s[:, H:2 * H], b_qkv_s[:, 2 * H:]
    y = _layer_norm(y + _ref_mha(y, y, y_mask, wq, bq, wk, bk, wv, bv, n_heads),
                    g1, be1)

    wk_c, wv_c = w_kv_c[:, :H], w_kv_c[:, H:]
    bk_c, bv_c = b_kv_c[:, :H], b_kv_c[:, H:]
    y = _layer_norm(y + _ref_mha(y, x, x_mask, w_q_c, b_q_c, wk_c, bk_c,
                                 wv_c, bv_c, n_heads), g2, be2)

    h = _gelu(jnp.einsum("bsk,kh->bsh", y.astype(bf16), w1,
                         preferred_element_type=f32) + b1)
    f = jnp.einsum("bsh,hk->bsk", h.astype(bf16), w2,
                   preferred_element_type=f32) + b2
    y = _layer_norm(y + f, g3, be3)
    return x, y


# ----------------------------------- main ------------------------------------

if __name__ == "__main__":
    # n_heads=2 -> head_dim=64: keeps the attention contractions MXU-friendly.
    B, S_X, S_Y, HIDDEN, N_HEADS = 2, 16, 16, 128, 2

    root = jax.random.PRNGKey(0)
    kx, ky, kp = jax.random.split(root, 3)

    x = jax.random.normal(kx, (B, S_X, HIDDEN), dtype=jnp.float32)
    y = jax.random.normal(ky, (B, S_Y, HIDDEN), dtype=jnp.float32)

    # masks: (B, 1, S), 1.0 = attend; mask out the last key position of batch 1
    x_mask = jnp.ones((B, 1, S_X), jnp.float32).at[1, 0, -1].set(0.0)
    y_mask = jnp.ones((B, 1, S_Y), jnp.float32).at[1, 0, -1].set(0.0)

    params = make_params(kp, HIDDEN)   # single layer (layer_num = 0)

    x_out, y_out = att_forward(x, y, x_mask, y_mask, params, N_HEADS)
    jax.block_until_ready((x_out, y_out))

    x_ref, y_ref = att_forward_ref(x, y, x_mask, y_mask, params, N_HEADS)
    assert jnp.allclose(x_out, x_ref, atol=2e-3, rtol=2e-3), \
        float(jnp.max(jnp.abs(x_out - x_ref)))
    assert jnp.allclose(y_out, y_ref, atol=2e-3, rtol=2e-3), \
        float(jnp.max(jnp.abs(y_out - y_ref)))

    print("KERNEL_OK")
</pallas_src>

<mosaic_0001>
module attributes {stable_mosaic.version = 11 : i64} {
  func.func @_att_layer_kernel(%arg0: i32, %arg1: memref<1x16x128xf32, #tpu.memory_space<vmem>>, %arg2: memref<1x16x128xf32, #tpu.memory_space<vmem>>, %arg3: memref<1x1x16xf32, #tpu.memory_space<vmem>>, %arg4: memref<1x1x16xf32, #tpu.memory_space<vmem>>, %arg5: memref<128x384xbf16, #tpu.memory_space<vmem>>, %arg6: memref<1x384xf32, #tpu.memory_space<vmem>>, %arg7: memref<1x128xf32, #tpu.memory_space<vmem>>, %arg8: memref<1x128xf32, #tpu.memory_space<vmem>>, %arg9: memref<128x128xbf16, #tpu.memory_space<vmem>>, %arg10: memref<1x128xf32, #tpu.memory_space<vmem>>, %arg11: memref<128x256xbf16, #tpu.memory_space<vmem>>, %arg12: memref<1x256xf32, #tpu.memory_space<vmem>>, %arg13: memref<1x128xf32, #tpu.memory_space<vmem>>, %arg14: memref<1x128xf32, #tpu.memory_space<vmem>>, %arg15: memref<128x512xbf16, #tpu.memory_space<vmem>>, %arg16: memref<1x512xf32, #tpu.memory_space<vmem>>, %arg17: memref<512x128xbf16, #tpu.memory_space<vmem>>, %arg18: memref<1x128xf32, #tpu.memory_space<vmem>>, %arg19: memref<1x128xf32, #tpu.memory_space<vmem>>, %arg20: memref<1x128xf32, #tpu.memory_space<vmem>>, %arg21: memref<1x16x128xf32, #tpu.memory_space<vmem>>) attributes {dimension_semantics = [#tpu.dimension_semantics<parallel>], iteration_bounds = array<i64: 2>, scalar_prefetch = 0 : i64, scratch_operands = 0 : i64, tpu.core_type = #tpu.core_type<tc>, window_params = [{transform_indices = @transform_0, window_bounds = array<i64: 1, 16, 128>}, {transform_indices = @transform_1, window_bounds = array<i64: 1, 16, 128>}, {transform_indices = @transform_2, window_bounds = array<i64: 1, 1, 16>}, {transform_indices = @transform_3, window_bounds = array<i64: 1, 1, 16>}, {pipeline_mode = #tpu.pipeline_mode<synchronous>, transform_indices = @transform_4, window_bounds = array<i64: 128, 384>}, {pipeline_mode = #tpu.pipeline_mode<synchronous>, transform_indices = @transform_5, window_bounds = array<i64: 1, 384>}, {pipeline_mode = #tpu.pipeline_mode<synchronous>, transform_indices = @transform_6, window_bounds = array<i64: 1, 128>}, {pipeline_mode = #tpu.pipeline_mode<synchronous>, transform_indices = @transform_7, window_bounds = array<i64: 1, 128>}, {pipeline_mode = #tpu.pipeline_mode<synchronous>, transform_indices = @transform_8, window_bounds = array<i64: 128, 128>}, {pipeline_mode = #tpu.pipeline_mode<synchronous>, transform_indices = @transform_9, window_bounds = array<i64: 1, 128>}, {pipeline_mode = #tpu.pipeline_mode<synchronous>, transform_indices = @transform_10, window_bounds = array<i64: 128, 256>}, {pipeline_mode = #tpu.pipeline_mode<synchronous>, transform_indices = @transform_11, window_bounds = array<i64: 1, 256>}, {pipeline_mode = #tpu.pipeline_mode<synchronous>, transform_indices = @transform_12, window_bounds = array<i64: 1, 128>}, {pipeline_mode = #tpu.pipeline_mode<synchronous>, transform_indices = @transform_13, window_bounds = array<i64: 1, 128>}, {pipeline_mode = #tpu.pipeline_mode<synchronous>, transform_indices = @transform_14, window_bounds = array<i64: 128, 512>}, {pipeline_mode = #tpu.pipeline_mode<synchronous>, transform_indices = @transform_15, window_bounds = array<i64: 1, 512>}, {pipeline_mode = #tpu.pipeline_mode<synchronous>, transform_indices = @transform_16, window_bounds = array<i64: 512, 128>}, {pipeline_mode = #tpu.pipeline_mode<synchronous>, transform_indices = @transform_17, window_bounds = array<i64: 1, 128>}, {pipeline_mode = #tpu.pipeline_mode<synchronous>, transform_indices = @transform_18, window_bounds = array<i64: 1, 128>}, {pipeline_mode = #tpu.pipeline_mode<synchronous>, transform_indices = @transform_19, window_bounds = array<i64: 1, 128>}, {transform_indices = @transform_20, window_bounds = array<i64: 1, 16, 128>}]} {
    %c0 = arith.constant 0 : index
    %c0_0 = arith.constant 0 : index
    %c0_1 = arith.constant 0 : index
    %0 = vector.load %arg1[%c0, %c0_0, %c0_1] : memref<1x16x128xf32, #tpu.memory_space<vmem>>, vector<1x16x128xf32>
    %1 = vector.shape_cast %0 : vector<1x16x128xf32> to vector<16x128xf32>
    %c0_2 = arith.constant 0 : index
    %c0_3 = arith.constant 0 : index
    %c0_4 = arith.constant 0 : index
    %2 = vector.load %arg3[%c0_2, %c0_3, %c0_4] : memref<1x1x16xf32, #tpu.memory_space<vmem>>, vector<1x1x16xf32>
    %3 = vector.shape_cast %2 : vector<1x1x16xf32> to vector<1x16xf32>
    %cst = arith.constant 1.000000e+00 : f32
    %4 = vector.broadcast %cst : f32 to vector<1x16xf32>
    %5 = arith.subf %4, %3 : vector<1x16xf32>
    %cst_5 = arith.constant 1.000000e+04 : f32
    %6 = vector.broadcast %cst_5 : f32 to vector<1x16xf32>
    %7 = arith.mulf %6, %5 : vector<1x16xf32>
    %c0_6 = arith.constant 0 : index
    %c0_7 = arith.constant 0 : index
    %c0_8 = arith.constant 0 : index
    %8 = vector.load %arg4[%c0_6, %c0_7, %c0_8] : memref<1x1x16xf32, #tpu.memory_space<vmem>>, vector<1x1x16xf32>
    %9 = vector.shape_cast %8 : vector<1x1x16xf32> to vector<1x16xf32>
    %cst_9 = arith.constant 1.000000e+00 : f32
    %10 = vector.broadcast %cst_9 : f32 to vector<1x16xf32>
    %11 = arith.subf %10, %9 : vector<1x16xf32>
    %cst_10 = arith.constant 1.000000e+04 : f32
    %12 = vector.broadcast %cst_10 : f32 to vector<1x16xf32>
    %13 = arith.mulf %12, %11 : vector<1x16xf32>
    %14 = arith.truncf %1 : vector<16x128xf32> to vector<16x128xbf16>
    %c0_11 = arith.constant 0 : index
    %c0_12 = arith.constant 0 : index
    %15 = vector.load %arg5[%c0_11, %c0_12] : memref<128x384xbf16, #tpu.memory_space<vmem>>, vector<128x384xbf16>
    %cst_13 = arith.constant dense<0.000000e+00> : vector<16x384xf32>
    %16 = tpu.matmul %14, %15, %cst_13 {dimension_numbers = #tpu.dot_dimension_numbers<[1], [0], [0], [1], [0, 0, 1, 1], [], []>} : vector<16x128xbf16>, vector<128x384xbf16>, vector<16x384xf32> -> vector<16x384xf32>
    %c0_14 = arith.constant 0 : index
    %c0_15 = arith.constant 0 : index
    %17 = vector.load %arg6[%c0_14, %c0_15] : memref<1x384xf32, #tpu.memory_space<vmem>>, vector<1x384xf32>
    %18 = vector.broadcast %17 : vector<1x384xf32> to vector<16x384xf32>
    %19 = arith.addf %16, %18 : vector<16x384xf32>
    %20 = vector.extract_strided_slice %19 {offsets = [0, 0], sizes = [16, 128], strides = [1, 1]} : vector<16x384xf32> to vector<16x128xf32>
    %21 = vector.extract_strided_slice %19 {offsets = [0, 128], sizes = [16, 128], strides = [1, 1]} : vector<16x384xf32> to vector<16x128xf32>
    %22 = vector.extract_strided_slice %19 {offsets = [0, 256], sizes = [16, 128], strides = [1, 1]} : vector<16x384xf32> to vector<16x128xf32>
    %23 = arith.truncf %20 : vector<16x128xf32> to vector<16x128xbf16>
    %24 = vector.shape_cast %23 : vector<16x128xbf16> to vector<16x2x64xbf16>
    %25 = tpu.transpose %24, [1, 0, 2] : vector<16x2x64xbf16> -> vector<2x16x64xbf16>
    %26 = arith.truncf %21 : vector<16x128xf32> to vector<16x128xbf16>
    %27 = vector.shape_cast %26 : vector<16x128xbf16> to vector<16x2x64xbf16>
    %28 = tpu.transpose %27, [1, 0, 2] : vector<16x2x64xbf16> -> vector<2x16x64xbf16>
    %29 = arith.truncf %22 : vector<16x128xf32> to vector<16x128xbf16>
    %30 = vector.shape_cast %29 : vector<16x128xbf16> to vector<16x2x64xbf16>
    %31 = tpu.transpose %30, [1, 0, 2] : vector<16x2x64xbf16> -> vector<2x16x64xbf16>
    "tpu.trace_start"() <{level = 10 : i32, message = "hqd,hkd->hqk"}> : () -> ()
    %cst_16 = arith.constant dense<0.000000e+00> : vector<2x16x16xf32>
    %32 = tpu.matmul %25, %28, %cst_16 {dimension_numbers = #tpu.dot_dimension_numbers<[2], [2], [1], [1], [0, 0, 0, 1, 1, 1], [0], [0]>} : vector<2x16x64xbf16>, vector<2x16x64xbf16>, vector<2x16x16xf32> -> vector<2x16x16xf32>
    "tpu.trace_stop"() : () -> ()
    %cst_17 = arith.constant 1.250000e-01 : f32
    %33 = vector.broadcast %cst_17 : f32 to vector<2x16x16xf32>
    %34 = arith.mulf %32, %33 : vector<2x16x16xf32>
    %35 = vector.shape_cast %7 : vector<1x16xf32> to vector<1x1x16xf32>
    %36 = vector.broadcast %35 : vector<1x1x16xf32> to vector<2x16x16xf32>
    %37 = arith.subf %34, %36 : vector<2x16x16xf32>
    %cst_18 = arith.constant dense<0xFF800000> : vector<2x16xf32>
    %38 = vector.multi_reduction <maximumf>, %37, %cst_18 [2] : vector<2x16x16xf32> to vector<2x16xf32>
    %39 = vector.shape_cast %38 : vector<2x16xf32> to vector<2x16x1xf32>
    %40 = vector.broadcast %39 : vector<2x16x1xf32> to vector<2x16x16xf32>
    %41 = arith.subf %37, %40 : vector<2x16x16xf32>
    %42 = math.exp %41 : vector<2x16x16xf32>
    %cst_19 = arith.constant dense<0.000000e+00> : vector<2x16xf32>
    %43 = vector.multi_reduction <add>, %42, %cst_19 [2] : vector<2x16x16xf32> to vector<2x16xf32>
    %44 = vector.shape_cast %43 : vector<2x16xf32> to vector<2x16x1xf32>
    %45 = vector.broadcast %44 : vector<2x16x1xf32> to vector<2x16x16xf32>
    %46 = arith.divf %42, %45 : vector<2x16x16xf32>
    %47 = arith.truncf %46 : vector<2x16x16xf32> to vector<2x16x16xbf16>
    "tpu.trace_start"() <{level = 10 : i32, message = "hqk,hkd->hqd"}> : () -> ()
    %cst_20 = arith.constant dense<0.000000e+00> : vector<2x16x64xf32>
    %48 = tpu.matmul %47, %31, %cst_20 {dimension_numbers = #tpu.dot_dimension_numbers<[2], [1], [1], [2], [0, 0, 0, 1, 1, 2], [0], [0]>} : vector<2x16x16xbf16>, vector<2x16x64xbf16>, vector<2x16x64xf32> -> vector<2x16x64xf32>
    "tpu.trace_stop"() : () -> ()
    %49 = tpu.transpose %48, [1, 0, 2] : vector<2x16x64xf32> -> vector<16x2x64xf32>
    %50 = vector.shape_cast %49 : vector<16x2x64xf32> to vector<16x128xf32>
    %51 = arith.addf %1, %50 : vector<16x128xf32>
    %c0_21 = arith.constant 0 : index
    %c0_22 = arith.constant 0 : index
    %52 = vector.load %arg7[%c0_21, %c0_22] : memref<1x128xf32, #tpu.memory_space<vmem>>, vector<1x128xf32>
    %c0_23 = arith.constant 0 : index
    %c0_24 = arith.constant 0 : index
    %53 = vector.load %arg8[%c0_23, %c0_24] : memref<1x128xf32, #tpu.memory_space<vmem>>, vector<1x128xf32>
    %cst_25 = arith.constant dense<0.000000e+00> : vector<16xf32>
    %54 = vector.multi_reduction <add>, %51, %cst_25 [1] : vector<16x128xf32> to vector<16xf32>
    %55 = vector.shape_cast %54 : vector<16xf32> to vector<16x1xf32>
    %cst_26 = arith.constant 1.280000e+02 : f32
    %56 = vector.broadcast %cst_26 : f32 to vector<16x1xf32>
    %57 = arith.divf %55, %56 : vector<16x1xf32>
    %58 = arith.mulf %51, %51 : vector<16x128xf32>
    %cst_27 = arith.constant dense<0.000000e+00> : vector<16xf32>
    %59 = vector.multi_reduction <add>, %58, %cst_27 [1] : vector<16x128xf32> to vector<16xf32>
    %60 = vector.shape_cast %59 : vector<16xf32> to vector<16x1xf32>
    %cst_28 = arith.constant 1.280000e+02 : f32
    %61 = vector.broadcast %cst_28 : f32 to vector<16x1xf32>
    %62 = arith.divf %60, %61 : vector<16x1xf32>
    %63 = arith.mulf %57, %57 : vector<16x1xf32>
    %64 = arith.subf %62, %63 : vector<16x1xf32>
    %65 = vector.broadcast %57 : vector<16x1xf32> to vector<16x128xf32>
    %66 = arith.subf %51, %65 : vector<16x128xf32>
    %cst_29 = arith.constant 9.99999996E-13 : f32
    %67 = vector.broadcast %cst_29 : f32 to vector<16x1xf32>
    %68 = arith.addf %64, %67 : vector<16x1xf32>
    %69 = math.rsqrt %68 : vector<16x1xf32>
    %70 = vector.broadcast %69 : vector<16x1xf32> to vector<16x128xf32>
    %71 = arith.mulf %66, %70 : vector<16x128xf32>
    %72 = vector.broadcast %52 : vector<1x128xf32> to vector<16x128xf32>
    %73 = arith.mulf %71, %72 : vector<16x128xf32>
    %74 = vector.broadcast %53 : vector<1x128xf32> to vector<16x128xf32>
    %75 = arith.addf %73, %74 : vector<16x128xf32>
    %76 = arith.truncf %75 : vector<16x128xf32> to vector<16x128xbf16>
    %c0_30 = arith.constant 0 : index
    %c0_31 = arith.constant 0 : index
    %77 = vector.load %arg9[%c0_30, %c0_31] : memref<128x128xbf16, #tpu.memory_space<vmem>>, vector<128x128xbf16>
    %cst_32 = arith.constant dense<0.000000e+00> : vector<16x128xf32>
    %78 = tpu.matmul %76, %77, %cst_32 {dimension_numbers = #tpu.dot_dimension_numbers<[1], [0], [0], [1], [0, 0, 1, 1], [], []>} : vector<16x128xbf16>, vector<128x128xbf16>, vector<16x128xf32> -> vector<16x128xf32>
    %c0_33 = arith.constant 0 : index
    %c0_34 = arith.constant 0 : index
    %79 = vector.load %arg10[%c0_33, %c0_34] : memref<1x128xf32, #tpu.memory_space<vmem>>, vector<1x128xf32>
    %80 = vector.broadcast %79 : vector<1x128xf32> to vector<16x128xf32>
    %81 = arith.addf %78, %80 : vector<16x128xf32>
    %c0_35 = arith.constant 0 : index
    %c0_36 = arith.constant 0 : index
    %c0_37 = arith.constant 0 : index
    %82 = vector.load %arg2[%c0_35, %c0_36, %c0_37] : memref<1x16x128xf32, #tpu.memory_space<vmem>>, vector<1x16x128xf32>
    %83 = vector.shape_cast %82 : vector<1x16x128xf32> to vector<16x128xf32>
    %84 = arith.truncf %83 : vector<16x128xf32> to vector<16x128xbf16>
    %c0_38 = arith.constant 0 : index
    %c0_39 = arith.constant 0 : index
    %85 = vector.load %arg11[%c0_38, %c0_39] : memref<128x256xbf16, #tpu.memory_space<vmem>>, vector<128x256xbf16>
    %cst_40 = arith.constant dense<0.000000e+00> : vector<16x256xf32>
    %86 = tpu.matmul %84, %85, %cst_40 {dimension_numbers = #tpu.dot_dimension_numbers<[1], [0], [0], [1], [0, 0, 1, 1], [], []>} : vector<16x128xbf16>, vector<128x256xbf16>, vector<16x256xf32> -> vector<16x256xf32>
    %c0_41 = arith.constant 0 : index
    %c0_42 = arith.constant 0 : index
    %87 = vector.load %arg12[%c0_41, %c0_42] : memref<1x256xf32, #tpu.memory_space<vmem>>, vector<1x256xf32>
    %88 = vector.broadcast %87 : vector<1x256xf32> to vector<16x256xf32>
    %89 = arith.addf %86, %88 : vector<16x256xf32>
    %90 = vector.extract_strided_slice %89 {offsets = [0, 0], sizes = [16, 128], strides = [1, 1]} : vector<16x256xf32> to vector<16x128xf32>
    %91 = vector.extract_strided_slice %89 {offsets = [0, 128], sizes = [16, 128], strides = [1, 1]} : vector<16x256xf32> to vector<16x128xf32>
    %92 = arith.truncf %81 : vector<16x128xf32> to vector<16x128xbf16>
    %93 = vector.shape_cast %92 : vector<16x128xbf16> to vector<16x2x64xbf16>
    %94 = tpu.transpose %93, [1, 0, 2] : vector<16x2x64xbf16> -> vector<2x16x64xbf16>
    %95 = arith.truncf %90 : vector<16x128xf32> to vector<16x128xbf16>
    %96 = vector.shape_cast %95 : vector<16x128xbf16> to vector<16x2x64xbf16>
    %97 = tpu.transpose %96, [1, 0, 2] : vector<16x2x64xbf16> -> vector<2x16x64xbf16>
    %98 = arith.truncf %91 : vector<16x128xf32> to vector<16x128xbf16>
    %99 = vector.shape_cast %98 : vector<16x128xbf16> to vector<16x2x64xbf16>
    %100 = tpu.transpose %99, [1, 0, 2] : vector<16x2x64xbf16> -> vector<2x16x64xbf16>
    "tpu.trace_start"() <{level = 10 : i32, message = "hqd,hkd->hqk"}> : () -> ()
    %cst_43 = arith.constant dense<0.000000e+00> : vector<2x16x16xf32>
    %101 = tpu.matmul %94, %97, %cst_43 {dimension_numbers = #tpu.dot_dimension_numbers<[2], [2], [1], [1], [0, 0, 0, 1, 1, 1], [0], [0]>} : vector<2x16x64xbf16>, vector<2x16x64xbf16>, vector<2x16x16xf32> -> vector<2x16x16xf32>
    "tpu.trace_stop"() : () -> ()
    %cst_44 = arith.constant 1.250000e-01 : f32
    %102 = vector.broadcast %cst_44 : f32 to vector<2x16x16xf32>
    %103 = arith.mulf %101, %102 : vector<2x16x16xf32>
    %104 = vector.shape_cast %13 : vector<1x16xf32> to vector<1x1x16xf32>
    %105 = vector.broadcast %104 : vector<1x1x16xf32> to vector<2x16x16xf32>
    %106 = arith.subf %103, %105 : vector<2x16x16xf32>
    %cst_45 = arith.constant dense<0xFF800000> : vector<2x16xf32>
    %107 = vector.multi_reduction <maximumf>, %106, %cst_45 [2] : vector<2x16x16xf32> to vector<2x16xf32>
    %108 = vector.shape_cast %107 : vector<2x16xf32> to vector<2x16x1xf32>
    %109 = vector.broadcast %108 : vector<2x16x1xf32> to vector<2x16x16xf32>
    %110 = arith.subf %106, %109 : vector<2x16x16xf32>
    %111 = math.exp %110 : vector<2x16x16xf32>
    %cst_46 = arith.constant dense<0.000000e+00> : vector<2x16xf32>
    %112 = vector.multi_reduction <add>, %111, %cst_46 [2] : vector<2x16x16xf32> to vector<2x16xf32>
    %113 = vector.shape_cast %112 : vector<2x16xf32> to vector<2x16x1xf32>
    %114 = vector.broadcast %113 : vector<2x16x1xf32> to vector<2x16x16xf32>
    %115 = arith.divf %111, %114 : vector<2x16x16xf32>
    %116 = arith.truncf %115 : vector<2x16x16xf32> to vector<2x16x16xbf16>
    "tpu.trace_start"() <{level = 10 : i32, message = "hqk,hkd->hqd"}> : () -> ()
    %cst_47 = arith.constant dense<0.000000e+00> : vector<2x16x64xf32>
    %117 = tpu.matmul %116, %100, %cst_47 {dimension_numbers = #tpu.dot_dimension_numbers<[2], [1], [1], [2], [0, 0, 0, 1, 1, 2], [0], [0]>} : vector<2x16x16xbf16>, vector<2x16x64xbf16>, vector<2x16x64xf32> -> vector<2x16x64xf32>
    "tpu.trace_stop"() : () -> ()
    %118 = tpu.transpose %117, [1, 0, 2] : vector<2x16x64xf32> -> vector<16x2x64xf32>
    %119 = vector.shape_cast %118 : vector<16x2x64xf32> to vector<16x128xf32>
    %120 = arith.addf %75, %119 : vector<16x128xf32>
    %c0_48 = arith.constant 0 : index
    %c0_49 = arith.constant 0 : index
    %121 = vector.load %arg13[%c0_48, %c0_49] : memref<1x128xf32, #tpu.memory_space<vmem>>, vector<1x128xf32>
    %c0_50 = arith.constant 0 : index
    %c0_51 = arith.constant 0 : index
    %122 = vector.load %arg14[%c0_50, %c0_51] : memref<1x128xf32, #tpu.memory_space<vmem>>, vector<1x128xf32>
    %cst_52 = arith.constant dense<0.000000e+00> : vector<16xf32>
    %123 = vector.multi_reduction <add>, %120, %cst_52 [1] : vector<16x128xf32> to vector<16xf32>
    %124 = vector.shape_cast %123 : vector<16xf32> to vector<16x1xf32>
    %cst_53 = arith.constant 1.280000e+02 : f32
    %125 = vector.broadcast %cst_53 : f32 to vector<16x1xf32>
    %126 = arith.divf %124, %125 : vector<16x1xf32>
    %127 = arith.mulf %120, %120 : vector<16x128xf32>
    %cst_54 = arith.constant dense<0.000000e+00> : vector<16xf32>
    %128 = vector.multi_reduction <add>, %127, %cst_54 [1] : vector<16x128xf32> to vector<16xf32>
    %129 = vector.shape_cast %128 : vector<16xf32> to vector<16x1xf32>
    %cst_55 = arith.constant 1.280000e+02 : f32
    %130 = vector.broadcast %cst_55 : f32 to vector<16x1xf32>
    %131 = arith.divf %129, %130 : vector<16x1xf32>
    %132 = arith.mulf %126, %126 : vector<16x1xf32>
    %133 = arith.subf %131, %132 : vector<16x1xf32>
    %134 = vector.broadcast %126 : vector<16x1xf32> to vector<16x128xf32>
    %135 = arith.subf %120, %134 : vector<16x128xf32>
    %cst_56 = arith.constant 9.99999996E-13 : f32
    %136 = vector.broadcast %cst_56 : f32 to vector<16x1xf32>
    %137 = arith.addf %133, %136 : vector<16x1xf32>
    %138 = math.rsqrt %137 : vector<16x1xf32>
    %139 = vector.broadcast %138 : vector<16x1xf32> to vector<16x128xf32>
    %140 = arith.mulf %135, %139 : vector<16x128xf32>
    %141 = vector.broadcast %121 : vector<1x128xf32> to vector<16x128xf32>
    %142 = arith.mulf %140, %141 : vector<16x128xf32>
    %143 = vector.broadcast %122 : vector<1x128xf32> to vector<16x128xf32>
    %144 = arith.addf %142, %143 : vector<16x128xf32>
    %145 = arith.truncf %144 : vector<16x128xf32> to vector<16x128xbf16>
    %c0_57 = arith.constant 0 : index
    %c0_58 = arith.constant 0 : index
    %146 = vector.load %arg15[%c0_57, %c0_58] : memref<128x512xbf16, #tpu.memory_space<vmem>>, vector<128x512xbf16>
    %cst_59 = arith.constant dense<0.000000e+00> : vector<16x512xf32>
    %147 = tpu.matmul %145, %146, %cst_59 {dimension_numbers = #tpu.dot_dimension_numbers<[1], [0], [0], [1], [0, 0, 1, 1], [], []>} : vector<16x128xbf16>, vector<128x512xbf16>, vector<16x512xf32> -> vector<16x512xf32>
    %c0_60 = arith.constant 0 : index
    %c0_61 = arith.constant 0 : index
    %148 = vector.load %arg16[%c0_60, %c0_61] : memref<1x512xf32, #tpu.memory_space<vmem>>, vector<1x512xf32>
    %149 = vector.broadcast %148 : vector<1x512xf32> to vector<16x512xf32>
    %150 = arith.addf %147, %149 : vector<16x512xf32>
    %cst_62 = arith.constant 5.000000e-01 : f32
    %151 = vector.broadcast %cst_62 : f32 to vector<16x512xf32>
    %152 = arith.mulf %150, %151 : vector<16x512xf32>
    %cst_63 = arith.constant 0.707106769 : f32
    %153 = vector.broadcast %cst_63 : f32 to vector<16x512xf32>
    %154 = arith.mulf %150, %153 : vector<16x512xf32>
    %155 = math.erf %154 : vector<16x512xf32>
    %cst_64 = arith.constant 1.000000e+00 : f32
    %156 = vector.broadcast %cst_64 : f32 to vector<16x512xf32>
    %157 = arith.addf %156, %155 : vector<16x512xf32>
    %158 = arith.mulf %152, %157 : vector<16x512xf32>
    %159 = arith.truncf %158 : vector<16x512xf32> to vector<16x512xbf16>
    %c0_65 = arith.constant 0 : index
    %c0_66 = arith.constant 0 : index
    %160 = vector.load %arg17[%c0_65, %c0_66] : memref<512x128xbf16, #tpu.memory_space<vmem>>, vector<512x128xbf16>
    %cst_67 = arith.constant dense<0.000000e+00> : vector<16x128xf32>
    %161 = tpu.matmul %159, %160, %cst_67 {dimension_numbers = #tpu.dot_dimension_numbers<[1], [0], [0], [1], [0, 0, 1, 1], [], []>} : vector<16x512xbf16>, vector<512x128xbf16>, vector<16x128xf32> -> vector<16x128xf32>
    %c0_68 = arith.constant 0 : index
    %c0_69 = arith.constant 0 : index
    %162 = vector.load %arg18[%c0_68, %c0_69] : memref<1x128xf32, #tpu.memory_space<vmem>>, vector<1x128xf32>
    %163 = vector.broadcast %162 : vector<1x128xf32> to vector<16x128xf32>
    %164 = arith.addf %161, %163 : vector<16x128xf32>
    %165 = arith.addf %144, %164 : vector<16x128xf32>
    %c0_70 = arith.constant 0 : index
    %c0_71 = arith.constant 0 : index
    %166 = vector.load %arg19[%c0_70, %c0_71] : memref<1x128xf32, #tpu.memory_space<vmem>>, vector<1x128xf32>
    %c0_72 = arith.constant 0 : index
    %c0_73 = arith.constant 0 : index
    %167 = vector.load %arg20[%c0_72, %c0_73] : memref<1x128xf32, #tpu.memory_space<vmem>>, vector<1x128xf32>
    %cst_74 = arith.constant dense<0.000000e+00> : vector<16xf32>
    %168 = vector.multi_reduction <add>, %165, %cst_74 [1] : vector<16x128xf32> to vector<16xf32>
    %169 = vector.shape_cast %168 : vector<16xf32> to vector<16x1xf32>
    %cst_75 = arith.constant 1.280000e+02 : f32
    %170 = vector.broadcast %cst_75 : f32 to vector<16x1xf32>
    %171 = arith.divf %169, %170 : vector<16x1xf32>
    %172 = arith.mulf %165, %165 : vector<16x128xf32>
    %cst_76 = arith.constant dense<0.000000e+00> : vector<16xf32>
    %173 = vector.multi_reduction <add>, %172, %cst_76 [1] : vector<16x128xf32> to vector<16xf32>
    %174 = vector.shape_cast %173 : vector<16xf32> to vector<16x1xf32>
    %cst_77 = arith.constant 1.280000e+02 : f32
    %175 = vector.broadcast %cst_77 : f32 to vector<16x1xf32>
    %176 = arith.divf %174, %175 : vector<16x1xf32>
    %177 = arith.mulf %171, %171 : vector<16x1xf32>
    %178 = arith.subf %176, %177 : vector<16x1xf32>
    %179 = vector.broadcast %171 : vector<16x1xf32> to vector<16x128xf32>
    %180 = arith.subf %165, %179 : vector<16x128xf32>
    %cst_78 = arith.constant 9.99999996E-13 : f32
    %181 = vector.broadcast %cst_78 : f32 to vector<16x1xf32>
    %182 = arith.addf %178, %181 : vector<16x1xf32>
    %183 = math.rsqrt %182 : vector<16x1xf32>
    %184 = vector.broadcast %183 : vector<16x1xf32> to vector<16x128xf32>
    %185 = arith.mulf %180, %184 : vector<16x128xf32>
    %186 = vector.broadcast %166 : vector<1x128xf32> to vector<16x128xf32>
    %187 = arith.mulf %185, %186 : vector<16x128xf32>
    %188 = vector.broadcast %167 : vector<1x128xf32> to vector<16x128xf32>
    %189 = arith.addf %187, %188 : vector<16x128xf32>
    %c0_79 = arith.constant 0 : index
    %c0_80 = arith.constant 0 : index
    %c0_81 = arith.constant 0 : index
    %190 = vector.load %arg21[%c0_79, %c0_80, %c0_81] : memref<1x16x128xf32, #tpu.memory_space<vmem>>, vector<1x16x128xf32>
    %191 = vector.shape_cast %190 : vector<1x16x128xf32> to vector<16x128xf32>
    %192 = vector.shape_cast %189 : vector<16x128xf32> to vector<1x16x128xf32>
    tpu.vector_store %arg21[%c0_79, %c0_80, %c0_81], %192 {strides = array<i32>} : memref<1x16x128xf32, #tpu.memory_space<vmem>>, vector<1x16x128xf32>,
    return
  }
  func.func @transform_0(%arg0: i32) -> (i32, i32, i32) {
    %c0_i32 = arith.constant 0 : i32
    %c0_i32_0 = arith.constant 0 : i32
    %c0_i32_1 = arith.constant 0 : i32
    return %arg0, %c0_i32, %c0_i32_0 : i32, i32, i32
  }
  func.func @transform_1(%arg0: i32) -> (i32, i32, i32) {
    %c0_i32 = arith.constant 0 : i32
    %c0_i32_0 = arith.constant 0 : i32
    %c0_i32_1 = arith.constant 0 : i32
    return %arg0, %c0_i32, %c0_i32_0 : i32, i32, i32
  }
  func.func @transform_2(%arg0: i32) -> (i32, i32, i32) {
    %c0_i32 = arith.constant 0 : i32
    %c0_i32_0 = arith.constant 0 : i32
    %c0_i32_1 = arith.constant 0 : i32
    return %arg0, %c0_i32, %c0_i32_0 : i32, i32, i32
  }
  func.func @transform_3(%arg0: i32) -> (i32, i32, i32) {
    %c0_i32 = arith.constant 0 : i32
    %c0_i32_0 = arith.constant 0 : i32
    %c0_i32_1 = arith.constant 0 : i32
    return %arg0, %c0_i32, %c0_i32_0 : i32, i32, i32
  }
  func.func @transform_4(%arg0: i32) -> (i32, i32) {
    %c0_i32 = arith.constant 0 : i32
    %c0_i32_0 = arith.constant 0 : i32
    %c0_i32_1 = arith.constant 0 : i32
    return %c0_i32, %c0_i32_0 : i32, i32
  }
  func.func @transform_5(%arg0: i32) -> (i32, i32) {
    %c0_i32 = arith.constant 0 : i32
    %c0_i32_0 = arith.constant 0 : i32
    %c0_i32_1 = arith.constant 0 : i32
    return %c0_i32, %c0_i32_0 : i32, i32
  }
  func.func @transform_6(%arg0: i32) -> (i32, i32) {
    %c0_i32 = arith.constant 0 : i32
    %c0_i32_0 = arith.constant 0 : i32
    %c0_i32_1 = arith.constant 0 : i32
    return %c0_i32, %c0_i32_0 : i32, i32
  }
  func.func @transform_7(%arg0: i32) -> (i32, i32) {
    %c0_i32 = arith.constant 0 : i32
    %c0_i32_0 = arith.constant 0 : i32
    %c0_i32_1 = arith.constant 0 : i32
    return %c0_i32, %c0_i32_0 : i32, i32
  }
  func.func @transform_8(%arg0: i32) -> (i32, i32) {
    %c0_i32 = arith.constant 0 : i32
    %c0_i32_0 = arith.constant 0 : i32
    %c0_i32_1 = arith.constant 0 : i32
    return %c0_i32, %c0_i32_0 : i32, i32
  }
  func.func @transform_9(%arg0: i32) -> (i32, i32) {
    %c0_i32 = arith.constant 0 : i32
    %c0_i32_0 = arith.constant 0 : i32
    %c0_i32_1 = arith.constant 0 : i32
    return %c0_i32, %c0_i32_0 : i32, i32
  }
  func.func @transform_10(%arg0: i32) -> (i32, i32) {
    %c0_i32 = arith.constant 0 : i32
    %c0_i32_0 = arith.constant 0 : i32
    %c0_i32_1 = arith.constant 0 : i32
    return %c0_i32, %c0_i32_0 : i32, i32
  }
  func.func @transform_11(%arg0: i32) -> (i32, i32) {
    %c0_i32 = arith.constant 0 : i32
    %c0_i32_0 = arith.constant 0 : i32
    %c0_i32_1 = arith.constant 0 : i32
    return %c0_i32, %c0_i32_0 : i32, i32
  }
  func.func @transform_12(%arg0: i32) -> (i32, i32) {
    %c0_i32 = arith.constant 0 : i32
    %c0_i32_0 = arith.constant 0 : i32
    %c0_i32_1 = arith.constant 0 : i32
    return %c0_i32, %c0_i32_0 : i32, i32
  }
  func.func @transform_13(%arg0: i32) -> (i32, i32) {
    %c0_i32 = arith.constant 0 : i32
    %c0_i32_0 = arith.constant 0 : i32
    %c0_i32_1 = arith.constant 0 : i32
    return %c0_i32, %c0_i32_0 : i32, i32
  }
  func.func @transform_14(%arg0: i32) -> (i32, i32) {
    %c0_i32 = arith.constant 0 : i32
    %c0_i32_0 = arith.constant 0 : i32
    %c0_i32_1 = arith.constant 0 : i32
    return %c0_i32, %c0_i32_0 : i32, i32
  }
  func.func @transform_15(%arg0: i32) -> (i32, i32) {
    %c0_i32 = arith.constant 0 : i32
    %c0_i32_0 = arith.constant 0 : i32
    %c0_i32_1 = arith.constant 0 : i32
    return %c0_i32, %c0_i32_0 : i32, i32
  }
  func.func @transform_16(%arg0: i32) -> (i32, i32) {
    %c0_i32 = arith.constant 0 : i32
    %c0_i32_0 = arith.constant 0 : i32
    %c0_i32_1 = arith.constant 0 : i32
    return %c0_i32, %c0_i32_0 : i32, i32
  }
  func.func @transform_17(%arg0: i32) -> (i32, i32) {
    %c0_i32 = arith.constant 0 : i32
    %c0_i32_0 = arith.constant 0 : i32
    %c0_i32_1 = arith.constant 0 : i32
    return %c0_i32, %c0_i32_0 : i32, i32
  }
  func.func @transform_18(%arg0: i32) -> (i32, i32) {
    %c0_i32 = arith.constant 0 : i32
    %c0_i32_0 = arith.constant 0 : i32
    %c0_i32_1 = arith.constant 0 : i32
    return %c0_i32, %c0_i32_0 : i32, i32
  }
  func.func @transform_19(%arg0: i32) -> (i32, i32) {
    %c0_i32 = arith.constant 0 : i32
    %c0_i32_0 = arith.constant 0 : i32
    %c0_i32_1 = arith.constant 0 : i32
    return %c0_i32, %c0_i32_0 : i32, i32
  }
  func.func @transform_20(%arg0: i32) -> (i32, i32, i32) {
    %c0_i32 = arith.constant 0 : i32
    %c0_i32_0 = arith.constant 0 : i32
    %c0_i32_1 = arith.constant 0 : i32
    return %arg0, %c0_i32, %c0_i32_0 : i32, i32, i32
  }
}

</mosaic_0001>

<bundles_post_ra>
// kernel: tpu_custom_call.1
= control target key start
LH: loop header
LB: loop body
LE: loop exit
PB: predicated region body
PF: predicated region fallthrough
CT: control target
= control target key end

     0   :  { %s7645_s0 = inlined_call_operand.hbm [shape: f32[2,16,128], index: 0, kind: input, shape index: {}, may-alias: {0,20}]   ;;  %s7646_s1 = inlined_call_operand.hbm [shape: f32[2,16,128], index: 1, kind: input, shape index: {}]   ;;  %s7647_s2 = inlined_call_operand.hbm [shape: f32[2,1,16], index: 2, kind: input, shape index: {}]   ;;  %s7648_s3 = inlined_call_operand.hbm [shape: f32[2,1,16], index: 3, kind: input, shape index: {}]   ;;  %s7649_s4 = inlined_call_operand.hbm [shape: bf16[128,384], index: 4, kind: input, shape index: {}]   ;;  %s7650_s5 = inlined_call_operand.hbm [shape: f32[1,384], index: 5, kind: input, shape index: {}]   ;;  %s7651_s6 = inlined_call_operand.hbm [shape: f32[1,128], index: 6, kind: input, shape index: {}]   ;;  %s7652_s7 = inlined_call_operand.hbm [shape: f32[1,128], index: 7, kind: input, shape index: {}]   ;;  %s7653_s8 = inlined_call_operand.hbm [shape: bf16[128,128], index: 8, kind: input, shape index: {}]   ;;  %s7654_s9 = inlined_call_operand.hbm [shape: f32[1,128], index: 9, kind: input, shape index: {}]   ;;  %s7655_s10 = inlined_call_operand.hbm [shape: bf16[128,256], index: 10, kind: input, shape index: {}]   ;;  %s7656_s11 = inlined_call_operand.hbm [shape: f32[1,256], index: 11, kind: input, shape index: {}]   ;;  %s7657_s12 = inlined_call_operand.hbm [shape: f32[1,128], index: 12, kind: input, shape index: {}]   ;;  %s7658_s13 = inlined_call_operand.hbm [shape: f32[1,128], index: 13, kind: input, shape index: {}]   ;;  %s7659_s14 = inlined_call_operand.hbm [shape: bf16[128,512], index: 14, kind: input, shape index: {}]   ;;  %s7660_s15 = inlined_call_operand.hbm [shape: f32[1,512], index: 15, kind: input, shape index: {}]   ;;  %s7661_s16 = inlined_call_operand.hbm [shape: bf16[512,128], index: 16, kind: input, shape index: {}]   ;;  %s7662_s17 = inlined_call_operand.hbm [shape: f32[1,128], index: 17, kind: input, shape index: {}]   ;;  %s7663_s18 = inlined_call_operand.hbm [shape: f32[1,128], index: 18, kind: input, shape index: {}]   ;;  %s7664_s19 = inlined_call_operand.hbm [shape: f32[1,128], index: 19, kind: input, shape index: {}]   ;;  %s7665_s20 = inlined_call_operand.hbm [shape: f32[2,16,128], index: 20, kind: output, shape index: {}, may-alias: {0,20}]  }
   0x1   :  { %7709 = sst [smem:[#allocation54_spill]] %s7645_s0 }
   0x2   :  { %7710 = sst [smem:[#allocation55_spill]] %s7646_s1 }
   0x3   :  { %7711 = sst [smem:[#allocation56_spill]] %s7647_s2 }
   0x4   :  { %7712 = sst [smem:[#allocation57_spill]] %s7648_s3 }
   0x5   :  { %7713 = sst [smem:[#allocation58_spill]] %s7649_s4 }
   0x6   :  { %7714 = sst [smem:[#allocation59_spill]] %s7650_s5 }
   0x7   :  { %7715 = sst [smem:[#allocation60_spill]] %s7651_s6 }
   0x8   :  { %7716 = sst [smem:[#allocation61_spill]] %s7652_s7 }
   0x9   :  { %7717 = sst [smem:[#allocation62_spill]] %s7653_s8 }
   0xa   :  { %7718 = sst [smem:[#allocation63_spill]] %s7654_s9 }
   0xb   :  { %7719 = sst [smem:[#allocation64_spill]] %s7655_s10 }
   0xc   :  { %7720 = sst [smem:[#allocation65_spill]] %s7656_s11 }
   0xd   :  { %7721 = sst [smem:[#allocation66_spill]] %s7657_s12 }
   0xe   :  { %7722 = sst [smem:[#allocation67_spill]] %s7658_s13 }
   0xf   :  { %7723 = sst [smem:[#allocation68_spill]] %s7659_s14 }
  0x10   :  { %7724 = sst [smem:[#allocation69_spill]] %s7660_s15 }
  0x11   :  { %7725 = sst [smem:[#allocation70_spill]] %s7661_s16 }
  0x12   :  { %7726 = sst [smem:[#allocation71_spill]] %s7662_s17 }
  0x13   :  { %7727 = sst [smem:[#allocation72_spill]] %s7663_s18 }
  0x14   :  { %7728 = sst [smem:[#allocation73_spill]] %s7664_s19 }
  0x15   :  { %7729 = sst [smem:[#allocation74_spill]] %s7665_s20 }
  0x16   :  { %25 = vsyncpa [#allocation3], 0 }
  0x17   :  { %27 = vsyncpa [#allocation3 + $0x1], 0 }
  0x18   :  { %28 = vsyncpa [#allocation6], 0 }
  0x19   :  { %30 = vsyncpa [#allocation6 + $0x1], 0 }
  0x1a   :  { %31 = vsyncpa [#allocation9], 0 }
  0x1b   :  { %33 = vsyncpa [#allocation9 + $0x1], 0 }
  0x1c   :  { %34 = vsyncpa [#allocation12], 0 }
  0x1d   :  { %35 = vsyncpa [#allocation15], 0 }
  0x1e   :  { %36 = vsyncpa [#allocation18], 0 }
  0x1f   :  { %37 = vsyncpa [#allocation21], 0 }
  0x20   :  { %38 = vsyncpa [#allocation24], 0 }
  0x21   :  { %39 = vsyncpa [#allocation27], 0 }
  0x22   :  { %40 = vsyncpa [#allocation30], 0 }
  0x23   :  { %41 = vsyncpa [#allocation33], 0 }
  0x24   :  { %42 = vsyncpa [#allocation4], 0 }
  0x25   :  { %44 = vsyncpa [#allocation4 + $0x1], 0  ;;  %s6542_s1 = smov 0   ;;  %s6544_s22 = smov 0  }
  0x26   :  { %s6546_s23 = smov 0   ;;  %s6548_s24 = smov 0  }
  0x27 LB: > { %7730 = sst [smem:[#allocation48_spill]] %s6386_s1  ;;  %s6400_s2 = smov [#allocation10]   ;;  %s6398_s24 = sphi %s6548_s24, %s7805_s24   ;;  %s6394_s23 = sphi %s6546_s23, %s7807_s23   ;;  %s6390_s22 = sphi %s6544_s22, %s7809_s22   ;;  %s6386_s1 = sphi %s6542_s1, %s7808_s1  }
  0x28   : > { %7731 = sst [smem:[#allocation49_spill]] %s6394_s23  ;;  %s533_s25 = sshll.u32 %s6400_s2, 4  ;;  %s6568_s25 = int_to_ptr.vmem [resolvable:$true] %s533_s25 }
  0x29   : > { %s6563_s3 = sadd.s32 4294967295, %s6398_s24   ;;  %p4896_p0 = scmp.ge.s32.totalorder %s6398_s24, 1 }
  0x2a   : > { %p7679_p1 = scmp.eq.s32.totalorder %s6563_s3, 0  ;;  %p521_p2 = scmp.lt.s32.totalorder %s6398_s24, 3 }
  0x2b   : > { %s6401_s27 = smov [#allocation11]   ;;  %s6402_s29 = smov [#allocation14]  }
  0x2c   : > { %p6570_p3 = pnand %p4896_p0, %p521_p2  ;;  %s547_s28 = sshll.u32 %s6401_s27, 4  ;;  %s6583_s28 = int_to_ptr.vmem [resolvable:$true] %s547_s28 }
  0x2d   : > { %s569_s30 = sshll.u32 %s6402_s29, 4  ;;  %s7735_s2 = sld [smem:[#allocation58_spill]]  ;;  %s6585_s30 = int_to_ptr.vmem [resolvable:$true] %s569_s30 }
  0x2e   : > { %s7732_s26 = scalar_select %p6570_p3, 1, 0 }
  0x2f   : > { %p5350_p5 = pneg %p6570_p3 }
  0x30   : > { %7733 = sst [smem:[#allocation50_spill]] %s7732_s26 }
  0x31   : > { %p6579_p6 = pnand %p5350_p5, %p7679_p1 }
  0x33   : > { %s7734_s4 = scalar_select %p6579_p6, 1, 0 }
  0x34   : > { %s5720_s20 = scalar_lea.hbm %s7735_s2, 3072  ;;  %p6595_p8 = pneg %p6579_p6 }
  0x35   : > { %p5721_p7 = scmp.ne.s32.totalorder %s7735_s2, %s5720_s20  ;;  %p5727_p11 = scmp.lt.u32.totalorder %s5720_s20, %s7735_s2 }
  0x36   : > { %s7736_s27 = scalar_select %p6595_p8, 1, 0 }
  0x37   : > { %p5723_p9 = pnand %p6595_p8, %p5721_p7 }
  0x39   : > { %p5724_p10 = pneg %p5723_p9 }
  0x3b   : > { %p5729_p12 = pnand %p5727_p11, %p5724_p10 }
  0x3d   : > { %5732 = shalt.err (!%p5729_p12)
}
  0x3e   : > { %s5733_s19 = scalar_lea.vmem %s6568_s25, 3072  ;;  %p5741_p5 = scmp.lt.s32.totalorder %s6568_s25, %s6568_s25 }
  0x3f   : > { %p5734_p13 = scmp.ne.s32.totalorder %s6568_s25, %s5733_s19  ;;  %p5742_p4 = scmp.lt.s32.totalorder %s5733_s19, %s5733_s19 }
  0x41   : > { %p5736_p0 = pnand %p5734_p13, %p6595_p8  ;;  %p5743_p7 = por %p5742_p4, %p5741_p5 }
  0x43   : > { %p5737_p2 = pneg %p5736_p0 }
  0x45   : > { %p5744_p9 = pnand %p5743_p7, %p5737_p2 }
  0x47   : > { %5747 = shalt.err (!%p5744_p9)
}
  0x48   : > { %s6403_s26 = smov 192   ;;  %s6404_s18 = smov 12  }
  0x49   : > { %5353 = dma.hbm_to_vmem [thread:$0]  (!%p6579_p6), %s7735_s2, 3072, %s6568_s25, [#allocation9], %s6403_s26, %s6403_s26, %s6404_s18  }
  0x4a   : > { %s7737_s5 = sld [smem:[#allocation59_spill]] }
  0x50   : > { %s5748_s16 = scalar_lea.hbm %s7737_s5, 48 }
  0x51   : > { %p5749_p4 = scmp.ne.s32.totalorder %s7737_s5, %s5748_s16  ;;  %p5755_p12 = scmp.lt.u32.totalorder %s5748_s16, %s7737_s5 }
  0x53   : > { %p5751_p10 = pnand %p5749_p4, %p6595_p8 }
  0x55   : > { %p5752_p11 = pneg %p5751_p10 }
  0x57   : > { %p5757_p13 = pnand %p5755_p12, %p5752_p11 }
  0x59   : > { %5760 = shalt.err (!%p5757_p13)
}
  0x5a   : > { %s5761_s25 = scalar_lea.vmem %s6583_s28, 48  ;;  %s5768_s12 = scalar_lea.vmem %s6583_s28, 64 }
  0x5b   : > { %p5762_p0 = scmp.ne.s32.totalorder %s6583_s28, %s5761_s25  ;;  %p5769_p7 = scmp.lt.s32.totalorder %s6583_s28, %s6583_s28 }
  0x5c   : > { %p5770_p9 = scmp.lt.s32.totalorder %s5768_s12, %s5761_s25 }
  0x5d   : > { %p5764_p2 = pnand %p5762_p0, %p6595_p8 }
  0x5e   : > { %p5771_p4 = por %p5770_p9, %p5769_p7 }
  0x5f   : > { %p5765_p5 = pneg %p5764_p2 }
  0x61   : > { %p5772_p10 = pnand %p5771_p4, %p5765_p5 }
  0x63   : > { %5775 = shalt.err (!%p5772_p10)
}
  0x64   : > { %5356 = dma.hbm_to_vmem [thread:$0]  (!%p6579_p6), %s7737_s5, 48, %s6583_s28, [#allocation12]  }
  0x65   : > { %s7738_s7 = sld [smem:[#allocation61_spill]] }
  0x6b   : > { %s5776_s18 = scalar_lea.hbm %s7738_s7, 16 }
  0x6c   : > { %p5777_p11 = scmp.ne.s32.totalorder %s7738_s7, %s5776_s18  ;;  %p5783_p0 = scmp.lt.u32.totalorder %s5776_s18, %s7738_s7 }
  0x6e   : > { %p5779_p12 = pnand %p5777_p11, %p6595_p8 }
  0x70   : > { %p5780_p13 = pneg %p5779_p12 }
  0x72   : > { %p5785_p2 = pnand %p5783_p0, %p5780_p13 }
  0x74   : > { %5788 = shalt.err (!%p5785_p2)
}
  0x75   : > { %s5789_s28 = scalar_lea.vmem %s6585_s30, 16  ;;  %s5796_s19 = scalar_lea.vmem %s6585_s30, 32 }
  0x76   : > { %p5790_p5 = scmp.ne.s32.totalorder %s6585_s30, %s5789_s28  ;;  %p5797_p4 = scmp.lt.s32.totalorder %s6585_s30, %s6585_s30 }
  0x77   : > { %p5798_p10 = scmp.lt.s32.totalorder %s5796_s19, %s5789_s28 }
  0x78   : > { %p5792_p7 = pnand %p5790_p5, %p6595_p8 }
  0x79   : > { %p5799_p11 = por %p5798_p10, %p5797_p4 }
  0x7a   : > { %p5793_p9 = pneg %p5792_p7 }
  0x7c   : > { %p5800_p12 = pnand %p5799_p11, %p5793_p9 }
  0x7e   : > { %5803 = shalt.err (!%p5800_p12)
}
  0x7f   : > { %5362 = dma.hbm_to_vmem [thread:$0]  (!%p6579_p6), %s7738_s7, 16, %s6585_s30, [#allocation15]  }
  0x80   : > { %s6405_s10 = smov [#allocation17]   ;;  %s6406_s16 = smov [#allocation20]  }
  0x81   : > { %s593_s14 = sshll.u32 %s6405_s10, 4  ;;  %s617_s26 = sshll.u32 %s6406_s16, 4  ;;  %s594_s14 = int_to_ptr.vmem [resolvable:$true] %s593_s14  ;;  %s618_s26 = int_to_ptr.vmem [resolvable:$true] %s617_s26 }
  0x82   : > { %s7739_s9 = sld [smem:[#allocation63_spill]] }
  0x88   : > { %s5804_s0 = scalar_lea.hbm %s7739_s9, 16 }
  0x89   : > { %p5805_p13 = scmp.ne.s32.totalorder %s7739_s9, %s5804_s0  ;;  %p5811_p5 = scmp.lt.u32.totalorder %s5804_s0, %s7739_s9 }
  0x8b   : > { %p5807_p0 = pnand %p5805_p13, %p6595_p8 }
  0x8d   : > { %p5808_p2 = pneg %p5807_p0 }
  0x8f   : > { %p5813_p7 = pnand %p5811_p5, %p5808_p2 }
  0x91   : > { %5816 = shalt.err (!%p5813_p7)
}
  0x92   : > { %s5817_s30 = scalar_lea.vmem %s594_s14, 16  ;;  %s5824_s25 = scalar_lea.vmem %s594_s14, 32 }
  0x93   : > { %p5818_p9 = scmp.ne.s32.totalorder %s594_s14, %s5817_s30  ;;  %p5825_p11 = scmp.lt.s32.totalorder %s594_s14, %s594_s14 }
  0x94   : > { %p5826_p12 = scmp.lt.s32.totalorder %s5824_s25, %s5817_s30 }
  0x95   : > { %p5820_p4 = pnand %p5818_p9, %p6595_p8 }
  0x96   : > { %p5827_p1 = por %p5826_p12, %p5825_p11 }
  0x97   : > { %p5821_p10 = pneg %p5820_p4 }
  0x99   : > { %p5828_p3 = pnand %p5827_p1, %p5821_p10 }
  0x9b   : > { %5831 = shalt.err (!%p5828_p3)
}
  0x9c   : > { %5368 = dma.hbm_to_vmem [thread:$0]  (!%p6579_p6), %s7739_s9, 16, %s594_s14, [#allocation18]  }
  0x9d   : > { %s7740_s11 = sld [smem:[#allocation65_spill]] }
  0xa3   : > { %s5832_s20 = scalar_lea.hbm %s7740_s11, 32 }
  0xa4   : > { %p5833_p13 = scmp.ne.s32.totalorder %s7740_s11, %s5832_s20  ;;  %p5839_p3 = scmp.lt.u32.totalorder %s5832_s20, %s7740_s11 }
  0xa6   : > { %p5835_p0 = pnand %p5833_p13, %p6595_p8 }
  0xa8   : > { %p5836_p1 = pneg %p5835_p0 }
  0xaa   : > { %p5841_p2 = pnand %p5839_p3, %p5836_p1 }
  0xac   : > { %5844 = shalt.err (!%p5841_p2)
}
  0xad   : > { %s5845_s19 = scalar_lea.vmem %s618_s26, 32  ;;  %p5853_p4 = scmp.lt.s32.totalorder %s618_s26, %s618_s26 }
  0xae   : > { %p5846_p5 = scmp.ne.s32.totalorder %s618_s26, %s5845_s19  ;;  %p5854_p10 = scmp.lt.s32.totalorder %s5845_s19, %s5845_s19 }
  0xb0   : > { %p5848_p7 = pnand %p5846_p5, %p6595_p8  ;;  %p5855_p11 = por %p5854_p10, %p5853_p4 }
  0xb2   : > { %p5849_p9 = pneg %p5848_p7 }
  0xb4   : > { %p5856_p12 = pnand %p5855_p11, %p5849_p9 }
  0xb6   : > { %5859 = shalt.err (!%p5856_p12)
}
  0xb7   : > { %5374 = dma.hbm_to_vmem [thread:$0]  (!%p6579_p6), %s7740_s11, 32, %s618_s26, [#allocation21]  }
  0xb8   : > { %s6407_s25 = smov [#allocation23]   ;;  %s6408_s10 = smov [#allocation26]  }
  0xb9   : > { %s639_s12 = sshll.u32 %s6407_s25, 4  ;;  %s663_s16 = sshll.u32 %s6408_s10, 4  ;;  %s640_s12 = int_to_ptr.vmem [resolvable:$true] %s639_s12  ;;  %s664_s16 = int_to_ptr.vmem [resolvable:$true] %s663_s16 }
  0xba   : > { %s7741_s13 = sld [smem:[#allocation67_spill]] }
  0xc0   : > { %s5860_s0 = scalar_lea.hbm %s7741_s13, 16 }
  0xc1   : > { %p5861_p13 = scmp.ne.s32.totalorder %s7741_s13, %s5860_s0  ;;  %p5867_p3 = scmp.lt.u32.totalorder %s5860_s0, %s7741_s13 }
  0xc3   : > { %p5863_p0 = pnand %p5861_p13, %p6595_p8 }
  0xc5   : > { %p5864_p1 = pneg %p5863_p0 }
  0xc7   : > { %p5869_p2 = pnand %p5867_p3, %p5864_p1 }
  0xc9   : > { %5872 = shalt.err (!%p5869_p2)
}
  0xca   : > { %s5873_s26 = scalar_lea.vmem %s640_s12, 16  ;;  %s5880_s14 = scalar_lea.vmem %s640_s12, 32 }
  0xcb   : > { %p5874_p5 = scmp.ne.s32.totalorder %s640_s12, %s5873_s26  ;;  %p5881_p4 = scmp.lt.s32.totalorder %s640_s12, %s640_s12 }
  0xcc   : > { %p5882_p10 = scmp.lt.s32.totalorder %s5880_s14, %s5873_s26 }
  0xcd   : > { %p5876_p7 = pnand %p5874_p5, %p6595_p8 }
  0xce   : > { %p5883_p11 = por %p5882_p10, %p5881_p4 }
  0xcf   : > { %p5877_p9 = pneg %p5876_p7 }
  0xd1   : > { %p5884_p12 = pnand %p5883_p11, %p5877_p9 }
  0xd3   : > { %5887 = shalt.err (!%p5884_p12)
}
  0xd4   : > { %5380 = dma.hbm_to_vmem [thread:$0]  (!%p6579_p6), %s7741_s13, 16, %s640_s12, [#allocation24]  }
  0xd5   : > { %s7742_s15 = sld [smem:[#allocation69_spill]] }
  0xdb   : > { %s5888_s20 = scalar_lea.hbm %s7742_s15, 64 }
  0xdc   : > { %p5889_p13 = scmp.ne.s32.totalorder %s7742_s15, %s5888_s20  ;;  %p5895_p3 = scmp.lt.u32.totalorder %s5888_s20, %s7742_s15 }
  0xde   : > { %p5891_p0 = pnand %p5889_p13, %p6595_p8 }
  0xe0   : > { %p5892_p1 = pneg %p5891_p0 }
  0xe2   : > { %p5897_p2 = pnand %p5895_p3, %p5892_p1 }
  0xe4   : > { %5900 = shalt.err (!%p5897_p2)
}
  0xe5   : > { %s5901_s19 = scalar_lea.vmem %s664_s16, 64  ;;  %p5909_p4 = scmp.lt.s32.totalorder %s664_s16, %s664_s16 }
  0xe6   : > { %p5902_p5 = scmp.ne.s32.totalorder %s664_s16, %s5901_s19  ;;  %p5910_p10 = scmp.lt.s32.totalorder %s5901_s19, %s5901_s19 }
  0xe8   : > { %p5904_p7 = pnand %p5902_p5, %p6595_p8  ;;  %p5911_p11 = por %p5910_p10, %p5909_p4 }
  0xea   : > { %p5905_p9 = pneg %p5904_p7 }
  0xec   : > { %p5912_p12 = pnand %p5911_p11, %p5905_p9 }
  0xee   : > { %5915 = shalt.err (!%p5912_p12)
}
  0xef   : > { %5386 = dma.hbm_to_vmem [thread:$0]  (!%p6579_p6), %s7742_s15, 64, %s664_s16, [#allocation27]  }
  0xf0   : > { %s6409_s14 = smov [#allocation29]   ;;  %s7743_s17 = sld [smem:[#allocation71_spill]] }
  0xf1   : > { %s687_s30 = sshll.u32 %s6409_s14, 4  ;;  %s688_s30 = int_to_ptr.vmem [resolvable:$true] %s687_s30 }
  0xf6   : > { %s5916_s18 = scalar_lea.hbm %s7743_s17, 16 }
  0xf7   : > { %p5917_p13 = scmp.ne.s32.totalorder %s7743_s17, %s5916_s18  ;;  %p5923_p3 = scmp.lt.u32.totalorder %s5916_s18, %s7743_s17 }
  0xf9   : > { %p5919_p0 = pnand %p5917_p13, %p6595_p8 }
  0xfb   : > { %p5920_p1 = pneg %p5919_p0 }
  0xfd   : > { %p5925_p2 = pnand %p5923_p3, %p5920_p1 }
  0xff   : > { %5928 = shalt.err (!%p5925_p2)
}
 0x100   : > { %s5929_s16 = scalar_lea.vmem %s688_s30, 16  ;;  %s5936_s28 = scalar_lea.vmem %s688_s30, 32 }
 0x101   : > { %p5930_p5 = scmp.ne.s32.totalorder %s688_s30, %s5929_s16  ;;  %p5937_p4 = scmp.lt.s32.totalorder %s688_s30, %s688_s30 }
 0x102   : > { %p5938_p10 = scmp.lt.s32.totalorder %s5936_s28, %s5929_s16 }
 0x103   : > { %p5932_p7 = pnand %p5930_p5, %p6595_p8 }
 0x104   : > { %p5939_p11 = por %p5938_p10, %p5937_p4 }
 0x105   : > { %p5933_p9 = pneg %p5932_p7 }
 0x107   : > { %p5940_p12 = pnand %p5939_p11, %p5933_p9 }
 0x109   : > { %5943 = shalt.err (!%p5940_p12)
}
 0x10a   : > { %5392 = dma.hbm_to_vmem [thread:$0]  (!%p6579_p6), %s7743_s17, 16, %s688_s30, [#allocation30]  }
 0x10b   : > { %s4895_s26 = sadd.s32 4294967294, %s6398_s24   ;;  %s6756_s14 = sadd.s32 1, %s6398_s24  }
 0x10c   : > { %7744 = sst [smem:[#allocation51_spill]] %s6756_s14  ;;  %s54_s25 = ssub.s32 %s6398_s24, %s6756_s14 }
 0x10d   : > { %s57_s10 = sadd.s32 1, %s6394_s23  ;;  %p55_p13 = scmp.eq.s32.totalorder %s54_s25, 0 }
 0x10e   : > { %p64_p0 = scmp.ne.s32.totalorder %s6394_s23, %s6390_s22  ;;  %p65_p1 = scmp.eq.s32.totalorder %s6398_s24, 0 }
 0x10f   : > { %p70_p3 = scmp.ne.s32.totalorder %s6390_s22, %s6386_s1  ;;  %p7746_p5 = scmp.eq.s32.totalorder %s6563_s3, 0 }
 0x110   : > { %s6767_s18 = scalar_select %p55_p13, %s6394_s23, %s57_s10  }
 0x111   : > { %p66_p2 = por %p65_p1, %p64_p0  ;;  %p6771_p7 = por %p7746_p5, %p70_p3 }
 0x112   : > { %7745 = sst [smem:[#allocation52_spill]] %s6767_s18  ;;  %p508_p9 = scmp.eq.s32.totalorder %s6563_s3, 1 }
 0x113   : > { %s7747_s30 = scalar_select %p6771_p7, 1, 0 }
 0x114   : > { %p514_p4 = scmp.eq.s32.totalorder %s4895_s26, 1  ;;  %p6776_p10 = por %p508_p9, %p64_p0 }
 0x115   : > { %p5432_p12 = scmp.lt.s32.totalorder %s6398_s24, 2  ;;  %s6786_s21 = sand.u32 1, %s6394_s23  }
 0x116   : > { %s7748_s20 = scalar_select %p6776_p10, 1, 0 }
 0x117   : > { %p6780_p11 = por %p514_p4, %p70_p3  ;;  %s7682_s29 = sshll.u32 %s6786_s21, 4 }
 0x118   : > { %s7683_s16 = sshll.u32 %s6398_s24, 8  ;;  %p6790_p13 = pnand %p5432_p12, %p66_p2 }
 0x119   : > { %s7749_s0 = scalar_select %p6780_p11, 1, 0 }
 0x11a   : > { %s7751_s28 = scalar_select %p6790_p13, 1, 0 }
 0x11b   : > { %7750 = sst [smem:[#allocation53_spill]] %s7749_s0  ;;  %s7685_s19 = sand.u32 1, %s6398_s24  }
 0x11c   : > { %s7752_s25 = sld [smem:[#allocation55_spill]]  ;;  %s745_s2 = scalar_lea.vmem [#allocation5], %s7682_s29 }
 0x11d   : > { %s752_s5 = sshll.u32 %s745_s2, 4  ;;  %s6410_s7 = smov [#allocation13]   ;;  %s6804_s5 = int_to_ptr.vmem [resolvable:$true] %s752_s5 }
 0x11e   : > { %s6806_s9 = sshll.u32 %s6410_s7, 4  ;;  %s6810_s11 = scalar_lea.sflag [#allocation6], %s7685_s19  ;;  %s559_s9 = int_to_ptr.vmem [resolvable:$true] %s6806_s9 }
 0x11f   : > { %p6816_p1 = pneg %p6790_p13 }
 0x121   : > { %s7753_s12 = scalar_select %p6816_p1, 1, 0 }
 0x122   : > { %s6800_s10 = scalar_lea.hbm %s7752_s25, %s7683_s16  ;;  %s5949_s29 = scalar_lea.hbm %s7752_s25, 512 }
 0x123   : > { %s5944_s13 = scalar_lea.hbm %s6800_s10, 256  ;;  %p5950_p5 = scmp.lt.u32.totalorder %s6800_s10, %s7752_s25 }
 0x124   : > { %p5945_p0 = scmp.ne.s32.totalorder %s6800_s10, %s5944_s13  ;;  %p5951_p9 = scmp.lt.u32.totalorder %s5949_s29, %s5944_s13 }
 0x125   : > { %p5953_p12 = scmp.lt.u32.totalorder %s5944_s13, %s6800_s10 }
 0x126   : > { %p5947_p3 = pnand %p6816_p1, %p5945_p0  ;;  %p5952_p4 = por %p5951_p9, %p5950_p5 }
 0x128   : > { %p5948_p2 = pneg %p5947_p3  ;;  %p5954_p11 = por %p5953_p12, %p5952_p4 }
 0x12a   : > { %p5955_p10 = pnand %p5954_p11, %p5948_p2 }
 0x12c   : > { %5958 = shalt.err (!%p5955_p10)
}
 0x12d   : > { %s5959_s19 = scalar_lea.vmem %s6804_s5, 256  ;;  %s6411_s2 = smov [#allocation5]  }
 0x12e   : > { %p5960_p0 = scmp.ne.s32.totalorder %s6804_s5, %s5959_s19  ;;  %s5964_s26 = sshll.u32 %s6411_s2, 4  ;;  %s5965_s26 = int_to_ptr.vmem [resolvable:$false] %s5964_s26 }
 0x12f   : > { %s5966_s16 = scalar_lea.vmem %s5965_s26, 512  ;;  %p5967_p6 = scmp.lt.s32.totalorder %s6804_s5, %s5965_s26 }
 0x130   : > { %p5962_p3 = pnand %p5960_p0, %p6816_p1  ;;  %p5968_p8 = scmp.lt.s32.totalorder %s5966_s16, %s5959_s19 }
 0x132   : > { %p5963_p7 = pneg %p5962_p3  ;;  %p5969_p5 = por %p5968_p8, %p5967_p6 }
 0x134   : > { %p5970_p9 = pnand %p5969_p5, %p5963_p7 }
 0x136   : > { %5973 = shalt.err (!%p5970_p9)
}
 0x137   : > { %s7694_s13 = smov 128   ;;  %s7698_s29 = smov 8  }
 0x138   : > { %5405 = dma.hbm_to_vmem [thread:$0]  (!%p6790_p13), %s6800_s10, 256, %s6804_s5, %s6810_s11, %s7694_s13, %s7694_s13, %s7698_s29  }
 0x139   : > { %s7754_s6 = sld [smem:[#allocation60_spill]]  ;;  %p7755_p8 = scmp.ne.s32.totalorder %s7736_s27, 0 }
 0x13f   : > { %s5974_s19 = scalar_lea.hbm %s7754_s6, 16 }
 0x140   : > { %p5975_p6 = scmp.ne.s32.totalorder %s7754_s6, %s5974_s19  ;;  %p5981_p11 = scmp.lt.u32.totalorder %s5974_s19, %s7754_s6 }
 0x142   : > { %p5977_p7 = pnand %p5975_p6, %p7755_p8 }
 0x144   : > { %p5978_p10 = pneg %p5977_p7 }
 0x146   : > { %p5983_p2 = pnand %p5981_p11, %p5978_p10 }
 0x148   : > { %5986 = shalt.err (!%p5983_p2)
}
 0x149   : > { %s5987_s25 = scalar_lea.vmem %s559_s9, 16  ;;  %s5994_s5 = scalar_lea.vmem %s559_s9, 32 }
 0x14a   : > { %p5988_p4 = scmp.ne.s32.totalorder %s559_s9, %s5987_s25  ;;  %p5995_p3 = scmp.lt.s32.totalorder %s559_s9, %s559_s9 }
 0x14b   : > { %p5996_p5 = scmp.lt.s32.totalorder %s5994_s5, %s5987_s25 }
 0x14c   : > { %p5990_p12 = pnand %p5988_p4, %p7755_p8 }
 0x14d   : > { %p5997_p9 = por %p5996_p5, %p5995_p3 }
 0x14e   : > { %p5991_p0 = pneg %p5990_p12 }
 0x150   : > { %p5998_p13 = pnand %p5997_p9, %p5991_p0 }
 0x152   : > { %6001 = shalt.err (!%p5998_p13)
}
 0x153   : > { %p7756_p6 = scmp.ne.s32.totalorder %s7734_s4, 0  ;;  %s6414_s15 = smov [#allocation16]  }
 0x154   : > { %s579_s17 = sshll.u32 %s6414_s15, 4  ;;  %s7757_s8 = sld [smem:[#allocation62_spill]]  ;;  %s580_s17 = int_to_ptr.vmem [resolvable:$true] %s579_s17 }
 0x155   : > { %5359 = dma.hbm_to_vmem [thread:$0]  (!%p7756_p6), %s7754_s6, 16, %s559_s9, [#allocation12]  }
 0x15a   : > { %s6002_s26 = scalar_lea.hbm %s7757_s8, 1024 }
 0x15b   : > { %p6003_p7 = scmp.ne.s32.totalorder %s7757_s8, %s6002_s26  ;;  %p6009_p11 = scmp.lt.u32.totalorder %s6002_s26, %s7757_s8 }
 0x15d   : > { %p6005_p13 = pnand %p6003_p7, %p7755_p8 }
 0x15f   : > { %p6006_p10 = pneg %p6005_p13 }
 0x161   : > { %p6011_p2 = pnand %p6009_p11, %p6006_p10 }
 0x163   : > { %6014 = shalt.err (!%p6011_p2)
}
 0x164   : > { %s6015_s9 = scalar_lea.vmem %s580_s17, 1024  ;;  %p6023_p3 = scmp.lt.s32.totalorder %s580_s17, %s580_s17 }
 0x165   : > { %p6016_p4 = scmp.ne.s32.totalorder %s580_s17, %s6015_s9  ;;  %p6024_p5 = scmp.lt.s32.totalorder %s6015_s9, %s6015_s9 }
 0x167   : > { %p6018_p12 = pnand %p6016_p4, %p7755_p8  ;;  %p6025_p9 = por %p6024_p5, %p6023_p3 }
 0x169   : > { %p6019_p0 = pneg %p6018_p12 }
 0x16b   : > { %p6026_p1 = pnand %p6025_p9, %p6019_p0 }
 0x16d   : > { %6029 = shalt.err (!%p6026_p1)
}
 0x16e   : > { %s7700_s13 = smov 64   ;;  %s7701_s10 = smov 4  }
 0x16f   : > { %5365 = dma.hbm_to_vmem [thread:$0]  (!%p7756_p6), %s7757_s8, 1024, %s580_s17, [#allocation15], %s7700_s13, %s7700_s13, %s7701_s10  }
 0x170   : > { %s6417_s2 = smov [#allocation19]   ;;  %s6418_s26 = smov [#allocation22]  }
 0x171   : > { %s603_s19 = sshll.u32 %s6417_s2, 4  ;;  %s628_s16 = sshll.u32 %s6418_s26, 4  ;;  %s604_s19 = int_to_ptr.vmem [resolvable:$true] %s603_s19  ;;  %s6883_s16 = int_to_ptr.vmem [resolvable:$true] %s628_s16 }
 0x172   : > { %s7758_s9 = sld [smem:[#allocation64_spill]] }
 0x178   : > { %s6030_s29 = scalar_lea.hbm %s7758_s9, 2048 }
 0x179   : > { %p6031_p1 = scmp.ne.s32.totalorder %s7758_s9, %s6030_s29  ;;  %p6037_p10 = scmp.lt.u32.totalorder %s6030_s29, %s7758_s9 }
 0x17b   : > { %p6033_p7 = pnand %p6031_p1, %p7755_p8 }
 0x17d   : > { %p6034_p13 = pneg %p6033_p7 }
 0x17f   : > { %p6039_p11 = pnand %p6037_p10, %p6034_p13 }
 0x181   : > { %6042 = shalt.err (!%p6039_p11)
}
 0x182   : > { %s6043_s15 = scalar_lea.vmem %s604_s19, 2048  ;;  %p6051_p0 = scmp.lt.s32.totalorder %s604_s19, %s604_s19 }
 0x183   : > { %p6044_p2 = scmp.ne.s32.totalorder %s604_s19, %s6043_s15  ;;  %p6052_p3 = scmp.lt.s32.totalorder %s6043_s15, %s6043_s15 }
 0x185   : > { %p6046_p4 = pnand %p6044_p2, %p7755_p8  ;;  %p6053_p5 = por %p6052_p3, %p6051_p0 }
 0x187   : > { %p6047_p12 = pneg %p6046_p4 }
 0x189   : > { %p6054_p9 = pnand %p6053_p5, %p6047_p12 }
 0x18b   : > { %6057 = shalt.err (!%p6054_p9)
}
 0x18c   : > { %s7759_s6 = smov 8   ;;  %s7760_s18 = smov 128  }
 0x18d   : > { %5371 = dma.hbm_to_vmem [thread:$0]  (!%p7756_p6), %s7758_s9, 2048, %s604_s19, [#allocation18], %s7760_s18, %s7760_s18, %s7759_s6  }
 0x18e   : > { %s7761_s5 = sld [smem:[#allocation66_spill]] }
 0x194   : > { %s6058_s7 = scalar_lea.hbm %s7761_s5, 16 }
 0x195   : > { %p6059_p1 = scmp.ne.s32.totalorder %s7761_s5, %s6058_s7  ;;  %p6065_p10 = scmp.lt.u32.totalorder %s6058_s7, %s7761_s5 }
 0x197   : > { %p6061_p7 = pnand %p6059_p1, %p7755_p8 }
 0x199   : > { %p6062_p13 = pneg %p6061_p7 }
 0x19b   : > { %p6067_p11 = pnand %p6065_p10, %p6062_p13 }
 0x19d   : > { %6070 = shalt.err (!%p6067_p11)
}
 0x19e   : > { %s6071_s19 = scalar_lea.vmem %s6883_s16, 16  ;;  %s6078_s13 = scalar_lea.vmem %s6883_s16, 32 }
 0x19f   : > { %p6072_p2 = scmp.ne.s32.totalorder %s6883_s16, %s6071_s19  ;;  %p6079_p0 = scmp.lt.s32.totalorder %s6883_s16, %s6883_s16 }
 0x1a0   : > { %p6080_p3 = scmp.lt.s32.totalorder %s6078_s13, %s6071_s19 }
 0x1a1   : > { %p6074_p4 = pnand %p6072_p2, %p7755_p8 }
 0x1a2   : > { %p6081_p5 = por %p6080_p3, %p6079_p0 }
 0x1a3   : > { %p6075_p12 = pneg %p6074_p4 }
 0x1a5   : > { %p6082_p9 = pnand %p6081_p5, %p6075_p12 }
 0x1a7   : > { %6085 = shalt.err (!%p6082_p9)
}
 0x1a8   : > { %5377 = dma.hbm_to_vmem [thread:$0]  (!%p7756_p6), %s7761_s5, 16, %s6883_s16, [#allocation21]  }
 0x1a9   : > { %s6419_s29 = smov [#allocation25]   ;;  %s7762_s17 = sld [smem:[#allocation68_spill]] }
 0x1aa   : > { %s649_s26 = sshll.u32 %s6419_s29, 4  ;;  %s650_s26 = int_to_ptr.vmem [resolvable:$true] %s649_s26 }
 0x1af   : > { %s6086_s15 = scalar_lea.hbm %s7762_s17, 4096 }
 0x1b0   : > { %p6087_p1 = scmp.ne.s32.totalorder %s7762_s17, %s6086_s15  ;;  %p6093_p10 = scmp.lt.u32.totalorder %s6086_s15, %s7762_s17 }
 0x1b2   : > { %p6089_p7 = pnand %p6087_p1, %p7755_p8 }
 0x1b4   : > { %p6090_p13 = pneg %p6089_p7 }
 0x1b6   : > { %p6095_p11 = pnand %p6093_p10, %p6090_p13 }
 0x1b8   : > { %6098 = shalt.err (!%p6095_p11)
}
 0x1b9   : > { %s6099_s16 = scalar_lea.vmem %s650_s26, 4096  ;;  %p6107_p0 = scmp.lt.s32.totalorder %s650_s26, %s650_s26 }
 0x1ba   : > { %p6100_p2 = scmp.ne.s32.totalorder %s650_s26, %s6099_s16  ;;  %p6108_p3 = scmp.lt.s32.totalorder %s6099_s16, %s6099_s16 }
 0x1bc   : > { %p6102_p4 = pnand %p6100_p2, %p7755_p8  ;;  %p6109_p5 = por %p6108_p3, %p6107_p0 }
 0x1be   : > { %p6103_p12 = pneg %p6102_p4 }
 0x1c0   : > { %p6110_p9 = pnand %p6109_p5, %p6103_p12 }
 0x1c2   : > { %6113 = shalt.err (!%p6110_p9)
}
 0x1c3   : > { %s6420_s8 = smov 256   ;;  %s6421_s10 = smov 16  }
 0x1c4   : > { %5383 = dma.hbm_to_vmem [thread:$0]  (!%p7756_p6), %s7762_s17, 4096, %s650_s26, [#allocation24], %s6420_s8, %s6420_s8, %s6421_s10  }
 0x1c5   : > { %s6422_s29 = smov [#allocation28]   ;;  %s6423_s7 = smov [#allocation31]  }
 0x1c6   : > { %s673_s25 = sshll.u32 %s6422_s29, 4  ;;  %s698_s15 = sshll.u32 %s6423_s7, 4  ;;  %s674_s25 = int_to_ptr.vmem [resolvable:$true] %s673_s25  ;;  %s699_s15 = int_to_ptr.vmem [resolvable:$true] %s698_s15 }
 0x1c7   : > { %s7763_s16 = sld [smem:[#allocation70_spill]] }
 0x1cd   : > { %s6114_s5 = scalar_lea.hbm %s7763_s16, 4096 }
 0x1ce   : > { %p6115_p1 = scmp.ne.s32.totalorder %s7763_s16, %s6114_s5  ;;  %p6121_p10 = scmp.lt.u32.totalorder %s6114_s5, %s7763_s16 }
 0x1d0   : > { %p6117_p7 = pnand %p6115_p1, %p7755_p8 }
 0x1d2   : > { %p6118_p13 = pneg %p6117_p7 }
 0x1d4   : > { %p6123_p11 = pnand %p6121_p10, %p6118_p13 }
 0x1d6   : > { %6126 = shalt.err (!%p6123_p11)
}
 0x1d7   : > { %s6127_s26 = scalar_lea.vmem %s674_s25, 4096  ;;  %p6135_p0 = scmp.lt.s32.totalorder %s674_s25, %s674_s25 }
 0x1d8   : > { %p6128_p2 = scmp.ne.s32.totalorder %s674_s25, %s6127_s26  ;;  %p6136_p3 = scmp.lt.s32.totalorder %s6127_s26, %s6127_s26 }
 0x1da   : > { %p6130_p4 = pnand %p6128_p2, %p7755_p8  ;;  %p6137_p5 = por %p6136_p3, %p6135_p0 }
 0x1dc   : > { %p6131_p12 = pneg %p6130_p4 }
 0x1de   : > { %p6138_p9 = pnand %p6137_p5, %p6131_p12 }
 0x1e0   : > { %6141 = shalt.err (!%p6138_p9)
}
 0x1e1   : > { %s7764_s23 = smov 4   ;;  %s7765_s14 = smov 64  }
 0x1e2   : > { %5389 = dma.hbm_to_vmem [thread:$0]  (!%p7756_p6), %s7763_s16, 4096, %s674_s25, [#allocation27], %s7765_s14, %s7765_s14, %s7764_s23  }
 0x1e3   : > { %s7766_s10 = sld [smem:[#allocation72_spill]] }
 0x1e9   : > { %s6142_s9 = scalar_lea.hbm %s7766_s10, 16 }
 0x1ea   : > { %p6143_p1 = scmp.ne.s32.totalorder %s7766_s10, %s6142_s9  ;;  %p6149_p10 = scmp.lt.u32.totalorder %s6142_s9, %s7766_s10 }
 0x1ec   : > { %p6145_p7 = pnand %p6143_p1, %p7755_p8 }
 0x1ee   : > { %p6146_p13 = pneg %p6145_p7 }
 0x1f0   : > { %p6151_p11 = pnand %p6149_p10, %p6146_p13 }
 0x1f2   : > { %6154 = shalt.err (!%p6151_p11)
}
 0x1f3   : > { %s6155_s13 = scalar_lea.vmem %s699_s15, 16  ;;  %s6162_s25 = scalar_lea.vmem %s699_s15, 32 }
 0x1f4   : > { %p6156_p2 = scmp.ne.s32.totalorder %s699_s15, %s6155_s13  ;;  %p6163_p0 = scmp.lt.s32.totalorder %s699_s15, %s699_s15 }
 0x1f5   : > { %p6164_p3 = scmp.lt.s32.totalorder %s6162_s25, %s6155_s13 }
 0x1f6   : > { %p6158_p4 = pnand %p6156_p2, %p7755_p8 }
 0x1f7   : > { %p6165_p5 = por %p6164_p3, %p6163_p0 }
 0x1f8   : > { %p6159_p12 = pneg %p6158_p4 }
 0x1fa   : > { %p6166_p9 = pnand %p6165_p5, %p6159_p12 }
 0x1fc   : > { %6169 = shalt.err (!%p6166_p9)
}
 0x1fd   : > { %5395 = dma.hbm_to_vmem [thread:$0]  (!%p7756_p6), %s7766_s10, 16, %s699_s15, [#allocation30]  }
 0x1fe   : > { %s6424_s14 = smov [#allocation32]   ;;  %s7767_s8 = sld [smem:[#allocation73_spill]] }
 0x1ff   : > { %s709_s1 = sshll.u32 %s6424_s14, 4  ;;  %s710_s1 = int_to_ptr.vmem [resolvable:$true] %s709_s1 }
 0x204   : > { %s6170_s9 = scalar_lea.hbm %s7767_s8, 16 }
 0x205   : > { %p6171_p1 = scmp.ne.s32.totalorder %s7767_s8, %s6170_s9  ;;  %p6177_p10 = scmp.lt.u32.totalorder %s6170_s9, %s7767_s8 }
 0x207   : > { %p6173_p7 = pnand %p6171_p1, %p7755_p8 }
 0x209   : > { %p6174_p13 = pneg %p6173_p7 }
 0x20b   : > { %p6179_p11 = pnand %p6177_p10, %p6174_p13 }
 0x20d   : > { %6182 = shalt.err (!%p6179_p11)
}
 0x20e   : > { %s6183_s15 = scalar_lea.vmem %s710_s1, 16  ;;  %s6190_s13 = scalar_lea.vmem %s710_s1, 32 }
 0x20f   : > { %p6184_p2 = scmp.ne.s32.totalorder %s710_s1, %s6183_s15  ;;  %p6191_p0 = scmp.lt.s32.totalorder %s710_s1, %s710_s1 }
 0x210   : > { %p6192_p3 = scmp.lt.s32.totalorder %s6190_s13, %s6183_s15 }
 0x211   : > { %p6186_p4 = pnand %p6184_p2, %p7755_p8 }
 0x212   : > { %p6193_p5 = por %p6192_p3, %p6191_p0 }
 0x213   : > { %p6187_p12 = pneg %p6186_p4 }
 0x215   : > { %p6194_p9 = pnand %p6193_p5, %p6187_p12 }
 0x217   : > { %6197 = shalt.err (!%p6194_p9)
}
 0x218   : > { %5398 = dma.hbm_to_vmem [thread:$0]  (!%p7756_p6), %s7767_s8, 16, %s710_s1, [#allocation33]  }
 0x219   : > { %s7768_s23 = sshll.u32 %s6398_s24, 8  ;;  %s7769_s0 = sld [smem:[#allocation54_spill]] }
 0x21a   : > { %s7770_s9 = sshll.u32 %s6786_s21, 4  ;;  %s721_s29 = scalar_lea.sflag [#allocation3], %s6786_s21 }
 0x21b   : > { %s724_s4 = scalar_lea.vmem [#allocation2], %s7770_s9  ;;  %p7771_p1 = scmp.ne.s32.totalorder %s7753_s12, 0 }
 0x21c   : > { %s731_s2 = sshll.u32 %s724_s4, 4  ;;  %s7014_s2 = int_to_ptr.vmem [resolvable:$true] %s731_s2 }
 0x21f   : > { %s7010_s5 = scalar_lea.hbm %s7769_s0, %s7768_s23  ;;  %s6203_s15 = scalar_lea.hbm %s7769_s0, 512 }
 0x220   : > { %s6198_s7 = scalar_lea.hbm %s7010_s5, 256  ;;  %p6204_p13 = scmp.lt.u32.totalorder %s7010_s5, %s7769_s0 }
 0x221   : > { %p6199_p8 = scmp.ne.s32.totalorder %s7010_s5, %s6198_s7  ;;  %p6205_p10 = scmp.lt.u32.totalorder %s6203_s15, %s6198_s7 }
 0x222   : > { %p6207_p2 = scmp.lt.u32.totalorder %s6198_s7, %s7010_s5 }
 0x223   : > { %p6201_p6 = pnand %p6199_p8, %p7771_p1  ;;  %p6206_p11 = por %p6205_p10, %p6204_p13 }
 0x225   : > { %p6202_p7 = pneg %p6201_p6  ;;  %p6208_p4 = por %p6207_p2, %p6206_p11 }
 0x227   : > { %p6209_p12 = pnand %p6208_p4, %p6202_p7 }
 0x229   : > { %6212 = shalt.err (!%p6209_p12)
}
 0x22a   : > { %s6213_s26 = scalar_lea.vmem %s7014_s2, 256  ;;  %s6425_s23 = smov [#allocation2]  }
 0x22b   : > { %p6214_p0 = scmp.ne.s32.totalorder %s7014_s2, %s6213_s26  ;;  %s6218_s27 = sshll.u32 %s6425_s23, 4  ;;  %s6219_s27 = int_to_ptr.vmem [resolvable:$false] %s6218_s27 }
 0x22c   : > { %s6220_s14 = scalar_lea.vmem %s6219_s27, 512  ;;  %p6221_p9 = scmp.lt.s32.totalorder %s7014_s2, %s6219_s27 }
 0x22d   : > { %p6216_p3 = pnand %p6214_p0, %p7771_p1  ;;  %p6222_p8 = scmp.lt.s32.totalorder %s6220_s14, %s6213_s26 }
 0x22f   : > { %p6217_p5 = pneg %p6216_p3  ;;  %p6223_p6 = por %p6222_p8, %p6221_p9 }
 0x231   : > { %p6224_p13 = pnand %p6223_p6, %p6217_p5 }
 0x233   : > { %6227 = shalt.err (!%p6224_p13)
}
 0x234   : > { %p7772_p7 = scmp.ne.s32.totalorder %s7751_s28, 0  ;;  %s4920_s9 = sshll.u32 %s6398_s24, 4 }
 0x235   : > { %s765_s4 = scalar_lea.vmem [#allocation7], %s6786_s21  ;;  %s7773_s15 = sld [smem:[#allocation56_spill]] }
 0x236   : > { %5402 = dma.hbm_to_vmem [thread:$0]  (!%p7772_p7), %s7010_s5, 256, %s7014_s2, %s721_s29, %s7760_s18, %s7760_s18, %s7759_s6  }
 0x237   : > { %s772_s7 = sshll.u32 %s765_s4, 4  ;;  %s773_s7 = int_to_ptr.vmem [resolvable:$true] %s772_s7 }
 0x23b   : > { %s770_s13 = scalar_lea.hbm %s7773_s15, %s4920_s9  ;;  %s6233_s27 = scalar_lea.hbm %s7773_s15, 32 }
 0x23c   : > { %s6228_s25 = scalar_lea.hbm %s770_s13, 16  ;;  %p6234_p4 = scmp.lt.u32.totalorder %s770_s13, %s7773_s15 }
 0x23d   : > { %p6229_p10 = scmp.ne.s32.totalorder %s770_s13, %s6228_s25  ;;  %p6235_p12 = scmp.lt.u32.totalorder %s6233_s27, %s6228_s25 }
 0x23e   : > { %p6237_p3 = scmp.lt.u32.totalorder %s6228_s25, %s770_s13 }
 0x23f   : > { %p6231_p11 = pnand %p6229_p10, %p7771_p1  ;;  %p6236_p0 = por %p6235_p12, %p6234_p4 }
 0x241   : > { %p6232_p2 = pneg %p6231_p11  ;;  %p6238_p5 = por %p6237_p3, %p6236_p0 }
 0x243   : > { %p6239_p9 = pnand %p6238_p5, %p6232_p2 }
 0x245   : > { %6242 = shalt.err (!%p6239_p9)
}
 0x246   : > { %s6243_s18 = scalar_lea.vmem %s773_s7, 16  ;;  %s6426_s5 = smov [#allocation7]  }
 0x247   : > { %p6244_p8 = scmp.ne.s32.totalorder %s773_s7, %s6243_s18  ;;  %s6248_s2 = sshll.u32 %s6426_s5, 4  ;;  %s6249_s2 = int_to_ptr.vmem [resolvable:$false] %s6248_s2 }
 0x248   : > { %s6250_s29 = scalar_lea.vmem %s6249_s2, 32  ;;  %p6251_p10 = scmp.lt.s32.totalorder %s773_s7, %s6249_s2 }
 0x249   : > { %p6246_p6 = pnand %p6244_p8, %p7771_p1  ;;  %p6252_p11 = scmp.lt.s32.totalorder %s6250_s29, %s6243_s18 }
 0x24b   : > { %p6247_p13 = pneg %p6246_p6  ;;  %p6253_p7 = por %p6252_p11, %p6251_p10 }
 0x24d   : > { %p6254_p4 = pnand %p6253_p7, %p6247_p13 }
 0x24f   : > { %6257 = shalt.err (!%p6254_p4)
}
 0x250   : > { %p7774_p12 = scmp.ne.s32.totalorder %s7751_s28, 0  ;;  %s7775_s19 = sld [smem:[#allocation57_spill]] }
 0x251   : > { %s782_s26 = scalar_lea.vmem [#allocation8], %s6786_s21  ;;  %s7776_s27 = sand.u32 1, %s6398_s24  }
 0x252   : > { %5408 = dma.hbm_to_vmem [thread:$0]  (!%p7774_p12), %s770_s13, 16, %s773_s7, %s6810_s11  }
 0x253   : > { %s789_s23 = sshll.u32 %s782_s26, 4  ;;  %s780_s14 = scalar_lea.sflag [#allocation9], %s7776_s27  ;;  %s790_s23 = int_to_ptr.vmem [resolvable:$true] %s789_s23 }
 0x256   : > { %s7068_s25 = scalar_lea.hbm %s7775_s19, %s4920_s9  ;;  %s6263_s13 = scalar_lea.hbm %s7775_s19, 32 }
 0x257   : > { %s6258_s6 = scalar_lea.hbm %s7068_s25, 16  ;;  %p6264_p3 = scmp.lt.u32.totalorder %s7068_s25, %s7775_s19 }
 0x258   : > { %p6259_p7 = scmp.ne.s32.totalorder %s7068_s25, %s6258_s6  ;;  %p6265_p5 = scmp.lt.u32.totalorder %s6263_s13, %s6258_s6 }
 0x259   : > { %p6267_p8 = scmp.lt.u32.totalorder %s6258_s6, %s7068_s25 }
 0x25a   : > { %p6261_p2 = pnand %p6259_p7, %p7771_p1  ;;  %p6266_p9 = por %p6265_p5, %p6264_p3 }
 0x25c   : > { %p6262_p0 = pneg %p6261_p2  ;;  %p6268_p6 = por %p6267_p8, %p6266_p9 }
 0x25e   : > { %p6269_p13 = pnand %p6268_p6, %p6262_p0 }
 0x260   : > { %6272 = shalt.err (!%p6269_p13)
}
 0x261   : > { %s6273_s21 = scalar_lea.vmem %s790_s23, 16  ;;  %s6427_s5 = smov [#allocation8]  }
 0x262   : > { %p6274_p10 = scmp.ne.s32.totalorder %s790_s23, %s6273_s21  ;;  %s6278_s2 = sshll.u32 %s6427_s5, 4  ;;  %s6279_s2 = int_to_ptr.vmem [resolvable:$false] %s6278_s2 }
 0x263   : > { %s6280_s29 = scalar_lea.vmem %s6279_s2, 32  ;;  %p6281_p7 = scmp.lt.s32.totalorder %s790_s23, %s6279_s2 }
 0x264   : > { %p6276_p11 = pnand %p6274_p10, %p7771_p1  ;;  %p6282_p2 = scmp.lt.s32.totalorder %s6280_s29, %s6273_s21 }
 0x266   : > { %p6277_p4 = pneg %p6276_p11  ;;  %p6283_p12 = por %p6282_p2, %p6281_p7 }
 0x268   : > { %p6284_p3 = pnand %p6283_p12, %p6277_p4 }
 0x26a   : > { %6287 = shalt.err (!%p6284_p3)
}
 0x26b   : > { %p7777_p5 = scmp.ne.s32.totalorder %s7751_s28, 0  ;;  %s7778_s4 = sld [smem:[#allocation50_spill]] }
 0x26d   : > { %5411 = dma.hbm_to_vmem [thread:$0]  (!%p7777_p5), %s7068_s25, 16, %s790_s23, %s780_s14  }
 0x271   : > { %p7779_p0 = scmp.ne.s32.totalorder %s7778_s4, 0 }
 0x272   : > { %s7093_s12 = sand.u32 (!%p7779_p0), 1, %s6390_s22   ;;  %p7780_p1 = scmp.ne.s32.totalorder (!%p7779_p0), %s7747_s30, 0 }
 0x273   : > { %798 = sbr.rel (%p7779_p0) target bundleno = 4215 (0x1077), region = 100  ;;  %s7096_s1 = sshll.u32 (!%p7779_p0), %s7093_s12, 4 }
 0x274   : > { %s801_s26 = scalar_lea.sflag (!%p7779_p0), [#allocation3], %s7093_s12  ;;  %s7100_s27 = scalar_lea.vmem (!%p7779_p0), [#allocation2], %s7096_s1 }
 0x27a   : > { %6333 = dma.done.wait (%p7780_p1), %s801_s26, 256  }
 0x27b   : > { %6335 = vsyncadd (%p7780_p1), %s801_s26, 4294967040  ;;  %s809_s28 = sand.u32 1, %s6563_s3   ;;  %s813_s23 = scalar_lea.vmem [#allocation5], %s7096_s1 }
 0x27c   : > { %s810_s25 = scalar_lea.sflag [#allocation6], %s809_s28 }
 0x27d   : > { %6337 = dma.done.wait (%p7780_p1), %s810_s25, 272  }
 0x27e   : > { %6339 = vsyncadd (%p7780_p1), %s810_s25, 4294967024  ;;  %s821_s14 = scalar_lea.vmem [#allocation7], %s7093_s12  ;;  %s827_s6 = scalar_lea.sflag [#allocation9], %s809_s28 }
 0x27f   : > { %s829_s11 = scalar_lea.vmem [#allocation8], %s7093_s12 }
 0x280   : > { %6341 = dma.done.wait (%p7780_p1), %s827_s6, 16  }
 0x281   : > { %6343 = vsyncadd (%p7780_p1), %s827_s6, 4294967280  ;;  %p7781_p12 = scmp.eq.s32.totalorder %s6563_s3, 0 }
 0x283   : > { %6345 = dma.done.wait (%p7781_p12), [#allocation9], 3072   ;;  %p7782_p9 = pmov %p7781_p12 }
 0x285   : > { %6347 = vsyncadd (%p7782_p9), [#allocation9], 4294964224  ;;  %p7783_p8 = pmov %p7782_p9 }
 0x287   : > { %6349 = dma.done.wait (%p7783_p8), [#allocation12], 64   ;;  %p7784_p6 = pmov %p7783_p8 }
 0x289   : > { %6351 = vsyncadd (%p7784_p6), [#allocation12], 4294967232  ;;  %p7785_p13 = pmov %p7784_p6 }
 0x28a   : > { %p7786_p10 = pmov %p7784_p6 }
 0x28b   : > { %6353 = dma.done.wait (%p7785_p13), [#allocation15], 1040  }
 0x28c   : > { %6355 = vsyncadd (%p7786_p10), [#allocation15], 4294966256  ;;  %p7787_p11 = pmov %p7784_p6 }
 0x28d   : > { %p7788_p4 = pmov %p7784_p6 }
 0x28e   : > { %6357 = dma.done.wait (%p7787_p11), [#allocation18], 2064  }
 0x28f   : > { %6359 = vsyncadd (%p7788_p4), [#allocation18], 4294965232  ;;  %p7789_p7 = pmov %p7788_p4 }
 0x290   : > { %p7790_p2 = pmov %p7788_p4 }
 0x291   : > { %6361 = dma.done.wait (%p7789_p7), [#allocation21], 48  }
 0x292   : > { %6363 = vsyncadd (%p7790_p2), [#allocation21], 4294967248  ;;  %p7791_p3 = pmov %p7790_p2 }
 0x293   : > { %p7792_p5 = pmov %p7790_p2 }
 0x294   : > { %6365 = dma.done.wait (%p7791_p3), [#allocation24], 4112  }
 0x295   : > { %6367 = vsyncadd (%p7792_p5), [#allocation24], 4294963184  ;;  %p7793_p0 = pmov %p7790_p2 }
 0x297   : > { %6369 = dma.done.wait (%p7793_p0), [#allocation27], 4160   ;;  %p7794_p1 = pmov %p7793_p0 }
 0x298   : > { %p7795_p12 = pmov %p7793_p0 }
 0x299   : > { %6371 = vsyncadd (%p7794_p1), [#allocation27], 4294963136 }
 0x29a   : > { %6373 = dma.done.wait (%p7795_p12), [#allocation30], 32   ;;  %p7796_p9 = pmov %p7793_p0 }
 0x29b   : > { %p7797_p8 = pmov %p7793_p0 }
 0x29c   : > { %6375 = vsyncadd (%p7796_p9), [#allocation30], 4294967264 }
 0x29d   : > { %6377 = dma.done.wait (%p7797_p8), [#allocation33], 16   ;;  %p7798_p6 = pmov %p7793_p0 }
 0x29e   : > { %v6428_v0 = vmov 0   ;;  %v5514_v1 = vld [vmem:[#allocation10 + $0x4] ss:$12 sps:$4 sm:$0xff]   ;;  %v5516_v2 = vld [vmem:[#allocation10] ss:$12 sps:$4 sm:$0xff]   ;;  %v6429_v21 = vmov 0.0   ;;  %v1007_v24 = vlaneseq }
 0x29f   : > { %6379 = vsyncadd (%p7798_p6), [#allocation33], 4294967280  ;;  %1182 = vmatprep.mubr.bf16.mxu0 %v6428_v0  ;;  %1150 = vmatprep.subr.bf16.mxu0 %v5514_v1  ;;  %v5517_v3 = vld [vmem:[#allocation10 + $0x1c] ss:$12 sps:$4 sm:$0xff]   ;;  %v5519_v4 = vld [vmem:[#allocation10 + $0x18] ss:$12 sps:$4 sm:$0xff]   ;;  %v7194_v53 = vpack.i.b16 %v6428_v0, %v6428_v0 }
 0x2a0   : > { %1151 = vmatpush1.bf16.msra.mxu0 %v5516_v2  ;;  %v5520_v5 = vld [vmem:[#allocation10 + $0x34] ss:$12 sps:$4 sm:$0xff]   ;;  %v5522_v6 = vld [vmem:[#allocation10 + $0x30] ss:$12 sps:$4 sm:$0xff]   ;;  %v5523_v7 = vld [vmem:[#allocation10 + $0x4c] ss:$12 sps:$4 sm:$0xff]   ;;  %5188 = vmatprep.subr.bf16.mxu1 %v6429_v21 }
 0x2a1   : > { %1152 = vmatprep.subr.bf16.mxu0 %v5517_v3  ;;  %v5525_v8 = vld [vmem:[#allocation10 + $0x48] ss:$12 sps:$4 sm:$0xff]   ;;  %v5526_v9 = vld [vmem:[#allocation10 + $0x64] ss:$12 sps:$4 sm:$0xff]   ;;  %v5528_v10 = vld [vmem:[#allocation10 + $0x60] ss:$12 sps:$4 sm:$0xff]  }
 0x2a2   : > { %v5529_v11 = vld [vmem:[#allocation10 + $0x7c] ss:$12 sps:$4 sm:$0xff]   ;;  %v5531_v12 = vld [vmem:[#allocation10 + $0x78] ss:$12 sps:$4 sm:$0xff]   ;;  %v5532_v13 = vld [vmem:[#allocation10 + $0x94] ss:$12 sps:$4 sm:$0xff]  }
 0x2a3   : > { %v5534_v14 = vld [vmem:[#allocation10 + $0x90] ss:$12 sps:$4 sm:$0xff]   ;;  %v5535_v15 = vld [vmem:[#allocation10 + $0xac] ss:$12 sps:$4 sm:$0xff]   ;;  %v5537_v16 = vld [vmem:[#allocation10 + $0xa8] ss:$12 sps:$4 sm:$0xff]  }
 0x2a4   : > { %1153 = vmatpush1.bf16.msra.mxu0 %v5519_v4  ;;  %v964_v17 = vld [vmem:[%s7100_s27] sm:$0xff]  ;;  %v965_v18 = vld [vmem:[%s7100_s27 + $0x8] sm:$0xff]  ;;  %v7162_v25 = vshrl.u32 %v1007_v24, 7  ;;  %s6430_s30 = smov 64   ;;  %vm6431_vm0 = vmmov 0   ;;  %vm1884_vm1 = vcmask 523264  }
 0x2a5   : > { %1154 = vmatprep.subr.bf16.mxu0 %v5520_v5  ;;  %v972_v19 = vpack.c.bf16 %v965_v18, %v964_v17  ;;  %v5538_v20 = vld [vmem:[#allocation10 + $0x8] ss:$12 sps:$4 sm:$0xff]   ;;  %v5539_v22 = vld [vmem:[#allocation10 + $0x20] ss:$12 sps:$4 sm:$0xff]   ;;  %v5540_v23 = vld [vmem:[#allocation10 + $0x38] ss:$12 sps:$4 sm:$0xff]   ;;  %5204 = vmatprep.mubr.msk.bf16.mxu1 %vm6431_vm0, %v6429_v21 }
 0x2a6   : > { %5189 = vmatpush3.bf16.msra.mxu1 %v5538_v20  ;;  %v7165_v26 = vsub.s32 0, %v7162_v25  ;;  %v7167_v27 = vld [vmem:[#allocation11] sm:$0x7]  ;;  %v7170_v28 = vsub.s32 1, %v7162_v25  ;;  %v5541_v29 = vld [vmem:[#allocation10 + $0x50] ss:$12 sps:$4 sm:$0xff]  }
 0x2a7   : > { %5190 = vmatprep.subr.bf16.mxu1 %v6429_v21  ;;  %v5542_v41 = vld [vmem:[#allocation10 + $0x68] ss:$12 sps:$4 sm:$0xff]   ;;  %v5543_v43 = vld [vmem:[#allocation10 + $0x80] ss:$12 sps:$4 sm:$0xff]   ;;  %v5544_v44 = vld [vmem:[#allocation10 + $0x98] ss:$12 sps:$4 sm:$0xff]  }
 0x2a8   : > { %1155 = vmatpush1.bf16.msra.mxu0 %v5522_v6  ;;  %v1010_v30 = vrot.slane %v7167_v27, %v7165_v26  ;;  %v1014_v32 = vrot.slane %v7167_v27, %v7170_v28  ;;  %v5545_v45 = vld [vmem:[#allocation10 + $0xb0] ss:$12 sps:$4 sm:$0xff]   ;;  %v6432_v46 = vmov 1983009808   ;;  %v6433_v49 = vmov 1934713408  }
 0x2a9   : > { %1156 = vmatprep.subr.bf16.mxu0 %v5523_v7  ;;  %v1254_v47 = vunpack.c.l.s4 %v6432_v46  ;;  %v1269_v50 = vunpack.c.l.s4 %v6433_v49  ;;  %vm1993_vm2 = vcmask 130048   ;;  %s962_s7 = scalar_lea.vmem [#allocation34], %s7096_s1  ;;  %s5109_s13 = sshll.u32 %s6563_s3, 8 }
 0x2aa   : > { %5191 = vmatpush3.bf16.msra.mxu1 %v5539_v22  ;;  %s4610_s9 = sshll.u32 %s962_s7, 4  ;;  %s7799_s5 = sld [smem:[#allocation74_spill]]  ;;  %s7601_s9 = int_to_ptr.vmem [resolvable:$true] %s4610_s9 }
 0x2ab   : > { %5192 = vmatprep.subr.bf16.mxu1 %v6429_v21  ;;  %v1255_v48 = vunpack.c.0.s8 %v1254_v47  ;;  %v1270_v52 = vunpack.c.0.s8 %v1269_v50  ;;  %s4597_s29 = scalar_lea.sflag [#allocation4], %s7093_s12  ;;  %s6288_s4 = scalar_lea.vmem %s7601_s9, 256 }
 0x2ac   : > { %1157 = vmatpush1.bf16.msra.mxu0 %v5525_v8  ;;  %p6289_p13 = scmp.ne.s32.totalorder %s7601_s9, %s6288_s4  ;;  %p7800_p10 = scmp.ne.s32.totalorder %s7748_s20, 0 }
 0x2ad   : > { %1158 = vmatprep.subr.bf16.mxu0 %v5526_v9  ;;  %v7190_v51 = vsub.s32 %v1255_v48, %v7162_v25  ;;  %v7197_v58 = vsub.s32 %v1270_v52, %v7162_v25  ;;  %s6434_s3 = smov [#allocation34]  }
 0x2ae   : > { %5193 = vmatpush3.bf16.msra.mxu1 %v5540_v23  ;;  %p6290_p11 = pnand %p6289_p13, %p7800_p10  ;;  %s6292_s1 = sshll.u32 %s6434_s3, 4  ;;  %s6293_s1 = int_to_ptr.vmem [resolvable:$false] %s6292_s1 }
 0x2af   : > { %5194 = vmatprep.subr.bf16.mxu1 %v6429_v21  ;;  %s6294_s26 = scalar_lea.vmem %s6293_s1, 512  ;;  %p6295_p7 = scmp.lt.s32.totalorder %s7601_s9, %s6293_s1 }
 0x2b0   : > { %1159 = vmatpush1.bf16.msra.mxu0 %v5528_v10  ;;  %s7599_s2 = scalar_lea.hbm %s7799_s5, %s5109_s13  ;;  %p6291_p4 = pneg %p6290_p11 }
 0x2b1   : > { %1160 = vmatprep.subr.bf16.mxu0 %v5529_v11  ;;  %p6296_p2 = scmp.lt.s32.totalorder %s6294_s26, %s6288_s4 }
 0x2b2   : > { %5195 = vmatpush3.bf16.msra.mxu1 %v5541_v29 }
 0x2b3   : > { %5196 = vmatprep.subr.bf16.mxu1 %v6429_v21  ;;  %p6297_p3 = por %p6296_p2, %p6295_p7 }
 0x2b4   : > { %1161 = vmatpush1.bf16.msra.mxu0 %v5531_v12 }
 0x2b5   : > { %1162 = vmatprep.subr.bf16.mxu0 %v5532_v13  ;;  %p6298_p5 = pnand %p6297_p3, %p6291_p4 }
 0x2b6   : > { %5197 = vmatpush3.bf16.msra.mxu1 %v5542_v41 }
 0x2b7   : > { %5198 = vmatprep.subr.bf16.mxu1 %v6429_v21 }
 0x2b8   : > { %1163 = vmatpush1.bf16.msra.mxu0 %v5534_v14 }
 0x2b9   : > { %1164 = vmatprep.subr.bf16.mxu0 %v5535_v15 }
 0x2ba   : > { %5199 = vmatpush3.bf16.msra.mxu1 %v5543_v43 }
 0x2bb   : > { %5200 = vmatprep.subr.bf16.mxu1 %v6429_v21 }
 0x2bc   : > { %1165 = vmatpush1.bf16.msra.mxu0 %v5537_v16 }
 0x2bd   : > { %5208 = vmatprep.subr.bf16.mxu0 %v6429_v21 }
 0x2be   : > { %5201 = vmatpush3.bf16.msra.mxu1 %v5544_v44 }
 0x2bf   : > { %1183 = vmatmul.mubr.bf16.vlgmr.msra.gmra.mrb[0].mxu0 %v972_v19  ;;  %5202 = vmatprep.subr.bf16.mxu1 %v6429_v21 }
 0x2c0   : > { %5210 = vmatprep.mubr.msk.bf16.mxu0 %vm6431_vm0, %v6429_v21 }
 0x2c2   : > { %5203 = vmatpush3.bf16.msra.mxu1 %v5545_v45 }
 0x2c3   : > { %5214 = vmatprep.subr.bf16.mxu1 %v6429_v21 }
 0x2c5   : > { %5205 = vmatmul.mubr.bf16.vlgmr.msra.gmra.mrb[0].mxu1 %v972_v19 }
 0x2c6   : > { %5216 = vmatprep.mubr.msk.bf16.mxu1 %vm6431_vm0, %v6429_v21 }
 0x392   : > { %v1184_v31 = vpop.f32.mrb[0].mxu0 }
 0x393   : > { %v1186_v33 = vpop.f32.mrb[1].mxu0  ;;  %v1185_v35 = vadd.f32 %v1184_v31, %v1010_v30 }
 0x394   : > { %v1188_v34 = vpop.f32.mrb[2].mxu0  ;;  %v1187_v38 = vadd.f32 %v1186_v33, %v1014_v32 }
 0x395   : > { %v1189_v36 = vadd.f32 %v1188_v34, %v1010_v30  ;;  %v1190_v37 = vpop.f32.mrb[3].mxu0 }
 0x396   : > { %v1191_v39 = vadd.f32 %v1190_v37, %v1014_v32 }
 0x397   : > { %v1234_v40 = vpack.c.bf16 %v1189_v36, %v1185_v35 }
 0x398   : > { %v1454_v42 = vpack.c.bf16 %v1191_v39, %v1187_v38 }
 0x399   : > { %v1242_v11 = vshrl.u32 %v1234_v40, 16 }
 0x39a   : > { %1456 = vrot.lane.b32.xlu0 %v1454_v42, %s6430_s30  ;;  %v1462_v56 = vshrl.u32 %v1454_v42, 16 }
 0x39e   : > { %1236 = vrot.lane.b32.xlu0 %v1234_v40, %s6430_s30 }
 0x40c   : > { %v1457_v54 = vpop.permute.xlu0 %1456 }
 0x40d   : > { %v1460_v55 = vpack.i.b16 %v1457_v54, %v1454_v42  ;;  %v1463_v57 = vshrl.u32 %v1457_v54, 16 }
 0x40f   : > { %v1464_v59 = vpack.i.b16 %v1463_v57, %v1462_v56  ;;  %v1466_v60 = vcombine.high %v1460_v55, %v7194_v53  ;;  %v1473_v61 = vrot.slane %v1460_v55, %v7190_v51 }
 0x410   : > { %v1237_v62 = vpop.permute.xlu0 %1236 }
 0x411   : > { %v1480_v63 = vrot.slane %v1466_v60, %v7190_v51  ;;  %v1481_v1 = vcombine.high %v1473_v61, %v6428_v0  ;;  %v1515_v2 = vcombine.high %v1464_v59, %v7194_v53  ;;  %v1522_v3 = vrot.slane %v1464_v59, %v7190_v51 }
 0x412   : > { %v1240_v4 = vpack.i.b16 %v1237_v62, %v1234_v40  ;;  %v1243_v5 = vshrl.u32 %v1237_v62, 16  ;;  %v1488_v6 = vrot.slane %v1473_v61, %v7197_v58 }
 0x413   : > { %v1495_v7 = vrot.slane %v1481_v1, %v7197_v58  ;;  %v1496_v8 = vcombine.high %v1480_v63, %v6428_v0  ;;  %v1529_v9 = vrot.slane %v1515_v2, %v7190_v51  ;;  %v1530_v10 = vcombine.high %v1522_v3, %v6428_v0 }
 0x414   : > { %v1252_v12 = vcombine.high %v1240_v4, %v7194_v53  ;;  %v1503_v13 = vrot.slane %v1480_v63, %v7197_v58  ;;  %v1244_v19 = vpack.i.b16 %v1243_v5, %v1242_v11  ;;  %v1259_v20 = vrot.slane %v1240_v4, %v7190_v51 }
 0x415   : > { %v1510_v14 = vrot.slane %v1496_v8, %v7197_v58  ;;  %v1545_v15 = vcombine.high %v1529_v9, %v6428_v0  ;;  %v1564_v16 = vcombine.low %v1488_v6, %v1495_v7  ;;  %v1544_v17 = vrot.slane %v1530_v10, %v7197_v58 }
 0x416   : > { %v4970_v18 = vcombine.high %v1488_v6, %v1495_v7  ;;  %v1266_v29 = vrot.slane %v1252_v12, %v7190_v51  ;;  %v1537_v30 = vrot.slane %v1522_v3, %v7197_v58  ;;  %v1267_v33 = vcombine.high %v1259_v20, %v6428_v0 }
 0x417   : > { %v1559_v22 = vrot.slane %v1545_v15, %v7197_v58  ;;  %v1580_v23 = vcombine.low %v1503_v13, %v1510_v14  ;;  %v4971_v24 = vcombine.high %v1503_v13, %v1510_v14  ;;  %v1571_v31 = vrot.slane %v1564_v16, %v7190_v51 }
 0x418   : > { %v1579_v32 = vrot.slane %v4970_v18, %v7190_v51  ;;  %v1552_v34 = vrot.slane %v1529_v9, %v7197_v58  ;;  %v1613_v37 = vcombine.low %v1537_v30, %v1544_v17  ;;  %v4972_v38 = vcombine.high %v1537_v30, %v1544_v17 }
 0x419   : > { %v1587_v35 = vrot.slane %v1580_v23, %v7190_v51  ;;  %v1595_v36 = vrot.slane %v4971_v24, %v7190_v51  ;;  %v1281_v39 = vrot.slane %v1267_v33, %v7197_v58  ;;  %v1282_v41 = vcombine.high %v1266_v29, %v6428_v0 }
 0x41a   : > { %v1629_v40 = vcombine.low %v1552_v34, %v1559_v22  ;;  %v1301_v42 = vcombine.high %v1244_v19, %v7194_v53  ;;  %v1308_v43 = vrot.slane %v1244_v19, %v7190_v51  ;;  %v4973_v44 = vcombine.high %v1552_v34, %v1559_v22 }
 0x41b   : > { %v1274_v45 = vrot.slane %v1259_v20, %v7197_v58  ;;  %v1596_v46 = vcombine.low %v1571_v31, %v1579_v32  ;;  %v1604_v47 = vcombine.low %v1587_v35, %v1595_v36  ;;  %v1289_v48 = vrot.slane %v1266_v29, %v7197_v58 }
 0x41c   : > { %v1296_v49 = vrot.slane %v1282_v41, %v7197_v58  ;;  %v1315_v50 = vrot.slane %v1301_v42, %v7190_v51  ;;  %v1316_v52 = vcombine.high %v1308_v43, %v6428_v0  ;;  %v1620_v54 = vrot.slane %v1613_v37, %v7190_v51 }
 0x41d   : > { %v1628_v55 = vrot.slane %v4972_v38, %v7190_v51  ;;  %v1350_v56 = vcombine.low %v1274_v45, %v1281_v39  ;;  %v4966_v57 = vcombine.high %v1274_v45, %v1281_v39  ;;  %v1323_v59 = vrot.slane %v1308_v43, %v7197_v58 }
 0x41e   : > { %v1330_v60 = vrot.slane %v1316_v52, %v7197_v58  ;;  %v1331_v61 = vcombine.high %v1315_v50, %v6428_v0  ;;  %v1366_v62 = vcombine.low %v1289_v48, %v1296_v49  ;;  %v4967_v63 = vcombine.high %v1289_v48, %v1296_v49 }
 0x41f   : > { %v1603_v1 = vrot.slane %v1596_v46, %v7197_v58  ;;  %v1611_v2 = vrot.slane %v1604_v47, %v7197_v58  ;;  %v1636_v3 = vrot.slane %v1629_v40, %v7190_v51  ;;  %v1338_v4 = vrot.slane %v1315_v50, %v7197_v58 }
 0x420   : > { %v1345_v5 = vrot.slane %v1331_v61, %v7197_v58  ;;  %v1399_v6 = vcombine.low %v1323_v59, %v1330_v60  ;;  %v4968_v7 = vcombine.high %v1323_v59, %v1330_v60  ;;  %v1373_v8 = vrot.slane %v1366_v62, %v7190_v51  ;;  %v966_v62 = vld [vmem:[%s821_s14] sm:$0x1] }
 0x421   : > { %v1381_v9 = vrot.slane %v4967_v63, %v7190_v51  ;;  %v1644_v10 = vrot.slane %v4973_v44, %v7190_v51  ;;  %v1645_v11 = vcombine.low %v1620_v54, %v1628_v55  ;;  %v1357_v16 = vrot.slane %v1350_v56, %v7190_v51  ;;  %v1227_v54 = vpop.f32.mrb[0].mxu1 }
 0x422   : > { %v1406_v12 = vrot.slane %v1399_v6, %v7190_v51  ;;  %v1414_v13 = vrot.slane %v4968_v7, %v7190_v51  ;;  %v1415_v14 = vcombine.low %v1338_v4, %v1345_v5  ;;  %v4969_v15 = vcombine.high %v1338_v4, %v1345_v5  ;;  %v5206_v56 = vpop.f32.mrb[1].mxu1 }
 0x423   : > { %v1365_v17 = vrot.slane %v4966_v57, %v7190_v51  ;;  %v1653_v18 = vcombine.low %v1636_v3, %v1644_v10  ;;  %v1612_v22 = vcombine.low %v1603_v1, %v1611_v2  ;;  %v1390_v23 = vcombine.low %v1373_v8, %v1381_v9  ;;  %v1230_v57 = vpop.f32.mrb[2].mxu1 }
 0x424   : > { %v1422_v19 = vrot.slane %v1415_v14, %v7190_v51  ;;  %v1430_v20 = vrot.slane %v4969_v15, %v7190_v51  ;;  %v1431_v24 = vcombine.low %v1406_v12, %v1414_v13  ;;  %v1652_v29 = vrot.slane %v1645_v11, %v7197_v58  ;;  %v5207_v60 = vpop.f32.mrb[3].mxu1 }
 0x425   : > { %v1660_v30 = vrot.slane %v1653_v18, %v7197_v58  ;;  %v1382_v32 = vcombine.low %v1357_v16, %v1365_v17  ;;  %v1665_v34 = vshrl.u32 %v1612_v22, 16  ;;  %v1397_v36 = vrot.slane %v1390_v23, %v7197_v58 }
 0x426   : > { %v1439_v31 = vcombine.low %v1422_v19, %v1430_v20  ;;  %v1438_v37 = vrot.slane %v1431_v24, %v7197_v58  ;;  %v1017_v50 = vsub.s32 2, %v7162_v25  ;;  %v967_v63 = vsub.f32 1.0, %v966_v62 }
 0x427   : > { %v1661_v33 = vcombine.low %v1652_v29, %v1660_v30  ;;  %v1389_v40 = vrot.slane %v1382_v32, %v7197_v58 }
 0x428   : > { %v1446_v35 = vrot.slane %v1439_v31, %v7197_v58  ;;  %v1018_v52 = vrot.slane %v7167_v27, %v1017_v50  ;;  %v968_v1 = vmul.f32 10000.0, %v967_v63 }
 0x429   : > { %v1664_v38 = vpack.i.b16 %v1661_v33, %v1612_v22  ;;  %v1666_v39 = vshrl.u32 %v1661_v33, 16  ;;  %v1398_v45 = vcombine.low %v1389_v40, %v1397_v36 }
 0x42a   : > { %v1447_v43 = vcombine.low %v1438_v37, %v1446_v35  ;;  %v1228_v55 = vadd.f32 %v1227_v54, %v1018_v52  ;;  %v1231_v59 = vadd.f32 %v1230_v57, %v1018_v52  ;;  %v1987_v2 = vrot.slane %v968_v1, %v7165_v26 }
 0x42b   : > { %v1889_v41 = vsel %vm1884_vm1, %v1664_v38, 0  ;;  %v1667_v42 = vpack.i.b16 %v1666_v39, %v1665_v34  ;;  %v1451_v48 = vshrl.u32 %v1398_v45, 16 }
 0x42c   : > { %5209 = vmatpush3.bf16.xpose.msra.mxu0 %v1889_v41  ;;  %v1452_v46 = vshrl.u32 %v1447_v43, 16  ;;  %v1450_v47 = vpack.i.b16 %v1447_v43, %v1398_v45  ;;  %v1668_v61 = vpack.c.bf16 %v1231_v59, %v1228_v55 }
 0x42d   : > { %v1936_v44 = vsel %vm1884_vm1, %v1667_v42, 0  ;;  %5220 = vmatprep.subr.bf16.mxu0 %v6429_v21 }
 0x42e   : > { %5215 = vmatpush3.bf16.xpose.msra.mxu1 %v1936_v44  ;;  %v1453_v49 = vpack.i.b16 %v1452_v46, %v1451_v48  ;;  %v1676_v40 = vshrl.u32 %v1668_v61, 16 }
 0x42f   : > { %5226 = vmatprep.subr.bf16.mxu1 %v6429_v21 }
 0x433   : > { %5211 = vmatmul.mubr.msk.bf16.vlgmr.msra.gmra.mrb[4].mxu0 %vm1884_vm1, %v1450_v47 }
 0x434   : > { %5222 = vmatprep.mubr.msk.bf16.mxu0 %vm6431_vm0, %v6429_v21 }
 0x435   : > { %5217 = vmatmul.mubr.msk.bf16.vlgmr.msra.gmra.mrb[4].mxu1 %vm1884_vm1, %v1453_v49 }
 0x436   : > { %5228 = vmatprep.mubr.msk.bf16.mxu1 %vm6431_vm0, %v6429_v21 }
 0x506   : > { %v1925_v3 = vpop.f32.mrb[4].mxu0 }
 0x507   : > { %v1979_v4 = vmul.f32 0.125, %v1925_v3  ;;  %v5212_v5 = vpop.f32.mrb[5].mxu0 }
 0x508   : > { %v1928_v6 = vpop.f32.mrb[6].mxu0  ;;  %v1972_v7 = vpop.f32.mrb[4].mxu1 }
 0x509   : > { %v1980_v27 = vmul.f32 0.125, %v1928_v6  ;;  %v1981_v8 = vmul.f32 0.125, %v1972_v7  ;;  %v5213_v9 = vpop.f32.mrb[7].mxu0  ;;  %v5218_v10 = vpop.f32.mrb[5].mxu1  ;;  %v1989_v11 = vsub.f32 %v1979_v4, %v1987_v2 }
 0x50a   : > { %v1975_v12 = vpop.f32.mrb[6].mxu1 }
 0x50b   : > { %v1982_v13 = vmul.f32 0.125, %v1975_v12  ;;  %v5219_v14 = vpop.f32.mrb[7].mxu1  ;;  %v1994_v15 = vsel %vm1993_vm2, %v1989_v11, -inf  ;;  %v1991_v16 = vsub.f32 %v1981_v8, %v1987_v2  ;;  %v1990_v17 = vsub.f32 %v1980_v27, %v1987_v2 }
 0x50c   : > { %1995 = vmax.xlane.f32.xlu1 %v1994_v15 }
 0x50d   : > { %v2000_v18 = vsel %vm1993_vm2, %v1991_v16, -inf  ;;  %v1997_v19 = vsel %vm1993_vm2, %v1990_v17, -inf  ;;  %v1992_v20 = vsub.f32 %v1982_v13, %v1987_v2 }
 0x50e   : > { %2001 = vmax.xlane.f32.xlu0 %v2000_v18 }
 0x50f   : > { %v2003_v22 = vsel %vm1993_vm2, %v1992_v20, -inf }
 0x510   : > { %1998 = vmax.xlane.f32.xlu1 %v1997_v19 }
 0x514   : > { %2004 = vmax.xlane.f32.xlu1 %v2003_v22 }
 0x525   : > { %1670 = vrot.lane.b32.xlu1 %v1668_v61, %s6430_s30 }
 0x599   : > { %v1996_v23 = vpop.xlane.xlu1 %1995 }
 0x59a   : > { %v2006_v24 = vsub.f32 %v1989_v11, %v1996_v23 }
 0x59b   : > { %v2002_v29 = vpop.xlane.xlu0 %2001 }
 0x59c   : > { %v2010_v30 = vmul.f32 1.442695, %v2006_v24  ;;  %v2008_v31 = vsub.f32 %v1991_v16, %v2002_v29 }
 0x59d   : > { %v1999_v32 = vpop.xlane.xlu1 %1998 }
 0x59e   : > { %5658 = vpow2.f32 %v2010_v30  ;;  %v2007_v33 = vsub.f32 %v1990_v17, %v1999_v32  ;;  %v2014_v34 = vmul.f32 1.442695, %v2008_v31 }
 0x5a0   : > { %v2012_v35 = vmul.f32 1.442695, %v2007_v33 }
 0x5a1   : > { %v2005_v36 = vpop.xlane.xlu1 %2004 }
 0x5a2   : > { %5660 = vpow2.f32 %v2012_v35  ;;  %v2009_v37 = vsub.f32 %v1992_v20, %v2005_v36 }
 0x5a3   : > { %5662 = vpow2.f32 %v2014_v34 }
 0x5a4   : > { %v2016_v38 = vmul.f32 1.442695, %v2009_v37 }
 0x5a5   : > { %v1671_v39 = vpop.permute.xlu1 %1670 }
 0x5a6   : > { %v1674_v41 = vpack.i.b16 %v1671_v39, %v1668_v61  ;;  %v1677_v42 = vshrl.u32 %v1671_v39, 16  ;;  %5664 = vpow2.f32 %v2016_v38 }
 0x5a8   : > { %v7281_v43 = vpop.eup %5658  ;;  %v1678_v44 = vpack.i.b16 %v1677_v42, %v1676_v40  ;;  %v1680_v45 = vcombine.high %v1674_v41, %v7194_v53  ;;  %v1687_v46 = vrot.slane %v1674_v41, %v7190_v51 }
 0x5a9   : > { %v2018_v47 = vsel %vm1993_vm2, %v7281_v43, 0.0 }
 0x5aa   : > { %v1694_v48 = vrot.slane %v1680_v45, %v7190_v51  ;;  %v1695_v49 = vcombine.high %v1687_v46, %v6428_v0  ;;  %v1729_v52 = vcombine.high %v1678_v44, %v7194_v53  ;;  %2019 = vadd.xlane.f32.xlu1 %v2018_v47  ;;  %v1736_v54 = vrot.slane %v1678_v44, %v7190_v51 }
 0x5ab   : > { %v1702_v56 = vrot.slane %v1687_v46, %v7197_v58 }
 0x5ac   : > { %v7291_v55 = vpop.eup %5660  ;;  %v1709_v57 = vrot.slane %v1695_v49, %v7197_v58  ;;  %v1710_v59 = vcombine.high %v1694_v48, %v6428_v0  ;;  %v1743_v60 = vrot.slane %v1729_v52, %v7190_v51  ;;  %v1744_v61 = vcombine.high %v1736_v54, %v6428_v0 }
 0x5ad   : > { %v2021_v62 = vsel %vm1993_vm2, %v7291_v55, 0.0  ;;  %v7300_v63 = vpop.eup %5662  ;;  %v1717_v1 = vrot.slane %v1694_v48, %v7197_v58  ;;  %v1751_v5 = vrot.slane %v1736_v54, %v7197_v58 }
 0x5ae   : > { %v1724_v2 = vrot.slane %v1710_v59, %v7197_v58  ;;  %v1759_v3 = vcombine.high %v1743_v60, %v6428_v0  ;;  %v1778_v4 = vcombine.low %v1702_v56, %v1709_v57  ;;  %2022 = vadd.xlane.f32.xlu0 %v2021_v62  ;;  %v1758_v6 = vrot.slane %v1744_v61, %v7197_v58 }
 0x5af   : > { %v1766_v7 = vrot.slane %v1743_v60, %v7197_v58  ;;  %v4974_v27 = vcombine.high %v1702_v56, %v1709_v57  ;;  %v2024_v15 = vsel %vm1993_vm2, %v7300_v63, 0.0 }
 0x5b0   : > { %v1773_v8 = vrot.slane %v1759_v3, %v7197_v58  ;;  %v1785_v9 = vrot.slane %v1778_v4, %v7190_v51  ;;  %v1794_v10 = vcombine.low %v1717_v1, %v1724_v2  ;;  %v4975_v11 = vcombine.high %v1717_v1, %v1724_v2  ;;  %v5665_v16 = vpop.eup %5664 }
 0x5b1   : > { %v1793_v12 = vrot.slane %v4974_v27, %v7190_v51  ;;  %v1827_v13 = vcombine.low %v1751_v5, %v1758_v6  ;;  %v4976_v14 = vcombine.high %v1751_v5, %v1758_v6  ;;  %v2027_v32 = vsel %vm1993_vm2, %v5665_v16, 0.0 }
 0x5b2   : > { %v1801_v17 = vrot.slane %v1794_v10, %v7190_v51  ;;  %v1809_v18 = vrot.slane %v4975_v11, %v7190_v51  ;;  %v1843_v19 = vcombine.low %v1766_v7, %v1773_v8  ;;  %v4977_v20 = vcombine.high %v1766_v7, %v1773_v8  ;;  %2025 = vadd.xlane.f32.xlu0 %v2024_v15 }
 0x5b3   : > { %v1810_v22 = vcombine.low %v1785_v9, %v1793_v12  ;;  %v1834_v23 = vrot.slane %v1827_v13, %v7190_v51  ;;  %v1842_v24 = vrot.slane %v4976_v14, %v7190_v51 }
 0x5b4   : > { %v1850_v29 = vrot.slane %v1843_v19, %v7190_v51  ;;  %v1858_v30 = vrot.slane %v4977_v20, %v7190_v51  ;;  %v1818_v31 = vcombine.low %v1801_v17, %v1809_v18 }
 0x5b5   : > { %v1859_v33 = vcombine.low %v1834_v23, %v1842_v24  ;;  %v1817_v34 = vrot.slane %v1810_v22, %v7197_v58 }
 0x5b6   : > { %2028 = vadd.xlane.f32.xlu0 %v2027_v32  ;;  %v1825_v35 = vrot.slane %v1818_v31, %v7197_v58  ;;  %v1867_v36 = vcombine.low %v1850_v29, %v1858_v30 }
 0x5b7   : > { %v1866_v38 = vrot.slane %v1859_v33, %v7197_v58 }
 0x5b8   : > { %v1826_v37 = vcombine.low %v1817_v34, %v1825_v35  ;;  %v1874_v39 = vrot.slane %v1867_v36, %v7197_v58 }
 0x5ba   : > { %v1875_v40 = vcombine.low %v1866_v38, %v1874_v39  ;;  %v1880_v42 = vshrl.u32 %v1826_v37, 16 }
 0x5bc   : > { %v1878_v41 = vpack.i.b16 %v1875_v40, %v1826_v37  ;;  %v1881_v44 = vshrl.u32 %v1875_v40, 16 }
 0x5be   : > { %5221 = vmatpush3.bf16.msra.mxu0 %v1878_v41  ;;  %v1882_v45 = vpack.i.b16 %v1881_v44, %v1880_v42 }
 0x5bf   : > { %5232 = vmatprep.subr.bf16.mxu0 %v6429_v21 }
 0x5c0   : > { %5227 = vmatpush3.bf16.msra.mxu1 %v1882_v45 }
 0x637   : > { %v2020_v46 = vpop.xlane.xlu1 %2019 }
 0x638   : > { %5666 = vrcp.f32 %v2020_v46 }
 0x63b   : > { %v2023_v47 = vpop.xlane.xlu0 %2022 }
 0x63c   : > { %5668 = vrcp.f32 %v2023_v47 }
 0x63f   : > { %v2026_v48 = vpop.xlane.xlu0 %2025 }
 0x640   : > { %5670 = vrcp.f32 %v2026_v48 }
 0x642   : > { %v5667_v52 = vpop.eup %5666 }
 0x643   : > { %v2029_v49 = vpop.xlane.xlu0 %2028  ;;  %v2031_v56 = vmul.f32 %v5667_v52, %v7281_v43 }
 0x644   : > { %5672 = vrcp.f32 %v2029_v49 }
 0x646   : > { %v5669_v54 = vpop.eup %5668 }
 0x647   : > { %v2033_v57 = vmul.f32 %v5669_v54, %v7291_v55 }
 0x649   : > { %v2038_v59 = vpack.c.bf16 %v2033_v57, %v2031_v56 }
 0x64a   : > { %v5671_v60 = vpop.eup %5670 }
 0x64b   : > { %5223 = vmatmul.mubr.msk.bf16.vlgmr.msra.gmra.mrb[8].mxu0 %vm1993_vm2, %v2038_v59  ;;  %v2035_v62 = vmul.f32 %v5671_v60, %v7300_v63 }
 0x64c   : > { %5248 = vmatprep.mubr.msk.bf16.mxu0 %vm6431_vm0, %v6429_v21 }
 0x64e   : > { %v5673_v61 = vpop.eup %5672 }
 0x64f   : > { %v2037_v1 = vmul.f32 %v5673_v61, %v5665_v16 }
 0x651   : > { %v2039_v2 = vpack.c.bf16 %v2037_v1, %v2035_v62 }
 0x653   : > { %5229 = vmatmul.mubr.msk.bf16.vlgmr.msra.gmra.mrb[8].mxu1 %vm1993_vm2, %v2039_v2 }
 0x654   : > { %2673 = vmatprep.mubr.bf16.mxu1 %v6428_v0 }
 0x71e   : > { %v2077_v3 = vpop.f32.mrb[8].mxu0 }
 0x71f   : > { %v5224_v43 = vpop.f32.mrb[9].mxu0  ;;  %v2128_v5 = vcombine.high %v2077_v3, %v6429_v21  ;;  %v2135_v7 = vrot.slane %v2077_v3, %v7190_v51 }
 0x720   : > { %v2080_v4 = vpop.f32.mrb[10].mxu0 }
 0x721   : > { %v5225_v55 = vpop.f32.mrb[11].mxu0  ;;  %v2142_v9 = vrot.slane %v2128_v5, %v7190_v51  ;;  %v2194_v10 = vcombine.high %v2080_v4, %v6429_v21  ;;  %v2201_v17 = vrot.slane %v2080_v4, %v7190_v51 }
 0x723   : > { %v2208_v24 = vrot.slane %v2194_v10, %v7190_v51 }
 0x726   : > { %v2121_v6 = vpop.f32.mrb[8].mxu1 }
 0x727   : > { %v2143_v27 = vcombine.high %v2121_v6, %v6429_v21  ;;  %v2150_v8 = vrot.slane %v2121_v6, %v7190_v51  ;;  %v5230_v63 = vpop.f32.mrb[9].mxu1  ;;  %v5546_v6 = vld [vmem:[#allocation19] ss:$8 sps:$4 sm:$0xff]  }
 0x728   : > { %v2124_v11 = vpop.f32.mrb[10].mxu1  ;;  %v5551_v63 = vld [vmem:[#allocation19 + $0x14] ss:$8 sps:$4 sm:$0xff]  }
 0x729   : > { %v2157_v12 = vrot.slane %v2143_v27, %v7190_v51  ;;  %v2158_v13 = vcombine.low %v2135_v7, %v2150_v8  ;;  %v2159_v14 = vcombine.high %v2135_v7, %v2150_v8  ;;  %v2209_v15 = vcombine.high %v2124_v11, %v6429_v21  ;;  %v5231_v16 = vpop.f32.mrb[11].mxu1  ;;  %v5548_v7 = vld [vmem:[#allocation19 + $0x4] ss:$8 sps:$4 sm:$0xff]  }
 0x72a   : > { %v2216_v18 = vrot.slane %v2124_v11, %v7190_v51  ;;  %2641 = vmatprep.subr.bf16.mxu1 %v5548_v7  ;;  %v5549_v11 = vld [vmem:[#allocation19 + $0x10] ss:$8 sps:$4 sm:$0xff]   ;;  %v5560_v16 = vld [vmem:[#allocation19 + $0x44] ss:$8 sps:$4 sm:$0xff]  }
 0x72b   : > { %v2166_v19 = vrot.slane %v2158_v13, %v7197_v58  ;;  %v2173_v20 = vrot.slane %v2159_v14, %v7197_v58  ;;  %v2174_v22 = vcombine.low %v2142_v9, %v2157_v12  ;;  %v2175_v23 = vcombine.high %v2142_v9, %v2157_v12  ;;  %2642 = vmatpush1.bf16.msra.mxu1 %v5546_v6  ;;  %v5554_v12 = vld [vmem:[#allocation19 + $0x24] ss:$8 sps:$4 sm:$0xff]   ;;  %v5552_v13 = vld [vmem:[#allocation19 + $0x20] ss:$8 sps:$4 sm:$0xff]   ;;  %v5557_v14 = vld [vmem:[#allocation19 + $0x34] ss:$8 sps:$4 sm:$0xff]  }
 0x72c   : > { %v2223_v29 = vrot.slane %v2209_v15, %v7190_v51  ;;  %v2224_v30 = vcombine.low %v2201_v17, %v2216_v18  ;;  %v2225_v31 = vcombine.high %v2201_v17, %v2216_v18  ;;  %2643 = vmatprep.subr.bf16.mxu1 %v5551_v63  ;;  %v5555_v15 = vld [vmem:[#allocation19 + $0x30] ss:$8 sps:$4 sm:$0xff]   ;;  %v5558_v17 = vld [vmem:[#allocation19 + $0x40] ss:$8 sps:$4 sm:$0xff]   ;;  %v5563_v18 = vld [vmem:[#allocation19 + $0x54] ss:$8 sps:$4 sm:$0xff]  }
 0x72d   : > { %v2182_v32 = vrot.slane %v2174_v22, %v7197_v58  ;;  %v2189_v33 = vrot.slane %v2175_v23, %v7197_v58  ;;  %v2260_v34 = vcombine.low %v2166_v19, %v2173_v20  ;;  %v4982_v35 = vcombine.high %v2166_v19, %v2173_v20  ;;  %v5561_v19 = vld [vmem:[#allocation19 + $0x50] ss:$8 sps:$4 sm:$0xff]   ;;  %v5566_v20 = vld [vmem:[#allocation19 + $0x64] ss:$8 sps:$4 sm:$0xff]   ;;  %v5564_v22 = vld [vmem:[#allocation19 + $0x60] ss:$8 sps:$4 sm:$0xff]  }
 0x72e   : > { %v2232_v36 = vrot.slane %v2224_v30, %v7197_v58  ;;  %v2239_v37 = vrot.slane %v2225_v31, %v7197_v58  ;;  %v2240_v38 = vcombine.low %v2208_v24, %v2223_v29  ;;  %v2241_v39 = vcombine.high %v2208_v24, %v2223_v29  ;;  %v5569_v23 = vld [vmem:[#allocation19 + $0x74] ss:$8 sps:$4 sm:$0xff]   ;;  %v5567_v24 = vld [vmem:[#allocation19 + $0x70] ss:$8 sps:$4 sm:$0xff]  }
 0x72f   : > { %v2267_v40 = vrot.slane %v2260_v34, %v7190_v51  ;;  %v2275_v41 = vrot.slane %v4982_v35, %v7190_v51  ;;  %v2276_v42 = vcombine.low %v2182_v32, %v2189_v33  ;;  %v4983_v44 = vcombine.high %v2182_v32, %v2189_v33  ;;  %2644 = vmatpush1.bf16.msra.mxu1 %v5549_v11  ;;  %v2530_v29 = vld [vmem:[%s813_s23] sm:$0xff]  ;;  %v2531_v30 = vld [vmem:[%s813_s23 + $0x8] sm:$0xff] }
 0x730   : > { %v2248_v45 = vrot.slane %v2240_v38, %v7197_v58  ;;  %v2255_v46 = vrot.slane %v2241_v39, %v7197_v58  ;;  %v2310_v47 = vcombine.low %v2232_v36, %v2239_v37  ;;  %v4984_v48 = vcombine.high %v2232_v36, %v2239_v37  ;;  %2645 = vmatprep.subr.bf16.mxu1 %v5554_v12  ;;  %v5718_v34 = vld [vmem:[%s7100_s27] sm:$0xff]  ;;  %v5719_v38 = vld [vmem:[%s7100_s27 + $0x8] sm:$0xff] }
 0x731   : > { %v2283_v49 = vrot.slane %v2276_v42, %v7190_v51  ;;  %v2291_v52 = vrot.slane %v4983_v44, %v7190_v51  ;;  %v2292_v54 = vcombine.low %v2267_v40, %v2275_v41  ;;  %v2532_v31 = vpack.c.bf16 %v2531_v30, %v2530_v29  ;;  %v5570_v42 = vld [vmem:[#allocation16] sm:$0xff]   ;;  %v5571_v44 = vld [vmem:[#allocation16 + $0x8] sm:$0xff]   ;;  %v4987_v30 = vld [vmem:[#allocation14] ss:$0 sm:$0xff] }
 0x732   : > { %v2317_v56 = vrot.slane %v2310_v47, %v7190_v51  ;;  %v2325_v57 = vrot.slane %v4984_v48, %v7190_v51  ;;  %v2326_v59 = vcombine.low %v2248_v45, %v2255_v46  ;;  %v4985_v60 = vcombine.high %v2248_v45, %v2255_v46  ;;  %5233 = vmatpush3.bf16.msra.mxu0 %v5570_v42  ;;  %v5572_v45 = vld [vmem:[#allocation16 + $0x10] sm:$0xff]   ;;  %v5573_v46 = vld [vmem:[#allocation16 + $0x18] sm:$0xff]   ;;  %v5574_v47 = vld [vmem:[#allocation16 + $0x20] sm:$0xff]  }
 0x733   : > { %v2300_v61 = vcombine.low %v2283_v49, %v2291_v52  ;;  %v2299_v3 = vrot.slane %v2292_v54, %v7197_v58  ;;  %2646 = vmatpush1.bf16.msra.mxu1 %v5552_v13  ;;  %5234 = vmatprep.subr.bf16.mxu0 %v6429_v21  ;;  %v5575_v48 = vld [vmem:[#allocation16 + $0x28] sm:$0xff]   ;;  %v5576_v49 = vld [vmem:[#allocation16 + $0x30] sm:$0xff]   ;;  %v5577_v52 = vld [vmem:[#allocation16 + $0x38] sm:$0xff]  }
 0x734   : > { %v2333_v62 = vrot.slane %v2326_v59, %v7190_v51  ;;  %v2341_v1 = vrot.slane %v4985_v60, %v7190_v51  ;;  %v2342_v2 = vcombine.low %v2317_v56, %v2325_v57  ;;  %2647 = vmatprep.subr.bf16.mxu1 %v5557_v14  ;;  %v2549_v54 = vld [vmem:[#allocation20] sm:$0x3] }
 0x735   : > { %v2307_v43 = vrot.slane %v2300_v61, %v7197_v58  ;;  %v2554_v56 = vrot.slane %v2549_v54, %v7165_v26  ;;  %v2558_v57 = vrot.slane %v2549_v54, %v7170_v28 }
 0x736   : > { %v2350_v4 = vcombine.low %v2333_v62, %v2341_v1  ;;  %v2349_v27 = vrot.slane %v2342_v2, %v7197_v58  ;;  %5235 = vmatpush3.bf16.msra.mxu0 %v5571_v44 }
 0x737   : > { %v2309_v55 = vcombine.high %v2299_v3, %v2307_v43  ;;  %v2308_v5 = vcombine.low %v2299_v3, %v2307_v43  ;;  %2648 = vmatpush1.bf16.msra.mxu1 %v5555_v15  ;;  %5236 = vmatprep.subr.bf16.mxu0 %v6429_v21 }
 0x738   : > { %v2357_v8 = vrot.slane %v2350_v4, %v7197_v58  ;;  %2649 = vmatprep.subr.bf16.mxu1 %v5560_v16 }
 0x739   : > { %2362 = vrot.lane.b32.xlu0 %v2309_v55, %s6430_s30 }
 0x73a   : > { %v2359_v9 = vcombine.high %v2349_v27, %v2357_v8  ;;  %v2358_v10 = vcombine.low %v2349_v27, %v2357_v8  ;;  %5237 = vmatpush3.bf16.msra.mxu0 %v5572_v45 }
 0x73b   : > { %2650 = vmatpush1.bf16.msra.mxu1 %v5558_v17  ;;  %5238 = vmatprep.subr.bf16.mxu0 %v6429_v21 }
 0x73c   : > { %2364 = vrot.lane.b32.xlu1 %v2359_v9, %s6430_s30  ;;  %2651 = vmatprep.subr.bf16.mxu1 %v5563_v18 }
 0x73e   : > { %5239 = vmatpush3.bf16.msra.mxu0 %v5573_v46 }
 0x73f   : > { %2652 = vmatpush1.bf16.msra.mxu1 %v5561_v19  ;;  %5240 = vmatprep.subr.bf16.mxu0 %v6429_v21 }
 0x740   : > { %2653 = vmatprep.subr.bf16.mxu1 %v5566_v20  ;;  %v4986_v20 = vld [vmem:[#allocation13] ss:$0 sm:$0xff] }
 0x742   : > { %5241 = vmatpush3.bf16.msra.mxu0 %v5574_v47 }
 0x743   : > { %2654 = vmatpush1.bf16.msra.mxu1 %v5564_v22  ;;  %5242 = vmatprep.subr.bf16.mxu0 %v6429_v21 }
 0x744   : > { %2655 = vmatprep.subr.bf16.mxu1 %v5569_v23 }
 0x746   : > { %5243 = vmatpush3.bf16.msra.mxu0 %v5575_v48 }
 0x747   : > { %2656 = vmatpush1.bf16.msra.mxu1 %v5567_v24  ;;  %5244 = vmatprep.subr.bf16.mxu0 %v6429_v21 }
 0x748   : > { %5258 = vmatprep.subr.bf16.mxu1 %v6429_v21 }
 0x74a   : > { %2674 = vmatmul.mubr.bf16.vlgmr.msra.gmra.mrb[12].mxu1 %v2532_v31  ;;  %5245 = vmatpush3.bf16.msra.mxu0 %v5576_v49 }
 0x74b   : > { %5260 = vmatprep.mubr.msk.bf16.mxu1 %vm6431_vm0, %v6429_v21  ;;  %5246 = vmatprep.subr.bf16.mxu0 %v6429_v21 }
 0x74e   : > { %5247 = vmatpush3.bf16.msra.mxu0 %v5577_v52 }
 0x74f   : > { %5252 = vmatprep.subr.bf16.mxu0 %v6429_v21 }
 0x7ab   : > { %v2363_v32 = vpop.permute.xlu0 %2362 }
 0x7ac   : > { %v2368_v33 = vsel %vm1884_vm1, %v2308_v5, %v2363_v32 }
 0x7ad   : > { %v7376_v35 = vadd.f32 %v5718_v34, %v2368_v33 }
 0x7ae   : > { %v2365_v36 = vpop.permute.xlu1 %2364 }
 0x7af   : > { %v2369_v37 = vsel %vm1884_vm1, %v2358_v10, %v2365_v36  ;;  %2374 = vadd.xlane.f32.xlu0 %v7376_v35  ;;  %v2381_v40 = vmul.f32 %v7376_v35, %v7376_v35 }
 0x7b0   : > { %v7381_v39 = vadd.f32 %v5719_v38, %v2369_v37 }
 0x7b2   : > { %2376 = vadd.xlane.f32.xlu1 %v7381_v39  ;;  %v2382_v41 = vmul.f32 %v7381_v39, %v7381_v39 }
 0x7b3   : > { %2383 = vadd.xlane.f32.xlu0 %v2381_v40 }
 0x7b7   : > { %2385 = vadd.xlane.f32.xlu0 %v2382_v41 }
 0x81d   : > { %v2675_v59 = vpop.f32.mrb[12].mxu1 }
 0x81e   : > { %v2676_v60 = vadd.f32 %v2675_v59, %v2554_v56  ;;  %v2677_v61 = vpop.f32.mrb[13].mxu1 }
 0x81f   : > { %v2678_v62 = vadd.f32 %v2677_v61, %v2558_v57  ;;  %v2679_v1 = vpop.f32.mrb[14].mxu1 }
 0x820   : > { %v2680_v2 = vadd.f32 %v2679_v1, %v2554_v56  ;;  %v2681_v43 = vpop.f32.mrb[15].mxu1 }
 0x821   : > { %v2682_v4 = vadd.f32 %v2681_v43, %v2558_v57 }
 0x822   : > { %v2898_v3 = vpack.c.bf16 %v2680_v2, %v2676_v60 }
 0x823   : > { %v7399_v55 = vpack.c.bf16 %v2682_v4, %v2678_v62 }
 0x824   : > { %2900 = vrot.lane.b32.xlu0 %v2898_v3, %s6430_s30 }
 0x83c   : > { %v2375_v5 = vpop.xlane.xlu0 %2374 }
 0x83d   : > { %v2379_v6 = vmul.f32 0.0078125, %v2375_v5 }
 0x83f   : > { %v2377_v7 = vpop.xlane.xlu1 %2376  ;;  %v2389_v8 = vmul.f32 %v2379_v6, %v2379_v6  ;;  %v2393_v17 = vsub.f32 %v7376_v35, %v2379_v6  ;;  %v2906_v35 = vshrl.u32 %v2898_v3, 16 }
 0x840   : > { %v2384_v27 = vpop.xlane.xlu0 %2383  ;;  %v2380_v63 = vmul.f32 0.0078125, %v2377_v7 }
 0x841   : > { %v2387_v9 = vmul.f32 0.0078125, %v2384_v27 }
 0x842   : > { %v2390_v12 = vmul.f32 %v2380_v63, %v2380_v63  ;;  %v2394_v22 = vsub.f32 %v7381_v39, %v2380_v63 }
 0x843   : > { %v2391_v10 = vsub.f32 %v2387_v9, %v2389_v8 }
 0x844   : > { %v2386_v11 = vpop.xlane.xlu0 %2385 }
 0x845   : > { %v2395_v13 = vadd.f32 1e-12, %v2391_v10  ;;  %v2388_v14 = vmul.f32 0.0078125, %v2386_v11 }
 0x847   : > { %5674 = vrsqrt.f32 %v2395_v13  ;;  %v2392_v15 = vsub.f32 %v2388_v14, %v2390_v12 }
 0x849   : > { %v2396_v16 = vadd.f32 1e-12, %v2392_v15 }
 0x84b   : > { %5676 = vrsqrt.f32 %v2396_v16 }
 0x851   : > { %v5675_v18 = vpop.eup %5674 }
 0x852   : > { %v2399_v19 = vmul.f32 %v5675_v18, %v2393_v17 }
 0x854   : > { %v2407_v29 = vmul.f32 %v4986_v20, %v2399_v19 }
 0x855   : > { %v5677_v23 = vpop.eup %5676 }
 0x856   : > { %v2400_v24 = vmul.f32 %v5677_v23, %v2394_v22  ;;  %v7403_v32 = vadd.f32 %v4987_v30, %v2407_v29 }
 0x858   : > { %v2408_v31 = vmul.f32 %v4986_v20, %v2400_v24 }
 0x85a   : > { %v7405_v33 = vadd.f32 %v4987_v30, %v2408_v31 }
 0x85c   : > { %v2417_v34 = vpack.c.bf16 %v7405_v33, %v7403_v32 }
 0x85e   : > { %5249 = vmatmul.mubr.bf16.vlgmr.msra.gmra.mrb[12].mxu0 %v2417_v34 }
 0x85f   : > { %5254 = vmatprep.mubr.msk.bf16.mxu0 %vm6431_vm0, %v6429_v21 }
 0x896   : > { %v2901_v36 = vpop.permute.xlu0 %2900 }
 0x897   : > { %v2904_v37 = vpack.i.b16 %v2901_v36, %v2898_v3  ;;  %v2907_v38 = vshrl.u32 %v2901_v36, 16 }
 0x899   : > { %v2908_v39 = vpack.i.b16 %v2907_v38, %v2906_v35  ;;  %v2910_v40 = vcombine.high %v2904_v37, %v7194_v53  ;;  %v2917_v41 = vrot.slane %v2904_v37, %v7190_v51  ;;  %v4988_v38 = vld [vmem:[#allocation17] ss:$0 sm:$0xff] }
 0x89b   : > { %v2924_v42 = vrot.slane %v2910_v40, %v7190_v51  ;;  %v2925_v44 = vcombine.high %v2917_v41, %v6428_v0  ;;  %v2959_v45 = vcombine.high %v2908_v39, %v7194_v53  ;;  %v2932_v46 = vrot.slane %v2917_v41, %v7197_v58 }
 0x89c   : > { %v2966_v47 = vrot.slane %v2908_v39, %v7190_v51 }
 0x89d   : > { %v2939_v48 = vrot.slane %v2925_v44, %v7197_v58  ;;  %v2940_v49 = vcombine.high %v2924_v42, %v6428_v0  ;;  %v2947_v52 = vrot.slane %v2924_v42, %v7197_v58  ;;  %v2973_v54 = vrot.slane %v2959_v45, %v7190_v51 }
 0x89e   : > { %v2974_v56 = vcombine.high %v2966_v47, %v6428_v0  ;;  %v2981_v57 = vrot.slane %v2966_v47, %v7197_v58 }
 0x89f   : > { %v2954_v59 = vrot.slane %v2940_v49, %v7197_v58  ;;  %v2989_v60 = vcombine.high %v2973_v54, %v6428_v0  ;;  %v2996_v62 = vrot.slane %v2973_v54, %v7197_v58  ;;  %v3008_v1 = vcombine.low %v2932_v46, %v2939_v48 }
 0x8a0   : > { %v2988_v61 = vrot.slane %v2974_v56, %v7197_v58  ;;  %v5017_v2 = vcombine.high %v2932_v46, %v2939_v48 }
 0x8a1   : > { %v3003_v3 = vrot.slane %v2989_v60, %v7197_v58  ;;  %v3024_v43 = vcombine.low %v2947_v52, %v2954_v59  ;;  %v5018_v4 = vcombine.high %v2947_v52, %v2954_v59  ;;  %v3015_v7 = vrot.slane %v3008_v1, %v7190_v51 }
 0x8a2   : > { %v3057_v5 = vcombine.low %v2981_v57, %v2988_v61  ;;  %v5019_v6 = vcombine.high %v2981_v57, %v2988_v61  ;;  %v3023_v27 = vrot.slane %v5017_v2, %v7190_v51 }
 0x8a3   : > { %v3073_v8 = vcombine.low %v2996_v62, %v3003_v3  ;;  %v5020_v63 = vcombine.high %v2996_v62, %v3003_v3  ;;  %v3031_v9 = vrot.slane %v3024_v43, %v7190_v51  ;;  %v3039_v10 = vrot.slane %v5018_v4, %v7190_v51 }
 0x8a4   : > { %v3064_v11 = vrot.slane %v3057_v5, %v7190_v51  ;;  %v3072_v12 = vrot.slane %v5019_v6, %v7190_v51  ;;  %v3040_v15 = vcombine.low %v3015_v7, %v3023_v27 }
 0x8a5   : > { %v3080_v13 = vrot.slane %v3073_v8, %v7190_v51  ;;  %v3088_v14 = vrot.slane %v5020_v63, %v7190_v51  ;;  %v3048_v16 = vcombine.low %v3031_v9, %v3039_v10 }
 0x8a6   : > { %v3089_v17 = vcombine.low %v3064_v11, %v3072_v12  ;;  %v3047_v19 = vrot.slane %v3040_v15, %v7197_v58 }
 0x8a7   : > { %v3097_v18 = vcombine.low %v3080_v13, %v3088_v14  ;;  %v3055_v20 = vrot.slane %v3048_v16, %v7197_v58 }
 0x8a8   : > { %v3096_v22 = vrot.slane %v3089_v17, %v7197_v58 }
 0x8a9   : > { %v3104_v23 = vrot.slane %v3097_v18, %v7197_v58  ;;  %v3056_v24 = vcombine.low %v3047_v19, %v3055_v20 }
 0x8ab   : > { %v3105_v29 = vcombine.low %v3096_v22, %v3104_v23  ;;  %v3109_v30 = vshrl.u32 %v3056_v24, 16 }
 0x8ad   : > { %v3108_v31 = vpack.i.b16 %v3105_v29, %v3056_v24  ;;  %v3110_v34 = vshrl.u32 %v3105_v29, 16 }
 0x8af   : > { %v3332_v35 = vsel %vm1884_vm1, %v3108_v31, 0  ;;  %v3111_v36 = vpack.i.b16 %v3110_v34, %v3109_v30 }
 0x8b0   : > { %5253 = vmatpush3.bf16.xpose.msra.mxu0 %v3332_v35 }
 0x8b1   : > { %v3379_v37 = vsel %vm1884_vm1, %v3111_v36, 0  ;;  %5264 = vmatprep.subr.bf16.mxu0 %v6429_v21 }
 0x8b2   : > { %5259 = vmatpush3.bf16.xpose.msra.mxu1 %v3379_v37 }
 0x8b3   : > { %5270 = vmatprep.subr.bf16.mxu1 %v6429_v21 }
 0x931   : > { %v2523_v39 = vpop.f32.mrb[12].mxu0 }
 0x932   : > { %v5250_v40 = vpop.f32.mrb[13].mxu0  ;;  %v2524_v42 = vadd.f32 %v4988_v38, %v2523_v39 }
 0x933   : > { %v2526_v41 = vpop.f32.mrb[14].mxu0 }
 0x934   : > { %v2527_v44 = vadd.f32 %v4988_v38, %v2526_v41  ;;  %v5251_v45 = vpop.f32.mrb[15].mxu0 }
 0x936   : > { %v2684_v46 = vpack.c.bf16 %v2527_v44, %v2524_v42 }
 0x938   : > { %2686 = vrot.lane.b32.xlu1 %v2684_v46, %s6430_s30  ;;  %v2692_v49 = vshrl.u32 %v2684_v46, 16 }
 0x9aa   : > { %v2687_v47 = vpop.permute.xlu1 %2686 }
 0x9ab   : > { %v2690_v48 = vpack.i.b16 %v2687_v47, %v2684_v46  ;;  %v2693_v52 = vshrl.u32 %v2687_v47, 16 }
 0x9ad   : > { %v2694_v54 = vpack.i.b16 %v2693_v52, %v2692_v49  ;;  %v2696_v56 = vcombine.high %v2690_v48, %v7194_v53  ;;  %v2703_v57 = vrot.slane %v2690_v48, %v7190_v51  ;;  %v969_v48 = vld [vmem:[%s829_s11] sm:$0x1] }
 0x9ae   : > { %v970_v49 = vsub.f32 1.0, %v969_v48 }
 0x9af   : > { %v2710_v59 = vrot.slane %v2696_v56, %v7190_v51  ;;  %v2711_v60 = vcombine.high %v2703_v57, %v6428_v0  ;;  %v2745_v61 = vcombine.high %v2694_v54, %v7194_v53  ;;  %v2752_v62 = vrot.slane %v2694_v54, %v7190_v51 }
 0x9b0   : > { %v2718_v1 = vrot.slane %v2703_v57, %v7197_v58  ;;  %v971_v52 = vmul.f32 10000.0, %v970_v49 }
 0x9b1   : > { %v2725_v2 = vrot.slane %v2711_v60, %v7197_v58  ;;  %v2726_v3 = vcombine.high %v2710_v59, %v6428_v0  ;;  %v2759_v43 = vrot.slane %v2745_v61, %v7190_v51  ;;  %v2760_v4 = vcombine.high %v2752_v62, %v6428_v0 }
 0x9b2   : > { %v2733_v5 = vrot.slane %v2710_v59, %v7197_v58  ;;  %v2767_v8 = vrot.slane %v2752_v62, %v7197_v58  ;;  %v3430_v54 = vrot.slane %v971_v52, %v7165_v26 }
 0x9b3   : > { %v2740_v6 = vrot.slane %v2726_v3, %v7197_v58  ;;  %v2775_v7 = vcombine.high %v2759_v43, %v6428_v0  ;;  %v2794_v27 = vcombine.low %v2718_v1, %v2725_v2  ;;  %v2774_v63 = vrot.slane %v2760_v4, %v7197_v58 }
 0x9b4   : > { %v2782_v9 = vrot.slane %v2759_v43, %v7197_v58  ;;  %v5013_v10 = vcombine.high %v2718_v1, %v2725_v2 }
 0x9b5   : > { %v2789_v11 = vrot.slane %v2775_v7, %v7197_v58  ;;  %v2801_v12 = vrot.slane %v2794_v27, %v7190_v51  ;;  %v2810_v13 = vcombine.low %v2733_v5, %v2740_v6  ;;  %v5014_v14 = vcombine.high %v2733_v5, %v2740_v6 }
 0x9b6   : > { %v2809_v15 = vrot.slane %v5013_v10, %v7190_v51  ;;  %v2843_v16 = vcombine.low %v2767_v8, %v2774_v63  ;;  %v5015_v17 = vcombine.high %v2767_v8, %v2774_v63 }
 0x9b7   : > { %v2817_v18 = vrot.slane %v2810_v13, %v7190_v51  ;;  %v2825_v19 = vrot.slane %v5014_v14, %v7190_v51  ;;  %v2859_v20 = vcombine.low %v2782_v9, %v2789_v11  ;;  %v5016_v22 = vcombine.high %v2782_v9, %v2789_v11 }
 0x9b8   : > { %v2826_v23 = vcombine.low %v2801_v12, %v2809_v15  ;;  %v2850_v24 = vrot.slane %v2843_v16, %v7190_v51  ;;  %v2858_v29 = vrot.slane %v5015_v17, %v7190_v51 }
 0x9b9   : > { %v2834_v30 = vcombine.low %v2817_v18, %v2825_v19  ;;  %v2866_v31 = vrot.slane %v2859_v20, %v7190_v51  ;;  %v2874_v34 = vrot.slane %v5016_v22, %v7190_v51  ;;  %v3120_v20 = vshrl.u32 %v7399_v55, 16 }
 0x9ba   : > { %v2875_v35 = vcombine.low %v2850_v24, %v2858_v29  ;;  %v2833_v36 = vrot.slane %v2826_v23, %v7197_v58 }
 0x9bb   : > { %v2841_v37 = vrot.slane %v2834_v30, %v7197_v58  ;;  %v2883_v38 = vcombine.low %v2866_v31, %v2874_v34 }
 0x9bc   : > { %v2882_v39 = vrot.slane %v2875_v35, %v7197_v58 }
 0x9bd   : > { %v2842_v40 = vcombine.low %v2833_v36, %v2841_v37  ;;  %v2890_v41 = vrot.slane %v2883_v38, %v7197_v58 }
 0x9bf   : > { %v2891_v42 = vcombine.low %v2882_v39, %v2890_v41  ;;  %v2895_v45 = vshrl.u32 %v2842_v40, 16 }
 0x9c1   : > { %v2894_v44 = vpack.i.b16 %v2891_v42, %v2842_v40  ;;  %v2896_v46 = vshrl.u32 %v2891_v42, 16 }
 0x9c3   : > { %5255 = vmatmul.mubr.msk.bf16.vlgmr.msra.gmra.mrb[16].mxu0 %vm1884_vm1, %v2894_v44  ;;  %v2897_v47 = vpack.i.b16 %v2896_v46, %v2895_v45 }
 0x9c4   : > { %5266 = vmatprep.mubr.msk.bf16.mxu0 %vm6431_vm0, %v6429_v21 }
 0x9c5   : > { %5261 = vmatmul.mubr.msk.bf16.vlgmr.msra.gmra.mrb[16].mxu1 %vm1884_vm1, %v2897_v47 }
 0x9c6   : > { %5272 = vmatprep.mubr.msk.bf16.mxu1 %vm6431_vm0, %v6429_v21 }
 0xa96   : > { %v3368_v56 = vpop.f32.mrb[16].mxu0 }
 0xa97   : > { %v3422_v57 = vmul.f32 0.125, %v3368_v56  ;;  %v5256_v59 = vpop.f32.mrb[17].mxu0 }
 0xa98   : > { %v3371_v60 = vpop.f32.mrb[18].mxu0  ;;  %v3415_v61 = vpop.f32.mrb[16].mxu1 }
 0xa99   : > { %v3423_v62 = vmul.f32 0.125, %v3371_v60  ;;  %v3424_v1 = vmul.f32 0.125, %v3415_v61  ;;  %v5257_v2 = vpop.f32.mrb[19].mxu0  ;;  %v5262_v3 = vpop.f32.mrb[17].mxu1  ;;  %v3432_v43 = vsub.f32 %v3422_v57, %v3430_v54 }
 0xa9a   : > { %v3418_v4 = vpop.f32.mrb[18].mxu1 }
 0xa9b   : > { %v3425_v5 = vmul.f32 0.125, %v3418_v4  ;;  %v5263_v6 = vpop.f32.mrb[19].mxu1  ;;  %v3436_v7 = vsel %vm1993_vm2, %v3432_v43, -inf  ;;  %v3433_v27 = vsub.f32 %v3423_v62, %v3430_v54  ;;  %v3434_v8 = vsub.f32 %v3424_v1, %v3430_v54 }
 0xa9c   : > { %3437 = vmax.xlane.f32.xlu0 %v3436_v7 }
 0xa9d   : > { %v3439_v63 = vsel %vm1993_vm2, %v3433_v27, -inf  ;;  %v3442_v9 = vsel %vm1993_vm2, %v3434_v8, -inf  ;;  %v3435_v10 = vsub.f32 %v3425_v5, %v3430_v54 }
 0xa9e   : > { %3440 = vmax.xlane.f32.xlu1 %v3439_v63 }
 0xa9f   : > { %v3445_v11 = vsel %vm1993_vm2, %v3435_v10, -inf }
 0xaa0   : > { %3443 = vmax.xlane.f32.xlu0 %v3442_v9 }
 0xaa4   : > { %3446 = vmax.xlane.f32.xlu0 %v3445_v11 }
 0xaaf   : > { %3114 = vrot.lane.b32.xlu1 %v7399_v55, %s6430_s30 }
 0xb29   : > { %v3438_v12 = vpop.xlane.xlu0 %3437 }
 0xb2a   : > { %v3448_v13 = vsub.f32 %v3432_v43, %v3438_v12 }
 0xb2b   : > { %v3441_v14 = vpop.xlane.xlu1 %3440 }
 0xb2c   : > { %v3452_v15 = vmul.f32 1.442695, %v3448_v13  ;;  %v3449_v16 = vsub.f32 %v3433_v27, %v3441_v14 }
 0xb2d   : > { %v3444_v17 = vpop.xlane.xlu0 %3443 }
 0xb2e   : > { %5678 = vpow2.f32 %v3452_v15  ;;  %v3454_v18 = vmul.f32 1.442695, %v3449_v16  ;;  %v3450_v19 = vsub.f32 %v3434_v8, %v3444_v17 }
 0xb2f   : > { %v3115_v22 = vpop.permute.xlu1 %3114 }
 0xb30   : > { %5680 = vpow2.f32 %v3454_v18  ;;  %v3456_v23 = vmul.f32 1.442695, %v3450_v19  ;;  %v3118_v24 = vpack.i.b16 %v3115_v22, %v7399_v55  ;;  %v3121_v29 = vshrl.u32 %v3115_v22, 16 }
 0xb31   : > { %v3447_v30 = vpop.xlane.xlu0 %3446 }
 0xb32   : > { %v3122_v31 = vpack.i.b16 %v3121_v29, %v3120_v20  ;;  %v3124_v34 = vcombine.high %v3118_v24, %v7194_v53  ;;  %v3131_v35 = vrot.slane %v3118_v24, %v7190_v51  ;;  %v3451_v36 = vsub.f32 %v3435_v10, %v3447_v30 }
 0xb33   : > { %5682 = vpow2.f32 %v3456_v23 }
 0xb34   : > { %v3138_v37 = vrot.slane %v3124_v34, %v7190_v51  ;;  %v3139_v38 = vcombine.high %v3131_v35, %v6428_v0  ;;  %v3173_v39 = vcombine.high %v3122_v31, %v7194_v53  ;;  %v3180_v40 = vrot.slane %v3122_v31, %v7190_v51 }
 0xb35   : > { %v3458_v41 = vmul.f32 1.442695, %v3451_v36  ;;  %v3146_v55 = vrot.slane %v3131_v35, %v7197_v58 }
 0xb36   : > { %v3153_v42 = vrot.slane %v3139_v38, %v7197_v58  ;;  %v3154_v44 = vcombine.high %v3138_v37, %v6428_v0  ;;  %v3187_v45 = vrot.slane %v3173_v39, %v7190_v51  ;;  %v3161_v46 = vrot.slane %v3138_v37, %v7197_v58 }
 0xb37   : > { %v3188_v47 = vcombine.high %v3180_v40, %v6428_v0  ;;  %v3195_v48 = vrot.slane %v3180_v40, %v7197_v58  ;;  %5684 = vpow2.f32 %v3458_v41 }
 0xb38   : > { %v5679_v49 = vpop.eup %5678  ;;  %v3168_v53 = vrot.slane %v3154_v44, %v7197_v58  ;;  %v3203_v52 = vcombine.high %v3187_v45, %v6428_v0  ;;  %v3222_v54 = vcombine.low %v3146_v55, %v3153_v42  ;;  %v3210_v57 = vrot.slane %v3187_v45, %v7197_v58 }
 0xb39   : > { %v3202_v56 = vrot.slane %v3188_v47, %v7197_v58  ;;  %v5021_v59 = vcombine.high %v3146_v55, %v3153_v42  ;;  %v3460_v60 = vsel %vm1993_vm2, %v5679_v49, 0.0 }
 0xb3a   : > { %v5681_v61 = vpop.eup %5680  ;;  %v3217_v62 = vrot.slane %v3203_v52, %v7197_v58  ;;  %v3229_v1 = vrot.slane %v3222_v54, %v7190_v51  ;;  %v3238_v2 = vcombine.low %v3161_v46, %v3168_v53  ;;  %v5022_v3 = vcombine.high %v3161_v46, %v3168_v53  ;;  %3461 = vadd.xlane.f32.xlu0 %v3460_v60 }
 0xb3b   : > { %v3237_v43 = vrot.slane %v5021_v59, %v7190_v51  ;;  %v3271_v4 = vcombine.low %v3195_v48, %v3202_v56  ;;  %v5023_v5 = vcombine.high %v3195_v48, %v3202_v56  ;;  %v3463_v11 = vsel %vm1993_vm2, %v5681_v61, 0.0 }
 0xb3c   : > { %v3245_v6 = vrot.slane %v3238_v2, %v7190_v51  ;;  %v3253_v7 = vrot.slane %v5022_v3, %v7190_v51  ;;  %v3287_v27 = vcombine.low %v3210_v57, %v3217_v62  ;;  %v5024_v8 = vcombine.high %v3210_v57, %v3217_v62 }
 0xb3d   : > { %v3254_v63 = vcombine.low %v3229_v1, %v3237_v43  ;;  %v3278_v9 = vrot.slane %v3271_v4, %v7190_v51  ;;  %v3286_v10 = vrot.slane %v5023_v5, %v7190_v51  ;;  %v5683_v12 = vpop.eup %5682 }
 0xb3e   : > { %v3294_v13 = vrot.slane %v3287_v27, %v7190_v51  ;;  %v3302_v14 = vrot.slane %v5024_v8, %v7190_v51  ;;  %3464 = vadd.xlane.f32.xlu0 %v3463_v11  ;;  %v3262_v15 = vcombine.low %v3245_v6, %v3253_v7  ;;  %v3466_v20 = vsel %vm1993_vm2, %v5683_v12, 0.0 }
 0xb3f   : > { %v3303_v16 = vcombine.low %v3278_v9, %v3286_v10  ;;  %v3261_v17 = vrot.slane %v3254_v63, %v7197_v58 }
 0xb40   : > { %v3269_v18 = vrot.slane %v3262_v15, %v7197_v58  ;;  %v3311_v19 = vcombine.low %v3294_v13, %v3302_v14 }
 0xb41   : > { %v5685_v22 = vpop.eup %5684  ;;  %v3310_v24 = vrot.slane %v3303_v16, %v7197_v58 }
 0xb42   : > { %3467 = vadd.xlane.f32.xlu0 %v3466_v20  ;;  %v3270_v23 = vcombine.low %v3261_v17, %v3269_v18  ;;  %v3318_v29 = vrot.slane %v3311_v19, %v7197_v58  ;;  %v3469_v31 = vsel %vm1993_vm2, %v5685_v22, 0.0 }
 0xb44   : > { %v3319_v30 = vcombine.low %v3310_v24, %v3318_v29  ;;  %v3324_v35 = vshrl.u32 %v3270_v23, 16 }
 0xb46   : > { %3470 = vadd.xlane.f32.xlu0 %v3469_v31  ;;  %v3322_v34 = vpack.i.b16 %v3319_v30, %v3270_v23  ;;  %v3325_v36 = vshrl.u32 %v3319_v30, 16 }
 0xb48   : > { %5265 = vmatpush3.bf16.msra.mxu0 %v3322_v34  ;;  %v3326_v37 = vpack.i.b16 %v3325_v36, %v3324_v35 }
 0xb4a   : > { %5271 = vmatpush3.bf16.msra.mxu1 %v3326_v37 }
 0xbc7   : > { %v3462_v38 = vpop.xlane.xlu0 %3461 }
 0xbc8   : > { %5686 = vrcp.f32 %v3462_v38 }
 0xbcb   : > { %v3465_v39 = vpop.xlane.xlu0 %3464 }
 0xbcc   : > { %5688 = vrcp.f32 %v3465_v39 }
 0xbcf   : > { %v3468_v40 = vpop.xlane.xlu0 %3467 }
 0xbd0   : > { %5690 = vrcp.f32 %v3468_v40 }
 0xbd2   : > { %v5687_v55 = vpop.eup %5686 }
 0xbd3   : > { %v3471_v41 = vpop.xlane.xlu0 %3470  ;;  %v3473_v44 = vmul.f32 %v5687_v55, %v5679_v49 }
 0xbd4   : > { %5692 = vrcp.f32 %v3471_v41 }
 0xbd6   : > { %v5689_v42 = vpop.eup %5688 }
 0xbd7   : > { %v3475_v45 = vmul.f32 %v5689_v42, %v5681_v61 }
 0xbd9   : > { %v3480_v46 = vpack.c.bf16 %v3475_v45, %v3473_v44 }
 0xbda   : > { %v5691_v47 = vpop.eup %5690 }
 0xbdb   : > { %5267 = vmatmul.mubr.msk.bf16.vlgmr.msra.gmra.mrb[20].mxu0 %vm1993_vm2, %v3480_v46  ;;  %v3477_v53 = vmul.f32 %v5691_v47, %v5683_v12 }
 0xbdc   : > { %4105 = vmatprep.mubr.bf16.mxu0 %v6428_v0 }
 0xbde   : > { %v5693_v48 = vpop.eup %5692 }
 0xbdf   : > { %v3479_v52 = vmul.f32 %v5693_v48, %v5685_v22 }
 0xbe1   : > { %v3481_v54 = vpack.c.bf16 %v3479_v52, %v3477_v53 }
 0xbe3   : > { %5273 = vmatmul.mubr.msk.bf16.vlgmr.msra.gmra.mrb[20].mxu1 %vm1993_vm2, %v3481_v54 }
 0xbe4   : > { %4148 = vmatprep.mubr.bf16.mxu1 %v6428_v0 }
 0xcae   : > { %v3519_v56 = vpop.f32.mrb[20].mxu0 }
 0xcaf   : > { %v5268_v57 = vpop.f32.mrb[21].mxu0  ;;  %v3570_v49 = vcombine.high %v3519_v56, %v6429_v21  ;;  %v3577_v62 = vrot.slane %v3519_v56, %v7190_v51 }
 0xcb0   : > { %v3522_v59 = vpop.f32.mrb[22].mxu0 }
 0xcb1   : > { %v5269_v60 = vpop.f32.mrb[23].mxu0  ;;  %v3584_v43 = vrot.slane %v3570_v49, %v7190_v51  ;;  %v3636_v4 = vcombine.high %v3522_v59, %v6429_v21  ;;  %v3643_v63 = vrot.slane %v3522_v59, %v7190_v51 }
 0xcb3   : > { %v3650_v14 = vrot.slane %v3636_v4, %v7190_v51 }
 0xcb6   : > { %v3563_v61 = vpop.f32.mrb[20].mxu1 }
 0xcb7   : > { %v3585_v1 = vcombine.high %v3563_v61, %v6429_v21  ;;  %v3592_v2 = vrot.slane %v3563_v61, %v7190_v51  ;;  %v5274_v3 = vpop.f32.mrb[21].mxu1 }
 0xcb8   : > { %v3566_v5 = vpop.f32.mrb[22].mxu1 }
 0xcb9   : > { %v3599_v0 = vrot.slane %v3585_v1, %v7190_v51  ;;  %v3600_v6 = vcombine.low %v3577_v62, %v3592_v2  ;;  %v3601_v7 = vcombine.high %v3577_v62, %v3592_v2  ;;  %v3651_v27 = vcombine.high %v3566_v5, %v6429_v21  ;;  %v5275_v8 = vpop.f32.mrb[23].mxu1 }
 0xcba   : > { %v3658_v9 = vrot.slane %v3566_v5, %v7190_v51  ;;  %v5589_v8 = vld [vmem:[#allocation25 + $0x2c] ss:$16 sps:$4 sm:$0xff]  }
 0xcbb   : > { %v3608_v10 = vrot.slane %v3600_v6, %v7197_v58  ;;  %v3615_v11 = vrot.slane %v3601_v7, %v7197_v58  ;;  %v3616_v12 = vcombine.low %v3584_v43, %v3599_v0  ;;  %v3617_v13 = vcombine.high %v3584_v43, %v3599_v0  ;;  %v5583_v6 = vld [vmem:[#allocation25 + $0xc] ss:$16 sps:$4 sm:$0xff]   ;;  %v5578_v7 = vld [vmem:[#allocation25] ss:$16 sps:$4 sm:$0xff]  }
 0xcbc   : > { %v3665_v15 = vrot.slane %v3651_v27, %v7190_v51  ;;  %v3666_v16 = vcombine.low %v3643_v63, %v3658_v9  ;;  %v3667_v17 = vcombine.high %v3643_v63, %v3658_v9  ;;  %v5581_v27 = vld [vmem:[#allocation25 + $0x8] ss:$16 sps:$4 sm:$0xff]   ;;  %4116 = vmatprep.subr.bf16.mxu1 %v5583_v6  ;;  %v5584_v63 = vld [vmem:[#allocation25 + $0x20] ss:$16 sps:$4 sm:$0xff]  }
 0xcbd   : > { %v3624_v18 = vrot.slane %v3616_v12, %v7197_v58  ;;  %v3631_v21 = vrot.slane %v3617_v13, %v7197_v58  ;;  %v3702_v19 = vcombine.low %v3608_v10, %v3615_v11  ;;  %v5029_v20 = vcombine.high %v3608_v10, %v3615_v11  ;;  %4117 = vmatpush1.bf16.msra.mxu1 %v5581_v27  ;;  %v5587_v9 = vld [vmem:[#allocation25 + $0x28] ss:$16 sps:$4 sm:$0xff]   ;;  %v5592_v10 = vld [vmem:[#allocation25 + $0x44] ss:$16 sps:$4 sm:$0xff]   ;;  %v5595_v11 = vld [vmem:[#allocation25 + $0x4c] ss:$16 sps:$4 sm:$0xff]  }
 0xcbe   : > { %v3674_v22 = vrot.slane %v3666_v16, %v7197_v58  ;;  %v3681_v23 = vrot.slane %v3667_v17, %v7197_v58  ;;  %v3682_v24 = vcombine.low %v3650_v14, %v3665_v15  ;;  %v3683_v29 = vcombine.high %v3650_v14, %v3665_v15  ;;  %4118 = vmatprep.subr.bf16.mxu1 %v5589_v8  ;;  %v5590_v12 = vld [vmem:[#allocation25 + $0x40] ss:$16 sps:$4 sm:$0xff]   ;;  %v5593_v13 = vld [vmem:[#allocation25 + $0x48] ss:$16 sps:$4 sm:$0xff]   ;;  %v5598_v14 = vld [vmem:[#allocation25 + $0x64] ss:$16 sps:$4 sm:$0xff]  }
 0xcbf   : > { %v3709_v30 = vrot.slane %v3702_v19, %v7190_v51  ;;  %v3717_v31 = vrot.slane %v5029_v20, %v7190_v51  ;;  %v3718_v34 = vcombine.low %v3624_v18, %v3631_v21  ;;  %v5030_v35 = vcombine.high %v3624_v18, %v3631_v21  ;;  %v5601_v15 = vld [vmem:[#allocation25 + $0x6c] ss:$16 sps:$4 sm:$0xff]   ;;  %v5596_v16 = vld [vmem:[#allocation25 + $0x60] ss:$16 sps:$4 sm:$0xff]   ;;  %v5599_v17 = vld [vmem:[#allocation25 + $0x68] ss:$16 sps:$4 sm:$0xff]  }
 0xcc0   : > { %v3690_v36 = vrot.slane %v3682_v24, %v7197_v58  ;;  %v3697_v37 = vrot.slane %v3683_v29, %v7197_v58  ;;  %v3752_v38 = vcombine.low %v3674_v22, %v3681_v23  ;;  %v5031_v39 = vcombine.high %v3674_v22, %v3681_v23  ;;  %v5604_v18 = vld [vmem:[#allocation25 + $0x84] ss:$16 sps:$4 sm:$0xff]   ;;  %v5602_v21 = vld [vmem:[#allocation25 + $0x80] ss:$16 sps:$4 sm:$0xff]   ;;  %v5605_v19 = vld [vmem:[#allocation25 + $0x88] ss:$16 sps:$4 sm:$0xff]  }
 0xcc1   : > { %v3725_v40 = vrot.slane %v3718_v34, %v7190_v51  ;;  %v3733_v41 = vrot.slane %v5030_v35, %v7190_v51  ;;  %v3734_v55 = vcombine.low %v3709_v30, %v3717_v31  ;;  %4119 = vmatpush1.bf16.msra.mxu1 %v5587_v9  ;;  %v5607_v20 = vld [vmem:[#allocation25 + $0x8c] ss:$16 sps:$4 sm:$0xff]   ;;  %v5610_v22 = vld [vmem:[#allocation25 + $0xa4] ss:$16 sps:$4 sm:$0xff]   ;;  %v5608_v24 = vld [vmem:[#allocation25 + $0xa0] ss:$16 sps:$4 sm:$0xff]  }
 0xcc2   : > { %v3759_v42 = vrot.slane %v3752_v38, %v7190_v51  ;;  %v3767_v44 = vrot.slane %v5031_v39, %v7190_v51  ;;  %v3768_v45 = vcombine.low %v3690_v36, %v3697_v37  ;;  %v5032_v46 = vcombine.high %v3690_v36, %v3697_v37  ;;  %4120 = vmatprep.subr.bf16.mxu1 %v5595_v11  ;;  %v5613_v23 = vld [vmem:[#allocation25 + $0xac] ss:$16 sps:$4 sm:$0xff]   ;;  %v5611_v29 = vld [vmem:[#allocation25 + $0xa8] ss:$16 sps:$4 sm:$0xff]   ;;  %v5616_v30 = vld [vmem:[#allocation25 + $0xc4] ss:$16 sps:$4 sm:$0xff]  }
 0xcc3   : > { %v3742_v47 = vcombine.low %v3725_v40, %v3733_v41  ;;  %v3741_v54 = vrot.slane %v3734_v55, %v7197_v58  ;;  %v5619_v31 = vld [vmem:[#allocation25 + $0xcc] ss:$16 sps:$4 sm:$0xff]   ;;  %v5614_v34 = vld [vmem:[#allocation25 + $0xc0] ss:$16 sps:$4 sm:$0xff]   ;;  %v5617_v35 = vld [vmem:[#allocation25 + $0xc8] ss:$16 sps:$4 sm:$0xff]  }
 0xcc4   : > { %v3775_v48 = vrot.slane %v3768_v45, %v7190_v51  ;;  %v3783_v53 = vrot.slane %v5032_v46, %v7190_v51  ;;  %v3784_v52 = vcombine.low %v3759_v42, %v3767_v44  ;;  %v5622_v36 = vld [vmem:[#allocation25 + $0xe4] ss:$16 sps:$4 sm:$0xff]   ;;  %v5625_v37 = vld [vmem:[#allocation25 + $0xec] ss:$16 sps:$4 sm:$0xff]   ;;  %v5620_v38 = vld [vmem:[#allocation25 + $0xe0] ss:$16 sps:$4 sm:$0xff]  }
 0xcc5   : > { %v3749_v56 = vrot.slane %v3742_v47, %v7197_v58  ;;  %4121 = vmatpush1.bf16.msra.mxu1 %v5593_v13  ;;  %v5623_v39 = vld [vmem:[#allocation25 + $0xe8] ss:$16 sps:$4 sm:$0xff]   ;;  %v5631_v8 = vld [vmem:[#allocation28 + $0xc8] sm:$0xff]   ;;  %v5638_v13 = vld [vmem:[#allocation28 + $0x58] sm:$0xff]  }
 0xcc6   : > { %v3792_v57 = vcombine.low %v3775_v48, %v3783_v53  ;;  %v3791_v49 = vrot.slane %v3784_v52, %v7197_v58  ;;  %4122 = vmatprep.subr.bf16.mxu1 %v5601_v15  ;;  %v5626_v40 = vld [vmem:[#allocation28 + $0x40] sm:$0xff]   ;;  %v5634_v9 = vld [vmem:[#allocation28 + $0x50] sm:$0xff]   ;;  %v5640_v15 = vld [vmem:[#allocation28 + $0x18] sm:$0xff]  }
 0xcc7   : > { %v3751_v59 = vcombine.high %v3741_v54, %v3749_v56  ;;  %v3750_v60 = vcombine.low %v3741_v54, %v3749_v56  ;;  %v5627_v41 = vld [vmem:[#allocation28 + $0xc0] sm:$0xff]   ;;  %v5636_v11 = vld [vmem:[#allocation28 + $0x10] sm:$0xff]  }
 0xcc8   : > { %v3799_v61 = vrot.slane %v3792_v57, %v7197_v58  ;;  %v5629_v27 = vld [vmem:[#allocation28 + $0x80] sm:$0xff]  }
 0xcc9   : > { %3804 = vrot.lane.b32.xlu1 %v3751_v59, %s6430_s30  ;;  %4123 = vmatpush1.bf16.msra.mxu1 %v5599_v17  ;;  %v5642_v17 = vld [vmem:[#allocation28 + $0x60] sm:$0xff]  }
 0xcca   : > { %v3801_v62 = vcombine.high %v3791_v49, %v3799_v61  ;;  %v3800_v1 = vcombine.low %v3791_v49, %v3799_v61  ;;  %4124 = vmatprep.subr.bf16.mxu1 %v5607_v20  ;;  %v5646_v20 = vld [vmem:[#allocation28 + $0x68] sm:$0xff]  }
 0xccc   : > { %3806 = vrot.lane.b32.xlu0 %v3801_v62, %s6430_s30 }
 0xccd   : > { %4125 = vmatpush1.bf16.msra.mxu1 %v5605_v19  ;;  %v5645_v19 = vld [vmem:[#allocation28 + $0xa0] sm:$0xff]  }
 0xcce   : > { %4126 = vmatprep.subr.bf16.mxu1 %v5613_v23  ;;  %v5648_v23 = vld [vmem:[#allocation28 + $0x28] sm:$0xff]  }
 0xcd1   : > { %4127 = vmatpush1.bf16.msra.mxu1 %v5611_v29  ;;  %v5650_v29 = vld [vmem:[#allocation28 + $0x70] sm:$0xff]  }
 0xcd2   : > { %4128 = vmatprep.subr.bf16.mxu1 %v5619_v31  ;;  %v5652_v31 = vld [vmem:[#allocation28 + $0x30] sm:$0xff]  }
 0xcd5   : > { %4129 = vmatpush1.bf16.msra.mxu1 %v5617_v35  ;;  %v5654_v35 = vld [vmem:[#allocation28 + $0x78] sm:$0xff]  }
 0xcd6   : > { %4130 = vmatprep.subr.bf16.mxu1 %v5625_v37  ;;  %v5656_v37 = vld [vmem:[#allocation28 + $0x38] sm:$0xff]  }
 0xcd9   : > { %4131 = vmatpush1.bf16.msra.mxu1 %v5623_v39  ;;  %v3891_v39 = vld [vmem:[#allocation26] sm:$0xf] }
 0xcda   : > { %5166 = vmatprep.subr.bf16.mxu1 %v5627_v41  ;;  %v3896_v41 = vrot.slane %v3891_v39, %v7165_v26 }
 0xd3b   : > { %v3805_v2 = vpop.permute.xlu1 %3804 }
 0xd3c   : > { %v3810_v51 = vsel %vm1884_vm1, %v3750_v60, %v3805_v2 }
 0xd3d   : > { %v7567_v3 = vadd.f32 %v3810_v51, %v7403_v32  ;;  %v5580_v32 = vld [vmem:[#allocation25 + $0x4] ss:$16 sps:$4 sm:$0xff]  }
 0xd3e   : > { %v3807_v43 = vpop.permute.xlu0 %3806  ;;  %4073 = vmatprep.subr.bf16.mxu0 %v5580_v32 }
 0xd3f   : > { %v3811_v4 = vsel %vm1884_vm1, %v3800_v1, %v3807_v43  ;;  %3816 = vadd.xlane.f32.xlu1 %v7567_v3  ;;  %v3822_v58 = vmul.f32 %v7567_v3, %v7567_v3  ;;  %4074 = vmatpush1.bf16.msra.mxu0 %v5578_v7  ;;  %v5033_v1 = vld [vmem:[#allocation22] ss:$0 sm:$0xff]  ;;  %v5628_v7 = vld [vmem:[#allocation28] sm:$0xff]  }
 0xd40   : > { %v7572_v5 = vadd.f32 %v3811_v4, %v7405_v33  ;;  %v5586_v33 = vld [vmem:[#allocation25 + $0x24] ss:$16 sps:$4 sm:$0xff]  }
 0xd41   : > { %4075 = vmatprep.subr.bf16.mxu0 %v5586_v33 }
 0xd42   : > { %3818 = vadd.xlane.f32.xlu0 %v7572_v5  ;;  %v3823_v0 = vmul.f32 %v7572_v5, %v7572_v5 }
 0xd43   : > { %3824 = vadd.xlane.f32.xlu1 %v3822_v58  ;;  %4076 = vmatpush1.bf16.msra.mxu0 %v5584_v63  ;;  %v5034_v58 = vld [vmem:[#allocation23] ss:$0 sm:$0xff]  ;;  %v5633_v63 = vld [vmem:[#allocation28 + $0x88] sm:$0xff]  }
 0xd44   : > { %4077 = vmatprep.subr.bf16.mxu0 %v5592_v10  ;;  %v5635_v10 = vld [vmem:[#allocation28 + $0xd0] sm:$0xff]  }
 0xd47   : > { %3826 = vadd.xlane.f32.xlu1 %v3823_v0  ;;  %4078 = vmatpush1.bf16.msra.mxu0 %v5590_v12  ;;  %v5637_v12 = vld [vmem:[#allocation28 + $0x90] sm:$0xff]  }
 0xd48   : > { %4079 = vmatprep.subr.bf16.mxu0 %v5598_v14  ;;  %v5639_v14 = vld [vmem:[#allocation28 + $0xd8] sm:$0xff]  }
 0xd4b   : > { %4080 = vmatpush1.bf16.msra.mxu0 %v5596_v16  ;;  %v5641_v16 = vld [vmem:[#allocation28 + $0x98] sm:$0xff]  }
 0xd4c   : > { %4081 = vmatprep.subr.bf16.mxu0 %v5604_v18  ;;  %v5643_v18 = vld [vmem:[#allocation28 + $0xe0] sm:$0xff]  }
 0xd4f   : > { %4082 = vmatpush1.bf16.msra.mxu0 %v5602_v21  ;;  %v5644_v21 = vld [vmem:[#allocation28 + $0x20] sm:$0xff]  }
 0xd50   : > { %4083 = vmatprep.subr.bf16.mxu0 %v5610_v22  ;;  %v5647_v22 = vld [vmem:[#allocation28 + $0xe8] sm:$0xff]  }
 0xd53   : > { %4084 = vmatpush1.bf16.msra.mxu0 %v5608_v24  ;;  %v5649_v24 = vld [vmem:[#allocation28 + $0xa8] sm:$0xff]  }
 0xd54   : > { %4085 = vmatprep.subr.bf16.mxu0 %v5616_v30  ;;  %v5651_v30 = vld [vmem:[#allocation28 + $0xf0] sm:$0xff]  }
 0xd57   : > { %4086 = vmatpush1.bf16.msra.mxu0 %v5614_v34  ;;  %v5653_v34 = vld [vmem:[#allocation28 + $0xb0] sm:$0xff]  }
 0xd58   : > { %4087 = vmatprep.subr.bf16.mxu0 %v5622_v36  ;;  %v5655_v36 = vld [vmem:[#allocation28 + $0xf8] sm:$0xff]  }
 0xd5b   : > { %4088 = vmatpush1.bf16.msra.mxu0 %v5620_v38  ;;  %v5657_v38 = vld [vmem:[#allocation28 + $0xb8] sm:$0xff]  }
 0xd5c   : > { %5144 = vmatprep.subr.bf16.mxu0 %v5626_v40  ;;  %v3907_v40 = vsub.s32 3, %v7162_v25 }
 0xdcc   : > { %v3817_v55 = vpop.xlane.xlu1 %3816 }
 0xdcd   : > { %v3820_v42 = vmul.f32 0.0078125, %v3817_v55  ;;  %v3904_v55 = vrot.slane %v3891_v39, %v1017_v50 }
 0xdcf   : > { %v3819_v44 = vpop.xlane.xlu0 %3818  ;;  %v3830_v46 = vmul.f32 %v3820_v42, %v3820_v42  ;;  %v3834_v49 = vsub.f32 %v7567_v3, %v3820_v42  ;;  %v5630_v3 = vld [vmem:[#allocation28 + $0x48] sm:$0xff]   ;;  %v3900_v42 = vrot.slane %v3891_v39, %v7170_v28 }
 0xdd0   : > { %v3825_v45 = vpop.xlane.xlu1 %3824  ;;  %v3821_v47 = vmul.f32 0.0078125, %v3819_v44  ;;  %v3908_v44 = vrot.slane %v3891_v39, %v3907_v40 }
 0xdd1   : > { %v3828_v48 = vmul.f32 0.0078125, %v3825_v45 }
 0xdd2   : > { %v3831_v54 = vmul.f32 %v3821_v47, %v3821_v47  ;;  %v3835_v2 = vsub.f32 %v7572_v5, %v3821_v47  ;;  %v5632_v5 = vld [vmem:[#allocation28 + $0x8] sm:$0xff]  }
 0xdd3   : > { %v3832_v53 = vsub.f32 %v3828_v48, %v3830_v46 }
 0xdd4   : > { %v3827_v52 = vpop.xlane.xlu1 %3826 }
 0xdd5   : > { %v3836_v56 = vadd.f32 1e-12, %v3832_v53  ;;  %v3829_v57 = vmul.f32 0.0078125, %v3827_v52 }
 0xdd7   : > { %5694 = vrsqrt.f32 %v3836_v56  ;;  %v3833_v59 = vsub.f32 %v3829_v57, %v3831_v54 }
 0xdd9   : > { %v3837_v60 = vadd.f32 1e-12, %v3833_v59 }
 0xddb   : > { %5696 = vrsqrt.f32 %v3837_v60 }
 0xde1   : > { %v5695_v61 = vpop.eup %5694 }
 0xde2   : > { %v3840_v62 = vmul.f32 %v5695_v61, %v3834_v49 }
 0xde4   : > { %v3848_v4 = vmul.f32 %v5033_v1, %v3840_v62 }
 0xde5   : > { %v5697_v51 = vpop.eup %5696 }
 0xde6   : > { %v3841_v43 = vmul.f32 %v5697_v51, %v3835_v2  ;;  %v7581_v32 = vadd.f32 %v5034_v58, %v3848_v4 }
 0xde8   : > { %v3849_v0 = vmul.f32 %v5033_v1, %v3841_v43 }
 0xdea   : > { %v7583_v6 = vadd.f32 %v5034_v58, %v3849_v0 }
 0xdec   : > { %v3858_v33 = vpack.c.bf16 %v7583_v6, %v7581_v32 }
 0xdee   : > { %4106 = vmatmul.mubr.bf16.vlgmr.msra.gmra.mrb[24].mxu0 %v3858_v33  ;;  %4149 = vmatmul.mubr.bf16.vlgmr.msra.gmra.mrb[24].mxu1 %v3858_v33 }
 0xdef   : > { %5145 = vmatpush3.bf16.msra.mxu0 %v5628_v7  ;;  %5167 = vmatpush3.bf16.msra.mxu1 %v5629_v27 }
 0xdf0   : > { %5146 = vmatprep.subr.bf16.mxu0 %v5630_v3  ;;  %5168 = vmatprep.subr.bf16.mxu1 %v5631_v8 }
 0xdf3   : > { %5147 = vmatpush3.bf16.msra.mxu0 %v5632_v5  ;;  %5169 = vmatpush3.bf16.msra.mxu1 %v5633_v63 }
 0xdf4   : > { %5148 = vmatprep.subr.bf16.mxu0 %v5634_v9  ;;  %5170 = vmatprep.subr.bf16.mxu1 %v5635_v10 }
 0xdf7   : > { %5149 = vmatpush3.bf16.msra.mxu0 %v5636_v11  ;;  %5171 = vmatpush3.bf16.msra.mxu1 %v5637_v12 }
 0xdf8   : > { %5150 = vmatprep.subr.bf16.mxu0 %v5638_v13  ;;  %5172 = vmatprep.subr.bf16.mxu1 %v5639_v14 }
 0xdfb   : > { %5151 = vmatpush3.bf16.msra.mxu0 %v5640_v15  ;;  %5173 = vmatpush3.bf16.msra.mxu1 %v5641_v16 }
 0xdfc   : > { %5152 = vmatprep.subr.bf16.mxu0 %v5642_v17  ;;  %5174 = vmatprep.subr.bf16.mxu1 %v5643_v18 }
 0xdff   : > { %5153 = vmatpush3.bf16.msra.mxu0 %v5644_v21  ;;  %5175 = vmatpush3.bf16.msra.mxu1 %v5645_v19 }
 0xe00   : > { %5154 = vmatprep.subr.bf16.mxu0 %v5646_v20  ;;  %5176 = vmatprep.subr.bf16.mxu1 %v5647_v22 }
 0xe03   : > { %5155 = vmatpush3.bf16.msra.mxu0 %v5648_v23  ;;  %5177 = vmatpush3.bf16.msra.mxu1 %v5649_v24 }
 0xe04   : > { %5156 = vmatprep.subr.bf16.mxu0 %v5650_v29  ;;  %5178 = vmatprep.subr.bf16.mxu1 %v5651_v30 }
 0xe07   : > { %5157 = vmatpush3.bf16.msra.mxu0 %v5652_v31  ;;  %5179 = vmatpush3.bf16.msra.mxu1 %v5653_v34 }
 0xe08   : > { %5158 = vmatprep.subr.bf16.mxu0 %v5654_v35  ;;  %5180 = vmatprep.subr.bf16.mxu1 %v5655_v36 }
 0xe0b   : > { %5159 = vmatpush3.bf16.msra.mxu0 %v5656_v37  ;;  %5181 = vmatpush3.bf16.msra.mxu1 %v5657_v38 }
 0xec1   : > { %v4107_v45 = vpop.f32.mrb[24].mxu0  ;;  %v4150_v46 = vpop.f32.mrb[24].mxu1 }
 0xec2   : > { %v4108_v47 = vadd.f32 %v4107_v45, %v3896_v41  ;;  %v4151_v48 = vadd.f32 %v4150_v46, %v3904_v55  ;;  %v4109_v53 = vpop.f32.mrb[25].mxu0  ;;  %v4152_v52 = vpop.f32.mrb[25].mxu1  ;;  %v5067_v45 = vld [vmem:[#allocation29] ss:$0 sm:$0xff] }
 0xec3   : > { %v4110_v54 = vadd.f32 %v4109_v53, %v3900_v42  ;;  %v4153_v56 = vadd.f32 %v4152_v52, %v3908_v44  ;;  %v4111_v57 = vpop.f32.mrb[26].mxu0  ;;  %v4154_v59 = vpop.f32.mrb[26].mxu1 }
 0xec4   : > { %v4167_v60 = vmul.f32 0.70710677, %v4108_v47  ;;  %v4169_v49 = vmul.f32 0.70710677, %v4151_v48  ;;  %v4112_v25 = vadd.f32 %v4111_v57, %v3896_v41  ;;  %v4155_v50 = vadd.f32 %v4154_v59, %v3904_v55  ;;  %v4113_v62 = vpop.f32.mrb[27].mxu0  ;;  %v4156_v28 = vpop.f32.mrb[27].mxu1 }
 0xec5   : > { %v4168_v61 = vmul.f32 0.70710677, %v4110_v54  ;;  %v4170_v26 = vmul.f32 0.70710677, %v4153_v56  ;;  %v4114_v1 = vadd.f32 %v4113_v62, %v3900_v42  ;;  %v4157_v2 = vadd.f32 %v4156_v28, %v3908_v44 }
 0xec6   : > { %5698 = verf.f32 %v4167_v60  ;;  %v4171_v51 = vmul.f32 0.70710677, %v4112_v25  ;;  %v4173_v43 = vmul.f32 0.70710677, %v4155_v50  ;;  %v4159_v5 = vmul.f32 0.5, %v4108_v47 }
 0xec7   : > { %5700 = verf.f32 %v4169_v49  ;;  %v4172_v4 = vmul.f32 0.70710677, %v4114_v1  ;;  %v4174_v58 = vmul.f32 0.70710677, %v4157_v2  ;;  %v4161_v63 = vmul.f32 0.5, %v4151_v48 }
 0xec8   : > { %5702 = verf.f32 %v4168_v61  ;;  %v4160_v11 = vmul.f32 0.5, %v4110_v54  ;;  %v4163_v13 = vmul.f32 0.5, %v4112_v25  ;;  %v4162_v16 = vmul.f32 0.5, %v4153_v56 }
 0xec9   : > { %5704 = verf.f32 %v4170_v26  ;;  %v4165_v18 = vmul.f32 0.5, %v4155_v50  ;;  %v4164_v23 = vmul.f32 0.5, %v4114_v1  ;;  %v4166_v31 = vmul.f32 0.5, %v4157_v2 }
 0xeca   : > { %5706 = verf.f32 %v4171_v51 }
 0xecb   : > { %5708 = verf.f32 %v4173_v43 }
 0xecc   : > { %5710 = verf.f32 %v4172_v4 }
 0xecd   : > { %5712 = verf.f32 %v4174_v58 }
 0xed0   : > { %v5699_v0 = vpop.eup %5698 }
 0xed1   : > { %v5701_v7 = vpop.eup %5700  ;;  %v4183_v3 = vadd.f32 1.0, %v5699_v0 }
 0xed2   : > { %v5703_v27 = vpop.eup %5702  ;;  %v4185_v9 = vadd.f32 1.0, %v5701_v7 }
 0xed3   : > { %v5705_v33 = vpop.eup %5704  ;;  %v4184_v12 = vadd.f32 1.0, %v5703_v27  ;;  %v4191_v20 = vmul.f32 %v4183_v3, %v4159_v5 }
 0xed4   : > { %v5707_v8 = vpop.eup %5706  ;;  %v4186_v17 = vadd.f32 1.0, %v5705_v33  ;;  %v4193_v29 = vmul.f32 %v4185_v9, %v4161_v63 }
 0xed5   : > { %v5709_v10 = vpop.eup %5708  ;;  %v4187_v14 = vadd.f32 1.0, %v5707_v8  ;;  %v4192_v35 = vmul.f32 %v4184_v12, %v4160_v11  ;;  %v5101_v12 = vld [vmem:[#allocation32] ss:$0 sm:$0xff] }
 0xed6   : > { %v5711_v15 = vpop.eup %5710  ;;  %v4189_v21 = vadd.f32 1.0, %v5709_v10  ;;  %v4194_v38 = vmul.f32 %v4186_v17, %v4162_v16  ;;  %v5100_v10 = vld [vmem:[#allocation31] ss:$0 sm:$0xff] }
 0xed7   : > { %v5713_v19 = vpop.eup %5712  ;;  %v4195_v22 = vmul.f32 %v4187_v14, %v4163_v13  ;;  %v4188_v24 = vadd.f32 1.0, %v5711_v15 }
 0xed8   : > { %v4197_v30 = vmul.f32 %v4189_v21, %v4165_v18  ;;  %v4190_v34 = vadd.f32 1.0, %v5713_v19 }
 0xed9   : > { %v4199_v36 = vpack.c.bf16 %v4195_v22, %v4191_v20  ;;  %v4196_v37 = vmul.f32 %v4188_v24, %v4164_v23 }
 0xeda   : > { %v4201_v39 = vpack.c.bf16 %v4197_v30, %v4193_v29  ;;  %v4198_v40 = vmul.f32 %v4190_v34, %v4166_v31 }
 0xedb   : > { %v4200_v41 = vpack.c.bf16 %v4196_v37, %v4192_v35 }
 0xedc   : > { %v4202_v55 = vpack.c.bf16 %v4198_v40, %v4194_v38 }
 0xedd   : > { %4498 = vmatprep.mubr.bf16.mxu0 %v4200_v41 }
 0xede   : > { %4539 = vmatprep.mubr.bf16.mxu1 %v4202_v55  ;;  %4499 = vmatmul.mubr.bf16.vlgmr.msra.gmra.mrb[28].mxu0 %v4199_v36 }
 0xedf   : > { %4540 = vmatmul.mubr.bf16.vlgmr.msra.gmra.mrb[28].mxu1 %v4201_v39 }
 0xfb1   : > { %v5160_v42 = vpop.f32.mrb[28].mxu0 }
 0xfb2   : > { %v5182_v44 = vpop.f32.mrb[28].mxu1  ;;  %v5161_v46 = vpop.f32.mrb[29].mxu0 }
 0xfb3   : > { %v5162_v47 = vadd.f32 %v5161_v46, %v5160_v42  ;;  %v5183_v48 = vpop.f32.mrb[29].mxu1  ;;  %v5163_v53 = vpop.f32.mrb[30].mxu0 }
 0xfb4   : > { %v5184_v52 = vadd.f32 %v5183_v48, %v5182_v44  ;;  %v5185_v54 = vpop.f32.mrb[30].mxu1  ;;  %v5164_v56 = vpop.f32.mrb[31].mxu0 }
 0xfb5   : > { %v4501_v57 = vadd.f32 %v5162_v47, %v5067_v45  ;;  %v5165_v59 = vadd.f32 %v5164_v56, %v5163_v53  ;;  %v5186_v60 = vpop.f32.mrb[31].mxu1 }
 0xfb6   : > { %v5187_v49 = vadd.f32 %v5186_v60, %v5185_v54 }
 0xfb7   : > { %v4542_v61 = vadd.f32 %v5184_v52, %v4501_v57  ;;  %v4504_v26 = vadd.f32 %v5165_v59, %v5067_v45 }
 0xfb9   : > { %v4545_v25 = vadd.f32 %v5187_v49, %v4504_v26  ;;  %v4548_v50 = vadd.f32 %v4542_v61, %v7581_v32 }
 0xfbb   : > { %4552 = vadd.xlane.f32.xlu1 %v4548_v50  ;;  %v4558_v62 = vmul.f32 %v4548_v50, %v4548_v50  ;;  %v4549_v28 = vadd.f32 %v4545_v25, %v7583_v6 }
 0xfbd   : > { %4560 = vadd.xlane.f32.xlu0 %v4558_v62  ;;  %v4559_v1 = vmul.f32 %v4549_v28, %v4549_v28 }
 0xfbf   : > { %4554 = vadd.xlane.f32.xlu1 %v4549_v28 }
 0xfc3   : > { %4562 = vadd.xlane.f32.xlu1 %v4559_v1 }
0x1048   : > { %v4553_v2 = vpop.xlane.xlu1 %4552 }
0x1049   : > { %v4556_v51 = vmul.f32 0.0078125, %v4553_v2 }
0x104a   : > { %v4561_v43 = vpop.xlane.xlu0 %4560 }
0x104b   : > { %v4566_v4 = vmul.f32 %v4556_v51, %v4556_v51  ;;  %v4564_v58 = vmul.f32 0.0078125, %v4561_v43  ;;  %v4570_v63 = vsub.f32 %v4548_v50, %v4556_v51 }
0x104c   : > { %v4555_v0 = vpop.xlane.xlu1 %4554 }
0x104d   : > { %v4568_v7 = vsub.f32 %v4564_v58, %v4566_v4  ;;  %v4557_v27 = vmul.f32 0.0078125, %v4555_v0 }
0x104f   : > { %v4572_v33 = vadd.f32 1e-12, %v4568_v7  ;;  %v4567_v32 = vmul.f32 %v4557_v27, %v4557_v27  ;;  %v4571_v15 = vsub.f32 %v4549_v28, %v4557_v27 }
0x1050   : > { %v4563_v3 = vpop.xlane.xlu1 %4562 }
0x1051   : > { %5714 = vrsqrt.f32 %v4572_v33  ;;  %v4565_v8 = vmul.f32 0.0078125, %v4563_v3 }
0x1053   : > { %v4569_v5 = vsub.f32 %v4565_v8, %v4567_v32 }
0x1055   : > { %v4573_v6 = vadd.f32 1e-12, %v4569_v5 }
0x1057   : > { %5716 = vrsqrt.f32 %v4573_v6 }
0x105b   : > { %v5715_v9 = vpop.eup %5714 }
0x105c   : > { %v4576_v11 = vmul.f32 %v5715_v9, %v4570_v63 }
0x105e   : > { %v4584_v13 = vmul.f32 %v5100_v10, %v4576_v11 }
0x1060   : > { %v4592_v14 = vadd.f32 %v5101_v12, %v4584_v13 }
0x1061   : > { %v5717_v16 = vpop.eup %5716 }
0x1062   : > { %v4577_v17 = vmul.f32 %v5717_v16, %v4571_v15  ;;  %4594 = vst [vmem:[%s962_s7] sm:$0xff] %v4592_v14 }
0x1064   : > { %v4585_v18 = vmul.f32 %v5100_v10, %v4577_v17 }
0x1066   : > { %v4593_v21 = vadd.f32 %v5101_v12, %v4585_v18 }
0x1068   : > { %4595 = vst [vmem:[%s962_s7 + $0x8] sm:$0xff] %v4593_v21 }
0x1069   : > { %6301 = shalt.err (!%p6298_p5)
}
0x106a   : > { %s6302_s27 = scalar_lea.hbm %s7599_s2, 256  ;;  %s6306_s23 = scalar_lea.hbm %s7799_s5, 512 }
0x106b   : > { %p6303_p0 = scmp.ne.s32.totalorder %s7599_s2, %s6302_s27  ;;  %p6307_p9 = scmp.lt.u32.totalorder %s7599_s2, %s7799_s5 }
0x106c   : > { %p6308_p8 = scmp.lt.u32.totalorder %s6306_s23, %s6302_s27  ;;  %p6310_p13 = scmp.lt.u32.totalorder %s6302_s27, %s7599_s2 }
0x106d   : > { %p6304_p1 = pnand %p6303_p0, %p7800_p10 }
0x106e   : > { %p6309_p6 = por %p6308_p8, %p6307_p9 }
0x106f   : > { %p6305_p12 = pneg %p6304_p1 }
0x1070   : > { %p6311_p11 = por %p6310_p13, %p6309_p6 }
0x1072   : > { %p6312_p4 = pnand %p6311_p11, %p6305_p12 }
0x1074   : > { %6315 = shalt.err (!%p6312_p4)
}
0x1075   : > { %s6435_s11 = smov 128   ;;  %s6436_s30 = smov 8  }
0x1076   : > { %5348 = dma.vmem_to_hbm [thread:$0]  (%p7800_p10), %s7601_s9, 256, %s7599_s2, %s4597_s29, %s6435_s11, %s6435_s11, %s6436_s30  }
0x1077 PF: > { %s7801_s7 = sld [smem:[#allocation48_spill]]  ;;  %s7802_s13 = sld [smem:[#allocation53_spill]] }
0x1078   : > { %p7804_p2 = scmp.ge.s32.totalorder %s6398_s24, 2 }
0x107d   : > { %s4625_s18 = sand.u32 1, %s7801_s7   ;;  %p7803_p7 = scmp.ne.s32.totalorder %s7802_s13, 0 }
0x107e   : > { %s4626_s21 = scalar_lea.sflag [#allocation4], %s4625_s18 }
0x107f   : > { %p5413_p3 = pnand %p7804_p2, %p7803_p7 }
0x1081   : > { %6381 = dma.done.wait (!%p5413_p3), %s4626_s21, 256  }
0x1082   : > { %6383 = vsyncadd (!%p5413_p3), %s4626_s21, 4294967040  ;;  %s7805_s24 = sld [smem:[#allocation51_spill]]  ;;  %s7806_s4 = sld [smem:[#allocation49_spill]] }
0x1083   : > { %s7807_s23 = sld [smem:[#allocation52_spill]]  ;;  %s7808_s1 = smov %s6390_s22 }
0x1088   : > { %p47_p5 = scmp.ge.s32.totalorder %s7805_s24, 4   ;;  %s7809_s22 = smov %s7806_s4 }
0x108a   :  { %49 = sbr.rel (!%p47_p5) target bundleno = 39 (0x27), region = 246 }
0x1091   :  { %4631 = vsyncpa [#allocation3], 1 }
0x1092   :  { %4633 = vsyncpa [#allocation3 + $0x1], 1 }
0x1093   :  { %4634 = vsyncpa [#allocation6], 1 }
0x1094   :  { %4636 = vsyncpa [#allocation6 + $0x1], 1 }
0x1095   :  { %4637 = vsyncpa [#allocation9], 1 }
0x1096   :  { %4639 = vsyncpa [#allocation9 + $0x1], 1 }
0x1097   :  { %4640 = vsyncpa [#allocation12], 1 }
0x1098   :  { %4641 = vsyncpa [#allocation15], 1 }
0x1099   :  { %4642 = vsyncpa [#allocation18], 1 }
0x109a   :  { %4643 = vsyncpa [#allocation21], 1 }
0x109b   :  { %4644 = vsyncpa [#allocation24], 1 }
0x109c   :  { %4645 = vsyncpa [#allocation27], 1 }
0x109d   :  { %4646 = vsyncpa [#allocation30], 1 }
0x109e   :  { %4647 = vsyncpa [#allocation33], 1 }
0x109f   :  { %4648 = vsyncpa [#allocation4], 1 }
0x10a0   :  { %4650 = vsyncpa [#allocation4 + $0x1], 1 }

</bundles_post_ra>
